<compile_context>
chip_gen: v5e
topology: v5e:2x2
jax: 0.10.0
libtpu: 0.0.40
codegen_flags: <defaults>
</compile_context>

<pallas_src>
import functools

import jax
import jax.numpy as jnp
from jax import lax
from jax.experimental import pallas as pl
from jax.experimental.pallas import tpu as pltpu

_LANES = 128
_MAX_TILE_ROWS = 4096     # (4096,128) f32 = 2 MiB / buffer -> ~10 MiB total VMEM
_SMALL_FALLBACK = 1 << 16  # below this many elements, plain XLA wins


def _cdiv(a, b):
    return -(-a // b)


def _round_up(a, b):
    return _cdiv(a, b) * b


def _num_splits():
    """Leading 'parallel' grid axis: 2 on multi-TensorCore chips, else 1."""
    try:
        kind = jax.devices()[0].device_kind.lower()
    except Exception:
        return 1
    # v7x (2 TCs/chip) and v4 (megacore) benefit from the 2-way shard; the
    # single-TC inference chips (v5e/v6e) do not.
    if "v7" in kind or "v4" in kind:
        return 2
    return 1


def _mse_kernel(x_ref, t_ref, out_ref, acc_ref, *, inv_n, rows, tr, bps, need_mask):
    """One (TR, 128) tile of the sum-of-squared-differences reduction.

    Grid = (split, reduction_step). acc_ref is a full-tile f32 accumulator so
    the per-step chain is purely elementwise (perfect vreg-wise fusion); the
    cross-lane reduce happens once, in the finalize branch.
    """
    i = pl.program_id(1)

    @pl.when(i == 0)
    def _init():
        acc_ref[...] = jnp.zeros_like(acc_ref)

    d = x_ref[...].astype(jnp.float32) - t_ref[...].astype(jnp.float32)
    sq = d * d
    if need_mask:
        # Mask (a) the garbage rows of the partial last block and (b) any
        # duplicated block introduced by rounding the grid up to the split
        # count (its index_map is clamped to the last valid block).
        block = pl.program_id(0) * bps + i
        row_ids = block * tr + lax.broadcasted_iota(jnp.int32, (tr, _LANES), 0)
        sq = jnp.where(row_ids < rows, sq, 0.0)
    acc_ref[...] += sq

    @pl.when(i == pl.num_programs(1) - 1)
    def _finalize():
        # Single scalar store per split; scale by 1/n_elem (TRUE element count).
        out_ref[0, 0] = jnp.sum(acc_ref[...]) * inv_n


def _mse_forward(x, target):
    assert x.shape == target.shape, "input / target shape mismatch"
    n_elem = x.size

    # Tiny-input fallback: kernel launch + grid overhead would dominate.
    if n_elem < _SMALL_FALLBACK:
        d = x.astype(jnp.float32) - target.astype(jnp.float32)
        return jnp.mean(d * d)

    xf = x.reshape(-1)
    tf = target.reshape(-1)
    rem = n_elem % _LANES
    if rem:
        # Rare case: only the sub-128-element ragged tail is padded.  (If this
        # path mattered per-call, the padded target could be cached once in
        # ContentLoss.__init__.)  Zero pads contribute 0 to the sum.
        pad = _LANES - rem
        xf = jnp.pad(xf, (0, pad))
        tf = jnp.pad(tf, (0, pad))
    rows = xf.size // _LANES
    x2 = xf.reshape(rows, _LANES)   # layout-preserving reshape: no copy
    t2 = tf.reshape(rows, _LANES)

    # Sublane packing multiple for the narrower streamed dtype (8/16/32).
    min_itemsize = min(jnp.dtype(x.dtype).itemsize, jnp.dtype(target.dtype).itemsize)
    sub = 8 * max(1, 4 // min_itemsize)

    num_splits = _num_splits()
    # Largest tile that (a) fits the VMEM budget, (b) respects sublane packing,
    # (c) never exceeds the data itself (so we only ever have the standard
    # partial-last-block case, handled by the in-kernel mask).
    tr = min(_MAX_TILE_ROWS,
             _round_up(_cdiv(rows, num_splits), sub),
             (rows // sub) * sub)
    tr = max(tr, sub)

    nb = _cdiv(rows, tr)               # true number of data blocks
    bps = _cdiv(nb, num_splits)        # blocks per split (reduction axis)
    need_mask = (rows % tr != 0) or (num_splits * bps != nb)

    inv_n = 1.0 / float(n_elem)
    kernel = functools.partial(_mse_kernel, inv_n=inv_n, rows=rows, tr=tr,
                               bps=bps, need_mask=need_mask)

    def _idx(p, i):
        # Clamp grid points past the last data block onto block nb-1; their
        # contribution is fully masked to zero inside the kernel.
        return (jnp.minimum(p * bps + i, nb - 1), 0)

    in_spec = pl.BlockSpec((tr, _LANES), _idx)

    bytes_per_elem = (jnp.dtype(x.dtype).itemsize
                      + jnp.dtype(target.dtype).itemsize)
    partials = pl.pallas_call(
        kernel,
        out_shape=jax.ShapeDtypeStruct((num_splits, 1), jnp.float32),
        grid_spec=pltpu.PrefetchScalarGridSpec(
            num_scalar_prefetch=0,
            grid=(num_splits, bps),
            in_specs=[in_spec, in_spec],
            out_specs=pl.BlockSpec(
                (1, 1), lambda p, i: (p, 0), memory_space=pltpu.SMEM
            ),
            scratch_shapes=[pltpu.VMEM((tr, _LANES), jnp.float32)],
        ),
        compiler_params=pltpu.CompilerParams(
            dimension_semantics=("parallel", "arbitrary"),
        ),
        cost_estimate=pl.CostEstimate(
            flops=3 * n_elem,
            transcendentals=0,
            bytes_accessed=n_elem * bytes_per_elem,
        ),
    )(x2, t2)

    # Each partial is already scaled by 1/n_elem; their sum is the mean.
    return jnp.sum(partials)


@jax.custom_vjp
def mse_loss_pallas(x, target):
    """mean((x - target)**2) over all elements, computed in a Pallas kernel."""
    return _mse_forward(x, target)


def _mse_fwd(x, target):
    return _mse_forward(x, target), (x, target)


def _mse_bwd(res, g):
    x, target = res
    inv_n = 1.0 / float(x.size)
    gx = (2.0 * inv_n) * (x.astype(jnp.float32) - target.astype(jnp.float32)) * g
    # target is detached (stop_gradient semantics): zero cotangent.
    return gx.astype(x.dtype), jnp.zeros_like(target)


mse_loss_pallas.defvjp(_mse_fwd, _mse_bwd)


class ContentLoss:
    """JAX/Pallas equivalent of the PyTorch ContentLoss module."""

    def __init__(self, target):
        # .detach() equivalent: no gradients ever flow into the target.
        self.target = jax.lax.stop_gradient(target)
        self.loss = None

    def __call__(self, x):
        self.loss = mse_loss_pallas(x, self.target)
        return x  # identity pass-through, exactly like the PyTorch module


if __name__ == "__main__":
    key = jax.random.PRNGKey(0)
    k_in, k_tgt = jax.random.split(key)

    # Small NCHW shape consistent with a conv feature map (fallback path).
    x = jax.random.normal(k_in, (2, 4, 16, 16), dtype=jnp.float32)
    target = jax.random.normal(k_tgt, (2, 4, 16, 16), dtype=jnp.float32)

    module = ContentLoss(target)
    out = jax.block_until_ready(module(x))
    loss = jax.block_until_ready(module.loss)

    ref = jnp.mean((x - target) ** 2)
    assert out.shape == x.shape and bool(jnp.all(out == x))
    assert jnp.allclose(loss, ref, rtol=1e-6, atol=1e-6), (loss, ref)

    def check(shape, dtype, seed, rtol=1e-5, atol=1e-6):
        ka, kb = jax.random.split(jax.random.PRNGKey(seed))
        a = jax.random.normal(ka, shape, dtype=jnp.float32).astype(dtype)
        b = jax.random.normal(kb, shape, dtype=jnp.float32).astype(dtype)
        got = jax.block_until_ready(mse_loss_pallas(a, b))
        want = jnp.mean((a.astype(jnp.float32) - b.astype(jnp.float32)) ** 2)
        assert jnp.allclose(got, want, rtol=rtol, atol=atol), (shape, dtype, got, want)

    # Exact tile multiple: no masking, no padding, kernel path.
    check((2, 64, 64, 64), jnp.float32, seed=1)
    # Row count not a multiple of the tile: exercises the in-kernel mask.
    check((523, 384), jnp.float32, seed=2)
    # Element count not a multiple of 128: exercises the (rare) tail pad.
    check((131, 1001), jnp.float32, seed=3)
    # bf16 streaming: exercises 16-row sublane-packed tile rounding.
    check((256, 512), jnp.bfloat16, seed=4, rtol=1e-4, atol=1e-5)

    # Gradient path (the whole point of ContentLoss in style transfer).
    g = jax.block_until_ready(
        jax.grad(lambda im: mse_loss_pallas(im, target))(x)
    )
    g_ref = 2.0 * (x - target) / x.size
    assert jnp.allclose(g, g_ref, rtol=1e-5, atol=1e-6)

    print("KERNEL_OK")
</pallas_src>

<mosaic_0001>
module attributes {stable_mosaic.version = 11 : i64} {
  func.func @_mse_kernel(%arg0: i32, %arg1: i32, %arg2: memref<4096x128xf32, #tpu.memory_space<vmem>>, %arg3: memref<4096x128xf32, #tpu.memory_space<vmem>>, %arg4: memref<1x1xf32, #tpu.memory_space<smem>>, %arg5: memref<4096x128xf32, #tpu.memory_space<vmem>>) attributes {dimension_semantics = [#tpu.dimension_semantics<parallel>, #tpu.dimension_semantics<arbitrary>], iteration_bounds = array<i64: 1, 1>, scalar_prefetch = 0 : i64, scratch_operands = 1 : i64, tpu.core_type = #tpu.core_type<tc>, window_params = [{transform_indices = @transform_0, window_bounds = array<i64: 4096, 128>}, {transform_indices = @transform_1, window_bounds = array<i64: 4096, 128>}, {transform_indices = @transform_2, window_bounds = array<i64: 1, 1>}]} {
    %c0_i32 = arith.constant 0 : i32
    %0 = arith.cmpi eq, %arg1, %c0_i32 : i32
    %1 = arith.extui %0 : i1 to i32
    %c0_i32_0 = arith.constant 0 : i32
    %2 = arith.cmpi ne, %1, %c0_i32_0 : i32
    scf.if %2 {
      %cst = arith.constant 0.000000e+00 : f32
      %13 = vector.broadcast %cst : f32 to vector<4096x128xf32>
      %c0_10 = arith.constant 0 : index
      %c0_11 = arith.constant 0 : index
      %14 = vector.load %arg5[%c0_10, %c0_11] : memref<4096x128xf32, #tpu.memory_space<vmem>>, vector<4096x128xf32>
      tpu.vector_store %arg5[%c0_10, %c0_11], %13 {strides = array<i32>} : memref<4096x128xf32, #tpu.memory_space<vmem>>, vector<4096x128xf32>,
    } else {
    }
    %c0 = arith.constant 0 : index
    %c0_1 = arith.constant 0 : index
    %3 = vector.load %arg2[%c0, %c0_1] : memref<4096x128xf32, #tpu.memory_space<vmem>>, vector<4096x128xf32>
    %c0_2 = arith.constant 0 : index
    %c0_3 = arith.constant 0 : index
    %4 = vector.load %arg3[%c0_2, %c0_3] : memref<4096x128xf32, #tpu.memory_space<vmem>>, vector<4096x128xf32>
    %5 = arith.subf %3, %4 : vector<4096x128xf32>
    %6 = arith.mulf %5, %5 : vector<4096x128xf32>
    %c0_4 = arith.constant 0 : index
    %c0_5 = arith.constant 0 : index
    %7 = vector.load %arg5[%c0_4, %c0_5] : memref<4096x128xf32, #tpu.memory_space<vmem>>, vector<4096x128xf32>
    %8 = arith.addf %7, %6 : vector<4096x128xf32>
    %c0_6 = arith.constant 0 : index
    %c0_7 = arith.constant 0 : index
    %9 = vector.load %arg5[%c0_6, %c0_7] : memref<4096x128xf32, #tpu.memory_space<vmem>>, vector<4096x128xf32>
    tpu.vector_store %arg5[%c0_6, %c0_7], %8 {strides = array<i32>} : memref<4096x128xf32, #tpu.memory_space<vmem>>, vector<4096x128xf32>,
    %c0_i32_8 = arith.constant 0 : i32
    %10 = arith.cmpi eq, %arg1, %c0_i32_8 : i32
    %11 = arith.extui %10 : i1 to i32
    %c0_i32_9 = arith.constant 0 : i32
    %12 = arith.cmpi ne, %11, %c0_i32_9 : i32
    scf.if %12 {
      %c0_10 = arith.constant 0 : index
      %c0_11 = arith.constant 0 : index
      %13 = vector.load %arg5[%c0_10, %c0_11] : memref<4096x128xf32, #tpu.memory_space<vmem>>, vector<4096x128xf32>
      %14 = vector.shape_cast %13 : vector<4096x128xf32> to vector<1x4096x128xf32>
      %cst = arith.constant dense<0.000000e+00> : vector<1xf32>
      %15 = vector.multi_reduction <add>, %14, %cst [1, 2] : vector<1x4096x128xf32> to vector<1xf32>
      %16 = vector.shape_cast %15 : vector<1xf32> to vector<1x1x1xf32>
      %17 = vector.extract %16[0, 0, 0] : f32 from vector<1x1x1xf32>
      %cst_12 = arith.constant 1.90734863E-6 : f32
      %18 = arith.mulf %17, %cst_12 : f32
      %c0_13 = arith.constant 0 : index
      %c0_14 = arith.constant 0 : index
      %19 = memref.load %arg4[%c0_13, %c0_14] : memref<1x1xf32, #tpu.memory_space<smem>>
      memref.store %18, %arg4[%c0_13, %c0_14] : memref<1x1xf32, #tpu.memory_space<smem>>
    } else {
    }
    return
  }
  func.func @transform_0(%arg0: i32, %arg1: i32) -> (i32, i32) {
    %c1_i32 = arith.constant 1 : i32
    %0 = arith.muli %arg0, %c1_i32 : i32
    %1 = arith.addi %0, %arg1 : i32
    %c0_i32 = arith.constant 0 : i32
    %2 = arith.minsi %1, %c0_i32 : i32
    %c0_i32_0 = arith.constant 0 : i32
    %c0_i32_1 = arith.constant 0 : i32
    return %2, %c0_i32_0 : i32, i32
  }
  func.func @transform_1(%arg0: i32, %arg1: i32) -> (i32, i32) {
    %c1_i32 = arith.constant 1 : i32
    %0 = arith.muli %arg0, %c1_i32 : i32
    %1 = arith.addi %0, %arg1 : i32
    %c0_i32 = arith.constant 0 : i32
    %2 = arith.minsi %1, %c0_i32 : i32
    %c0_i32_0 = arith.constant 0 : i32
    %c0_i32_1 = arith.constant 0 : i32
    return %2, %c0_i32_0 : i32, i32
  }
  func.func @transform_2(%arg0: i32, %arg1: i32) -> (i32, i32) {
    %c0_i32 = arith.constant 0 : i32
    %c0_i32_0 = arith.constant 0 : i32
    return %arg0, %c0_i32 : i32, i32
  }
}

</mosaic_0001>

<bundles_post_ra>
// kernel: tpu_custom_call.1
= control target key start
LH: loop header
LB: loop body
LE: loop exit
PB: predicated region body
PF: predicated region fallthrough
CT: control target
= control target key end

     0   :  { %7 = vsyncpa [#allocation4], 0  ;;  %s5325_s0 = inlined_call_operand.hbm [shape: f32[4096,128], index: 0, kind: input, shape index: {}]   ;;  %s5326_s1 = inlined_call_operand.hbm [shape: f32[4096,128], index: 1, kind: input, shape index: {}]   ;;  %s5327_s2 = inlined_call_operand.hbm [shape: f32[1,1], index: 2, kind: output, shape index: {}]  }
   0x1   :  { %8 = vsyncpa [#allocation7], 0 }
   0x2   :  { %9 = vsyncpa [#allocation5], 0  ;;  %s20_s11 = sshll.u32 %s5325_s0, 4  ;;  %s5296_s12 = smov [#allocation3]   ;;  %s21_s11 = int_to_ptr.hbm [resolvable:$true] %s20_s11 }
   0x3   :  { %s22_s13 = sshll.u32 %s5296_s12, 4  ;;  %s39_s16 = sshll.u32 %s5326_s1, 4  ;;  %s23_s13 = int_to_ptr.vmem [resolvable:$true] %s22_s13  ;;  %s40_s16 = int_to_ptr.hbm [resolvable:$true] %s39_s16 }
   0x4   :  { %s5297_s17 = smov 128   ;;  %s5298_s18 = smov 8  }
   0x5   :  { %28 = dma.hbm_to_vmem [thread:$0]  %s21_s11, 65536, %s23_s13, [#allocation4], %s5297_s17, %s5297_s17, %s5298_s18  }
   0x6   :  { %s5299_s19 = smov [#allocation6]  }
   0x7   :  { %s41_s20 = sshll.u32 %s5299_s19, 4  ;;  %s42_s20 = int_to_ptr.vmem [resolvable:$true] %s41_s20 }
   0x8   :  { %47 = dma.hbm_to_vmem [thread:$0]  %s40_s16, 65536, %s42_s20, [#allocation7], %s5297_s17, %s5297_s17, %s5298_s18  }
   0x9   :  { %5290 = dma.done.wait [#allocation4], 65536  }
   0xa   :  { %5291 = vsyncadd [#allocation4], 4294901760 }
   0xb   :  { %5292 = dma.done.wait [#allocation7], 65536  }
   0xc   :  { %5293 = vsyncadd [#allocation7], 4294901760  ;;  %v580_v0 = vld [vmem:[#allocation3] sm:$0xff]  ;;  %v581_v1 = vld [vmem:[#allocation3 + $0x8] sm:$0xff]  ;;  %s5207_s21 = sshll.u32 %s5327_s2, 4  ;;  %s5300_s24 = smov [#allocation8]   ;;  %s5208_s21 = int_to_ptr.hbm [resolvable:$true] %s5207_s21 }
   0xd   :  { %v1092_v2 = vld [vmem:[#allocation6] sm:$0xff]  ;;  %v1093_v3 = vld [vmem:[#allocation6 + $0x8] sm:$0xff]  ;;  %v582_v6 = vld [vmem:[#allocation3 + $0x10] sm:$0xff] }
   0xe   :  { %v1604_v4 = vsub.f32 %v580_v0, %v1092_v2  ;;  %v1605_v5 = vsub.f32 %v581_v1, %v1093_v3  ;;  %v1094_v7 = vld [vmem:[#allocation6 + $0x10] sm:$0xff]  ;;  %v583_v11 = vld [vmem:[#allocation3 + $0x18] sm:$0xff]  ;;  %v584_v16 = vld [vmem:[#allocation3 + $0x20] sm:$0xff] }
   0xf   :  { %v1606_v8 = vsub.f32 %v582_v6, %v1094_v7  ;;  %v1095_v12 = vld [vmem:[#allocation6 + $0x18] sm:$0xff]  ;;  %v1096_v17 = vld [vmem:[#allocation6 + $0x20] sm:$0xff]  ;;  %v585_v21 = vld [vmem:[#allocation3 + $0x28] sm:$0xff] }
  0x10   :  { %v2116_v9 = vmul.f32 %v1604_v4, %v1604_v4  ;;  %v2117_v10 = vmul.f32 %v1605_v5, %v1605_v5  ;;  %v1607_v13 = vsub.f32 %v583_v11, %v1095_v12  ;;  %v1608_v18 = vsub.f32 %v584_v16, %v1096_v17  ;;  %v1097_v22 = vld [vmem:[#allocation6 + $0x28] sm:$0xff]  ;;  %v586_v26 = vld [vmem:[#allocation3 + $0x30] sm:$0xff]  ;;  %v587_v31 = vld [vmem:[#allocation3 + $0x38] sm:$0xff] }
  0x11   :  { %v2118_v14 = vmul.f32 %v1606_v8, %v1606_v8  ;;  %v1609_v23 = vsub.f32 %v585_v21, %v1097_v22  ;;  %v1098_v27 = vld [vmem:[#allocation6 + $0x30] sm:$0xff]  ;;  %v1099_v32 = vld [vmem:[#allocation6 + $0x38] sm:$0xff]  ;;  %v588_v36 = vld [vmem:[#allocation3 + $0x40] sm:$0xff] }
  0x12   :  { %v4679_v15 = vadd.f32 %v2117_v10, %v2116_v9  ;;  %v2119_v19 = vmul.f32 %v1607_v13, %v1607_v13  ;;  %v2120_v24 = vmul.f32 %v1608_v18, %v1608_v18  ;;  %v1610_v28 = vsub.f32 %v586_v26, %v1098_v27  ;;  %v1100_v37 = vld [vmem:[#allocation6 + $0x40] sm:$0xff]  ;;  %v589_v41 = vld [vmem:[#allocation3 + $0x48] sm:$0xff]  ;;  %v590_v46 = vld [vmem:[#allocation3 + $0x50] sm:$0xff] }
  0x13   :  { %v2121_v29 = vmul.f32 %v1609_v23, %v1609_v23  ;;  %v1611_v33 = vsub.f32 %v587_v31, %v1099_v32  ;;  %v1612_v38 = vsub.f32 %v588_v36, %v1100_v37  ;;  %v1101_v42 = vld [vmem:[#allocation6 + $0x48] sm:$0xff]  ;;  %v1102_v47 = vld [vmem:[#allocation6 + $0x50] sm:$0xff]  ;;  %v591_v51 = vld [vmem:[#allocation3 + $0x58] sm:$0xff] }
  0x14   :  { %v4680_v20 = vadd.f32 %v4679_v15, %v2118_v14  ;;  %v2122_v34 = vmul.f32 %v1610_v28, %v1610_v28  ;;  %v1613_v43 = vsub.f32 %v589_v41, %v1101_v42  ;;  %v1614_v48 = vsub.f32 %v590_v46, %v1102_v47  ;;  %v1103_v52 = vld [vmem:[#allocation6 + $0x58] sm:$0xff]  ;;  %v592_v56 = vld [vmem:[#allocation3 + $0x60] sm:$0xff]  ;;  %v593_v61 = vld [vmem:[#allocation3 + $0x68] sm:$0xff] }
  0x15   :  { %v2123_v39 = vmul.f32 %v1611_v33, %v1611_v33  ;;  %v2124_v44 = vmul.f32 %v1612_v38, %v1612_v38  ;;  %v1615_v53 = vsub.f32 %v591_v51, %v1103_v52  ;;  %v1104_v57 = vld [vmem:[#allocation6 + $0x60] sm:$0xff]  ;;  %v1105_v62 = vld [vmem:[#allocation6 + $0x68] sm:$0xff]  ;;  %v594_v2 = vld [vmem:[#allocation3 + $0x70] sm:$0xff] }
  0x16   :  { %v4681_v25 = vadd.f32 %v4680_v20, %v2119_v19  ;;  %v2125_v49 = vmul.f32 %v1613_v43, %v1613_v43  ;;  %v2126_v54 = vmul.f32 %v1614_v48, %v1614_v48  ;;  %v1616_v58 = vsub.f32 %v592_v56, %v1104_v57  ;;  %v1106_v3 = vld [vmem:[#allocation6 + $0x70] sm:$0xff]  ;;  %v595_v7 = vld [vmem:[#allocation3 + $0x78] sm:$0xff]  ;;  %v596_v12 = vld [vmem:[#allocation3 + $0x80] sm:$0xff] }
  0x17   :  { %v2127_v59 = vmul.f32 %v1615_v53, %v1615_v53  ;;  %v1617_v63 = vsub.f32 %v593_v61, %v1105_v62  ;;  %v1618_v4 = vsub.f32 %v594_v2, %v1106_v3  ;;  %v1107_v8 = vld [vmem:[#allocation6 + $0x78] sm:$0xff]  ;;  %v1108_v13 = vld [vmem:[#allocation6 + $0x80] sm:$0xff]  ;;  %v597_v17 = vld [vmem:[#allocation3 + $0x88] sm:$0xff] }
  0x18   :  { %v4682_v30 = vadd.f32 %v4681_v25, %v2120_v24  ;;  %v2128_v0 = vmul.f32 %v1616_v58, %v1616_v58  ;;  %v1619_v9 = vsub.f32 %v595_v7, %v1107_v8  ;;  %v1620_v14 = vsub.f32 %v596_v12, %v1108_v13  ;;  %v1109_v18 = vld [vmem:[#allocation6 + $0x88] sm:$0xff]  ;;  %v598_v22 = vld [vmem:[#allocation3 + $0x90] sm:$0xff]  ;;  %v599_v27 = vld [vmem:[#allocation3 + $0x98] sm:$0xff] }
  0x19   :  { %v2129_v5 = vmul.f32 %v1617_v63, %v1617_v63  ;;  %v2130_v10 = vmul.f32 %v1618_v4, %v1618_v4  ;;  %v1621_v19 = vsub.f32 %v597_v17, %v1109_v18  ;;  %v1110_v23 = vld [vmem:[#allocation6 + $0x90] sm:$0xff]  ;;  %v1111_v28 = vld [vmem:[#allocation6 + $0x98] sm:$0xff]  ;;  %v600_v32 = vld [vmem:[#allocation3 + $0xa0] sm:$0xff] }
  0x1a   :  { %v4683_v35 = vadd.f32 %v4682_v30, %v2121_v29  ;;  %v2131_v15 = vmul.f32 %v1619_v9, %v1619_v9  ;;  %v2132_v20 = vmul.f32 %v1620_v14, %v1620_v14  ;;  %v1622_v24 = vsub.f32 %v598_v22, %v1110_v23  ;;  %v1112_v33 = vld [vmem:[#allocation6 + $0xa0] sm:$0xff]  ;;  %v601_v37 = vld [vmem:[#allocation3 + $0xa8] sm:$0xff]  ;;  %v602_v42 = vld [vmem:[#allocation3 + $0xb0] sm:$0xff] }
  0x1b   :  { %v2133_v25 = vmul.f32 %v1621_v19, %v1621_v19  ;;  %v1623_v29 = vsub.f32 %v599_v27, %v1111_v28  ;;  %v1113_v38 = vld [vmem:[#allocation6 + $0xa8] sm:$0xff]  ;;  %v1114_v43 = vld [vmem:[#allocation6 + $0xb0] sm:$0xff]  ;;  %v603_v47 = vld [vmem:[#allocation3 + $0xb8] sm:$0xff] }
  0x1c   :  { %v4684_v40 = vadd.f32 %v4683_v35, %v2122_v34  ;;  %v2134_v30 = vmul.f32 %v1622_v24, %v1622_v24  ;;  %v1624_v34 = vsub.f32 %v600_v32, %v1112_v33  ;;  %v1115_v48 = vld [vmem:[#allocation6 + $0xb8] sm:$0xff]  ;;  %v604_v52 = vld [vmem:[#allocation3 + $0xc0] sm:$0xff]  ;;  %v605_v57 = vld [vmem:[#allocation3 + $0xc8] sm:$0xff] }
  0x1d   :  { %v2135_v35 = vmul.f32 %v1623_v29, %v1623_v29  ;;  %v1116_v53 = vld [vmem:[#allocation6 + $0xc0] sm:$0xff]  ;;  %v1117_v58 = vld [vmem:[#allocation6 + $0xc8] sm:$0xff]  ;;  %v606_v62 = vld [vmem:[#allocation3 + $0xd0] sm:$0xff] }
  0x1e   :  { %v4685_v45 = vadd.f32 %v4684_v40, %v2123_v39  ;;  %v1625_v39 = vsub.f32 %v601_v37, %v1113_v38  ;;  %v2136_v40 = vmul.f32 %v1624_v34, %v1624_v34  ;;  %v1118_v63 = vld [vmem:[#allocation6 + $0xd0] sm:$0xff]  ;;  %v607_v3 = vld [vmem:[#allocation3 + $0xd8] sm:$0xff]  ;;  %v608_v8 = vld [vmem:[#allocation3 + $0xe0] sm:$0xff] }
  0x1f   :  { %v1119_v4 = vld [vmem:[#allocation6 + $0xd8] sm:$0xff]  ;;  %v1120_v9 = vld [vmem:[#allocation6 + $0xe0] sm:$0xff]  ;;  %v609_v13 = vld [vmem:[#allocation3 + $0xe8] sm:$0xff] }
  0x20   :  { %v4686_v50 = vadd.f32 %v4685_v45, %v2124_v44  ;;  %v1626_v44 = vsub.f32 %v602_v42, %v1114_v43  ;;  %v2137_v45 = vmul.f32 %v1625_v39, %v1625_v39  ;;  %v1121_v14 = vld [vmem:[#allocation6 + $0xe8] sm:$0xff]  ;;  %v610_v18 = vld [vmem:[#allocation3 + $0xf0] sm:$0xff]  ;;  %v611_v23 = vld [vmem:[#allocation3 + $0xf8] sm:$0xff] }
  0x21   :  { %v1122_v19 = vld [vmem:[#allocation6 + $0xf0] sm:$0xff]  ;;  %v1123_v24 = vld [vmem:[#allocation6 + $0xf8] sm:$0xff]  ;;  %v612_v28 = vld [vmem:[#allocation3 + $0x100] sm:$0xff] }
  0x22   :  { %v4687_v55 = vadd.f32 %v4686_v50, %v2125_v49  ;;  %v1627_v49 = vsub.f32 %v603_v47, %v1115_v48  ;;  %v2138_v50 = vmul.f32 %v1626_v44, %v1626_v44  ;;  %v1124_v29 = vld [vmem:[#allocation6 + $0x100] sm:$0xff]  ;;  %v613_v33 = vld [vmem:[#allocation3 + $0x108] sm:$0xff]  ;;  %v614_v38 = vld [vmem:[#allocation3 + $0x110] sm:$0xff] }
  0x23   :  { %v1125_v34 = vld [vmem:[#allocation6 + $0x108] sm:$0xff]  ;;  %v1126_v39 = vld [vmem:[#allocation6 + $0x110] sm:$0xff]  ;;  %v615_v43 = vld [vmem:[#allocation3 + $0x118] sm:$0xff] }
  0x24   :  { %v4688_v60 = vadd.f32 %v4687_v55, %v2126_v54  ;;  %v1628_v54 = vsub.f32 %v604_v52, %v1116_v53  ;;  %v2139_v55 = vmul.f32 %v1627_v49, %v1627_v49  ;;  %v1127_v44 = vld [vmem:[#allocation6 + $0x118] sm:$0xff]  ;;  %v616_v48 = vld [vmem:[#allocation3 + $0x120] sm:$0xff]  ;;  %v617_v53 = vld [vmem:[#allocation3 + $0x128] sm:$0xff] }
  0x25   :  { %v1128_v49 = vld [vmem:[#allocation6 + $0x120] sm:$0xff] }
  0x26   :  { %v4689_v1 = vadd.f32 %v4688_v60, %v2127_v59  ;;  %v1629_v59 = vsub.f32 %v605_v57, %v1117_v58  ;;  %v2140_v60 = vmul.f32 %v1628_v54, %v1628_v54  ;;  %v1129_v54 = vld [vmem:[#allocation6 + $0x128] sm:$0xff]  ;;  %v618_v58 = vld [vmem:[#allocation3 + $0x130] sm:$0xff] }
  0x28   :  { %v4690_v6 = vadd.f32 %v4689_v1, %v2128_v0  ;;  %v1630_v0 = vsub.f32 %v606_v62, %v1118_v63  ;;  %v2141_v1 = vmul.f32 %v1629_v59, %v1629_v59  ;;  %v1130_v59 = vld [vmem:[#allocation6 + $0x130] sm:$0xff]  ;;  %v619_v63 = vld [vmem:[#allocation3 + $0x138] sm:$0xff] }
  0x2a   :  { %v4691_v11 = vadd.f32 %v4690_v6, %v2129_v5  ;;  %v1631_v5 = vsub.f32 %v607_v3, %v1119_v4  ;;  %v2142_v6 = vmul.f32 %v1630_v0, %v1630_v0  ;;  %v1131_v0 = vld [vmem:[#allocation6 + $0x138] sm:$0xff]  ;;  %v620_v4 = vld [vmem:[#allocation3 + $0x140] sm:$0xff] }
  0x2c   :  { %v4692_v16 = vadd.f32 %v4691_v11, %v2130_v10  ;;  %v1632_v10 = vsub.f32 %v608_v8, %v1120_v9  ;;  %v2143_v11 = vmul.f32 %v1631_v5, %v1631_v5  ;;  %v1132_v5 = vld [vmem:[#allocation6 + $0x140] sm:$0xff]  ;;  %v621_v9 = vld [vmem:[#allocation3 + $0x148] sm:$0xff] }
  0x2e   :  { %v4693_v21 = vadd.f32 %v4692_v16, %v2131_v15  ;;  %v1633_v15 = vsub.f32 %v609_v13, %v1121_v14  ;;  %v2144_v16 = vmul.f32 %v1632_v10, %v1632_v10  ;;  %v1133_v10 = vld [vmem:[#allocation6 + $0x148] sm:$0xff]  ;;  %v622_v14 = vld [vmem:[#allocation3 + $0x150] sm:$0xff] }
  0x30   :  { %v4694_v26 = vadd.f32 %v4693_v21, %v2132_v20  ;;  %v1634_v20 = vsub.f32 %v610_v18, %v1122_v19  ;;  %v2145_v21 = vmul.f32 %v1633_v15, %v1633_v15  ;;  %v1134_v15 = vld [vmem:[#allocation6 + $0x150] sm:$0xff]  ;;  %v623_v19 = vld [vmem:[#allocation3 + $0x158] sm:$0xff] }
  0x32   :  { %v4695_v31 = vadd.f32 %v4694_v26, %v2133_v25  ;;  %v1635_v25 = vsub.f32 %v611_v23, %v1123_v24  ;;  %v2146_v26 = vmul.f32 %v1634_v20, %v1634_v20  ;;  %v1135_v20 = vld [vmem:[#allocation6 + $0x158] sm:$0xff]  ;;  %v624_v24 = vld [vmem:[#allocation3 + $0x160] sm:$0xff] }
  0x34   :  { %v4696_v36 = vadd.f32 %v4695_v31, %v2134_v30  ;;  %v1636_v30 = vsub.f32 %v612_v28, %v1124_v29  ;;  %v2147_v31 = vmul.f32 %v1635_v25, %v1635_v25  ;;  %v1136_v25 = vld [vmem:[#allocation6 + $0x160] sm:$0xff]  ;;  %v625_v29 = vld [vmem:[#allocation3 + $0x168] sm:$0xff] }
  0x36   :  { %v4697_v41 = vadd.f32 %v4696_v36, %v2135_v35  ;;  %v1637_v35 = vsub.f32 %v613_v33, %v1125_v34  ;;  %v2148_v36 = vmul.f32 %v1636_v30, %v1636_v30  ;;  %v1137_v30 = vld [vmem:[#allocation6 + $0x168] sm:$0xff]  ;;  %v626_v34 = vld [vmem:[#allocation3 + $0x170] sm:$0xff] }
  0x38   :  { %v4698_v46 = vadd.f32 %v4697_v41, %v2136_v40  ;;  %v1638_v40 = vsub.f32 %v614_v38, %v1126_v39  ;;  %v2149_v41 = vmul.f32 %v1637_v35, %v1637_v35  ;;  %v1138_v35 = vld [vmem:[#allocation6 + $0x170] sm:$0xff]  ;;  %v627_v39 = vld [vmem:[#allocation3 + $0x178] sm:$0xff] }
  0x3a   :  { %v4699_v51 = vadd.f32 %v4698_v46, %v2137_v45  ;;  %v1639_v45 = vsub.f32 %v615_v43, %v1127_v44  ;;  %v2150_v46 = vmul.f32 %v1638_v40, %v1638_v40  ;;  %v1139_v40 = vld [vmem:[#allocation6 + $0x178] sm:$0xff] }
  0x3b   :  { %v1651_v43 = vsub.f32 %v627_v39, %v1139_v40  ;;  %v641_v39 = vld [vmem:[#allocation3 + $0x1e8] sm:$0xff] }
  0x3c   :  { %v4700_v56 = vadd.f32 %v4699_v51, %v2138_v50  ;;  %v1640_v50 = vsub.f32 %v616_v48, %v1128_v49  ;;  %v2151_v51 = vmul.f32 %v1639_v45, %v1639_v45  ;;  %v630_v49 = vld [vmem:[#allocation3 + $0x190] sm:$0xff]  ;;  %v1153_v40 = vld [vmem:[#allocation6 + $0x1e8] sm:$0xff] }
  0x3e   :  { %v4701_v61 = vadd.f32 %v4700_v56, %v2139_v55  ;;  %v1641_v55 = vsub.f32 %v617_v53, %v1129_v54  ;;  %v2152_v56 = vmul.f32 %v1640_v50, %v1640_v50  ;;  %v1142_v50 = vld [vmem:[#allocation6 + $0x190] sm:$0xff]  ;;  %v631_v54 = vld [vmem:[#allocation3 + $0x198] sm:$0xff] }
  0x40   :  { %v4702_v2 = vadd.f32 %v4701_v61, %v2140_v60  ;;  %v1642_v60 = vsub.f32 %v618_v58, %v1130_v59  ;;  %v2153_v61 = vmul.f32 %v1641_v55, %v1641_v55  ;;  %v1143_v55 = vld [vmem:[#allocation6 + $0x198] sm:$0xff]  ;;  %v632_v58 = vld [vmem:[#allocation3 + $0x1a0] sm:$0xff] }
  0x41   :  { %v1144_v59 = vld [vmem:[#allocation6 + $0x1a0] sm:$0xff] }
  0x42   :  { %v4703_v7 = vadd.f32 %v4702_v2, %v2141_v1  ;;  %v1643_v1 = vsub.f32 %v619_v63, %v1131_v0  ;;  %v2154_v2 = vmul.f32 %v1642_v60, %v1642_v60  ;;  %v1655_v60 = vsub.f32 %v631_v54, %v1143_v55  ;;  %v633_v63 = vld [vmem:[#allocation3 + $0x1a8] sm:$0xff]  ;;  %v644_v54 = vld [vmem:[#allocation3 + $0x200] sm:$0xff] }
  0x43   :  { %v1145_v0 = vld [vmem:[#allocation6 + $0x1a8] sm:$0xff]  ;;  %v1156_v55 = vld [vmem:[#allocation6 + $0x200] sm:$0xff] }
  0x44   :  { %v4704_v12 = vadd.f32 %v4703_v7, %v2142_v6  ;;  %v1644_v6 = vsub.f32 %v620_v4, %v1132_v5  ;;  %v2155_v7 = vmul.f32 %v1643_v1, %v1643_v1  ;;  %v1656_v1 = vsub.f32 %v632_v58, %v1144_v59  ;;  %v634_v4 = vld [vmem:[#allocation3 + $0x1b0] sm:$0xff]  ;;  %v645_v59 = vld [vmem:[#allocation3 + $0x208] sm:$0xff] }
  0x45   :  { %v1146_v5 = vld [vmem:[#allocation6 + $0x1b0] sm:$0xff] }
  0x46   :  { %v4705_v17 = vadd.f32 %v4704_v12, %v2143_v11  ;;  %v1645_v11 = vsub.f32 %v621_v9, %v1133_v10  ;;  %v2156_v12 = vmul.f32 %v1644_v6, %v1644_v6  ;;  %v1657_v6 = vsub.f32 %v633_v63, %v1145_v0  ;;  %v635_v9 = vld [vmem:[#allocation3 + $0x1b8] sm:$0xff]  ;;  %v646_v0 = vld [vmem:[#allocation3 + $0x210] sm:$0xff] }
  0x47   :  { %v1147_v10 = vld [vmem:[#allocation6 + $0x1b8] sm:$0xff] }
  0x48   :  { %v4706_v22 = vadd.f32 %v4705_v17, %v2144_v16  ;;  %v1646_v16 = vsub.f32 %v622_v14, %v1134_v15  ;;  %v2157_v17 = vmul.f32 %v1645_v11, %v1645_v11  ;;  %v1658_v11 = vsub.f32 %v634_v4, %v1146_v5  ;;  %v636_v14 = vld [vmem:[#allocation3 + $0x1c0] sm:$0xff]  ;;  %v647_v5 = vld [vmem:[#allocation3 + $0x218] sm:$0xff] }
  0x49   :  { %v1148_v15 = vld [vmem:[#allocation6 + $0x1c0] sm:$0xff] }
  0x4a   :  { %v4707_v27 = vadd.f32 %v4706_v22, %v2145_v21  ;;  %v1647_v21 = vsub.f32 %v623_v19, %v1135_v20  ;;  %v2158_v22 = vmul.f32 %v1646_v16, %v1646_v16  ;;  %v1659_v16 = vsub.f32 %v635_v9, %v1147_v10  ;;  %v637_v19 = vld [vmem:[#allocation3 + $0x1c8] sm:$0xff]  ;;  %v648_v10 = vld [vmem:[#allocation3 + $0x220] sm:$0xff] }
  0x4b   :  { %v1149_v20 = vld [vmem:[#allocation6 + $0x1c8] sm:$0xff] }
  0x4c   :  { %v4708_v32 = vadd.f32 %v4707_v27, %v2146_v26  ;;  %v1648_v26 = vsub.f32 %v624_v24, %v1136_v25  ;;  %v2159_v27 = vmul.f32 %v1647_v21, %v1647_v21  ;;  %v1660_v21 = vsub.f32 %v636_v14, %v1148_v15  ;;  %v638_v24 = vld [vmem:[#allocation3 + $0x1d0] sm:$0xff]  ;;  %v649_v15 = vld [vmem:[#allocation3 + $0x228] sm:$0xff] }
  0x4d   :  { %v1150_v25 = vld [vmem:[#allocation6 + $0x1d0] sm:$0xff] }
  0x4e   :  { %v4709_v37 = vadd.f32 %v4708_v32, %v2147_v31  ;;  %v1649_v31 = vsub.f32 %v625_v29, %v1137_v30  ;;  %v2160_v32 = vmul.f32 %v1648_v26, %v1648_v26  ;;  %v1661_v26 = vsub.f32 %v637_v19, %v1149_v20  ;;  %v639_v29 = vld [vmem:[#allocation3 + $0x1d8] sm:$0xff]  ;;  %v650_v20 = vld [vmem:[#allocation3 + $0x230] sm:$0xff] }
  0x4f   :  { %v1151_v30 = vld [vmem:[#allocation6 + $0x1d8] sm:$0xff] }
  0x50   :  { %v4710_v42 = vadd.f32 %v4709_v37, %v2148_v36  ;;  %v1650_v36 = vsub.f32 %v626_v34, %v1138_v35  ;;  %v2161_v37 = vmul.f32 %v1649_v31, %v1649_v31  ;;  %v1662_v31 = vsub.f32 %v638_v24, %v1150_v25  ;;  %v640_v34 = vld [vmem:[#allocation3 + $0x1e0] sm:$0xff]  ;;  %v651_v25 = vld [vmem:[#allocation3 + $0x238] sm:$0xff] }
  0x51   :  { %v1152_v35 = vld [vmem:[#allocation6 + $0x1e0] sm:$0xff] }
  0x52   :  { %v4711_v47 = vadd.f32 %v4710_v42, %v2149_v41  ;;  %v628_v41 = vld [vmem:[#allocation3 + $0x180] sm:$0xff]  ;;  %v2162_v44 = vmul.f32 %v1650_v36, %v1650_v36  ;;  %v1663_v36 = vsub.f32 %v639_v29, %v1151_v30 }
  0x53   :  { %v1140_v42 = vld [vmem:[#allocation6 + $0x180] sm:$0xff] }
  0x54   :  { %v4712_v52 = vadd.f32 %v4711_v47, %v2150_v46  ;;  %v629_v46 = vld [vmem:[#allocation3 + $0x188] sm:$0xff]  ;;  %v1652_v48 = vsub.f32 %v628_v41, %v1140_v42  ;;  %v1664_v41 = vsub.f32 %v640_v34, %v1152_v35  ;;  %v2174_v42 = vmul.f32 %v1662_v31, %v1662_v31  ;;  %v652_v30 = vld [vmem:[#allocation3 + $0x240] sm:$0xff] }
  0x55   :  { %v1141_v47 = vld [vmem:[#allocation6 + $0x188] sm:$0xff]  ;;  %v1164_v31 = vld [vmem:[#allocation6 + $0x240] sm:$0xff] }
  0x56   :  { %v4713_v57 = vadd.f32 %v4712_v52, %v2151_v51  ;;  %v1653_v51 = vsub.f32 %v629_v46, %v1141_v47  ;;  %v2163_v52 = vmul.f32 %v1651_v43, %v1651_v43  ;;  %v1665_v46 = vsub.f32 %v641_v39, %v1153_v40  ;;  %v653_v35 = vld [vmem:[#allocation3 + $0x248] sm:$0xff]  ;;  %v654_v40 = vld [vmem:[#allocation3 + $0x250] sm:$0xff] }
  0x57   :  { %v2175_v47 = vmul.f32 %v1663_v36, %v1663_v36  ;;  %v1165_v36 = vld [vmem:[#allocation6 + $0x248] sm:$0xff] }
  0x58   :  { %v4714_v62 = vadd.f32 %v4713_v57, %v2152_v56  ;;  %v1654_v56 = vsub.f32 %v630_v49, %v1142_v50  ;;  %v2164_v57 = vmul.f32 %v1652_v48, %v1652_v48  ;;  %v643_v49 = vld [vmem:[#allocation3 + $0x1f8] sm:$0xff] }
  0x59   :  { %v1155_v50 = vld [vmem:[#allocation6 + $0x1f8] sm:$0xff] }
  0x5a   :  { %v4715_v3 = vadd.f32 %v4714_v62, %v2153_v61  ;;  %v2165_v61 = vmul.f32 %v1653_v51, %v1653_v51 }
  0x5c   :  { %v4716_v8 = vadd.f32 %v4715_v3, %v2154_v2  ;;  %v2166_v2 = vmul.f32 %v1654_v56, %v1654_v56  ;;  %v1667_v56 = vsub.f32 %v643_v49, %v1155_v50  ;;  %v656_v50 = vld [vmem:[#allocation3 + $0x260] sm:$0xff] }
  0x5e   :  { %v4717_v13 = vadd.f32 %v4716_v8, %v2155_v7  ;;  %v2167_v7 = vmul.f32 %v1655_v60, %v1655_v60  ;;  %v1157_v60 = vld [vmem:[#allocation6 + $0x208] sm:$0xff] }
  0x60   :  { %v4718_v18 = vadd.f32 %v4717_v13, %v2156_v12  ;;  %v2168_v12 = vmul.f32 %v1656_v1, %v1656_v1  ;;  %v1158_v1 = vld [vmem:[#allocation6 + $0x210] sm:$0xff] }
  0x62   :  { %v4719_v23 = vadd.f32 %v4718_v18, %v2157_v17  ;;  %v2169_v17 = vmul.f32 %v1657_v6, %v1657_v6  ;;  %v1159_v6 = vld [vmem:[#allocation6 + $0x218] sm:$0xff] }
  0x64   :  { %v4720_v28 = vadd.f32 %v4719_v23, %v2158_v22  ;;  %v2170_v22 = vmul.f32 %v1658_v11, %v1658_v11  ;;  %v1160_v11 = vld [vmem:[#allocation6 + $0x220] sm:$0xff] }
  0x66   :  { %v4721_v33 = vadd.f32 %v4720_v28, %v2159_v27  ;;  %v2171_v27 = vmul.f32 %v1659_v16, %v1659_v16  ;;  %v1161_v16 = vld [vmem:[#allocation6 + $0x228] sm:$0xff] }
  0x68   :  { %v4722_v38 = vadd.f32 %v4721_v33, %v2160_v32  ;;  %v2172_v32 = vmul.f32 %v1660_v21, %v1660_v21  ;;  %v1162_v21 = vld [vmem:[#allocation6 + $0x230] sm:$0xff] }
  0x6a   :  { %v4723_v45 = vadd.f32 %v4722_v38, %v2161_v37  ;;  %v2173_v37 = vmul.f32 %v1661_v26, %v1661_v26  ;;  %v1163_v26 = vld [vmem:[#allocation6 + $0x238] sm:$0xff] }
  0x6c   :  { %v4724_v53 = vadd.f32 %v4723_v45, %v2162_v44  ;;  %v642_v44 = vld [vmem:[#allocation3 + $0x1f0] sm:$0xff] }
  0x6d   :  { %v1154_v45 = vld [vmem:[#allocation6 + $0x1f0] sm:$0xff] }
  0x6e   :  { %v4725_v62 = vadd.f32 %v4724_v53, %v2163_v52  ;;  %v1666_v51 = vsub.f32 %v642_v44, %v1154_v45  ;;  %v2176_v52 = vmul.f32 %v1664_v41, %v1664_v41  ;;  %v1166_v41 = vld [vmem:[#allocation6 + $0x250] sm:$0xff]  ;;  %v655_v45 = vld [vmem:[#allocation3 + $0x258] sm:$0xff] }
  0x70   :  { %v4726_v3 = vadd.f32 %v4725_v62, %v2164_v57  ;;  %v2177_v57 = vmul.f32 %v1665_v46, %v1665_v46  ;;  %v2178_v62 = vmul.f32 %v1666_v51, %v1666_v51  ;;  %v1167_v46 = vld [vmem:[#allocation6 + $0x258] sm:$0xff]  ;;  %v1168_v51 = vld [vmem:[#allocation6 + $0x260] sm:$0xff] }
  0x72   :  { %v4727_v8 = vadd.f32 %v4726_v3, %v2165_v61  ;;  %v1668_v61 = vsub.f32 %v644_v54, %v1156_v55  ;;  %v2179_v3 = vmul.f32 %v1667_v56, %v1667_v56  ;;  %v657_v55 = vld [vmem:[#allocation3 + $0x268] sm:$0xff] }
  0x73   :  { %v1169_v56 = vld [vmem:[#allocation6 + $0x268] sm:$0xff] }
  0x74   :  { %v4728_v13 = vadd.f32 %v4727_v8, %v2166_v2  ;;  %v1669_v2 = vsub.f32 %v645_v59, %v1157_v60  ;;  %v2180_v8 = vmul.f32 %v1668_v61, %v1668_v61  ;;  %v658_v60 = vld [vmem:[#allocation3 + $0x270] sm:$0xff] }
  0x75   :  { %v1170_v61 = vld [vmem:[#allocation6 + $0x270] sm:$0xff] }
  0x76   :  { %v4729_v18 = vadd.f32 %v4728_v13, %v2167_v7  ;;  %v1670_v7 = vsub.f32 %v646_v0, %v1158_v1  ;;  %v2181_v13 = vmul.f32 %v1669_v2, %v1669_v2  ;;  %v659_v1 = vld [vmem:[#allocation3 + $0x278] sm:$0xff] }
  0x77   :  { %v1171_v2 = vld [vmem:[#allocation6 + $0x278] sm:$0xff] }
  0x78   :  { %v4730_v23 = vadd.f32 %v4729_v18, %v2168_v12  ;;  %v1671_v12 = vsub.f32 %v647_v5, %v1159_v6  ;;  %v2182_v18 = vmul.f32 %v1670_v7, %v1670_v7  ;;  %v660_v6 = vld [vmem:[#allocation3 + $0x280] sm:$0xff] }
  0x79   :  { %v1172_v7 = vld [vmem:[#allocation6 + $0x280] sm:$0xff] }
  0x7a   :  { %v4731_v28 = vadd.f32 %v4730_v23, %v2169_v17  ;;  %v1672_v17 = vsub.f32 %v648_v10, %v1160_v11  ;;  %v2183_v23 = vmul.f32 %v1671_v12, %v1671_v12  ;;  %v661_v11 = vld [vmem:[#allocation3 + $0x288] sm:$0xff] }
  0x7b   :  { %v1173_v12 = vld [vmem:[#allocation6 + $0x288] sm:$0xff] }
  0x7c   :  { %v4732_v33 = vadd.f32 %v4731_v28, %v2170_v22  ;;  %v1673_v22 = vsub.f32 %v649_v15, %v1161_v16  ;;  %v2184_v28 = vmul.f32 %v1672_v17, %v1672_v17  ;;  %v662_v16 = vld [vmem:[#allocation3 + $0x290] sm:$0xff] }
  0x7d   :  { %v1174_v17 = vld [vmem:[#allocation6 + $0x290] sm:$0xff] }
  0x7e   :  { %v4733_v38 = vadd.f32 %v4732_v33, %v2171_v27  ;;  %v1674_v27 = vsub.f32 %v650_v20, %v1162_v21  ;;  %v2185_v33 = vmul.f32 %v1673_v22, %v1673_v22  ;;  %v663_v21 = vld [vmem:[#allocation3 + $0x298] sm:$0xff] }
  0x7f   :  { %v1175_v22 = vld [vmem:[#allocation6 + $0x298] sm:$0xff] }
  0x80   :  { %v4734_v43 = vadd.f32 %v4733_v38, %v2172_v32  ;;  %v1675_v32 = vsub.f32 %v651_v25, %v1163_v26  ;;  %v2186_v38 = vmul.f32 %v1674_v27, %v1674_v27  ;;  %v664_v26 = vld [vmem:[#allocation3 + $0x2a0] sm:$0xff] }
  0x81   :  { %v1176_v27 = vld [vmem:[#allocation6 + $0x2a0] sm:$0xff] }
  0x82   :  { %v4735_v48 = vadd.f32 %v4734_v43, %v2173_v37  ;;  %v1676_v37 = vsub.f32 %v652_v30, %v1164_v31  ;;  %v2187_v43 = vmul.f32 %v1675_v32, %v1675_v32  ;;  %v665_v31 = vld [vmem:[#allocation3 + $0x2a8] sm:$0xff] }
  0x83   :  { %v1177_v32 = vld [vmem:[#allocation6 + $0x2a8] sm:$0xff] }
  0x84   :  { %v4736_v53 = vadd.f32 %v4735_v48, %v2174_v42  ;;  %v1677_v42 = vsub.f32 %v653_v35, %v1165_v36  ;;  %v2188_v48 = vmul.f32 %v1676_v37, %v1676_v37  ;;  %v666_v36 = vld [vmem:[#allocation3 + $0x2b0] sm:$0xff] }
  0x85   :  { %v1178_v37 = vld [vmem:[#allocation6 + $0x2b0] sm:$0xff] }
  0x86   :  { %v4737_v58 = vadd.f32 %v4736_v53, %v2175_v47  ;;  %v1678_v47 = vsub.f32 %v654_v40, %v1166_v41  ;;  %v2189_v53 = vmul.f32 %v1677_v42, %v1677_v42  ;;  %v667_v41 = vld [vmem:[#allocation3 + $0x2b8] sm:$0xff] }
  0x87   :  { %v1179_v42 = vld [vmem:[#allocation6 + $0x2b8] sm:$0xff] }
  0x88   :  { %v4738_v63 = vadd.f32 %v4737_v58, %v2176_v52  ;;  %v1679_v52 = vsub.f32 %v655_v45, %v1167_v46  ;;  %v2190_v58 = vmul.f32 %v1678_v47, %v1678_v47  ;;  %v668_v46 = vld [vmem:[#allocation3 + $0x2c0] sm:$0xff] }
  0x89   :  { %v1180_v47 = vld [vmem:[#allocation6 + $0x2c0] sm:$0xff] }
  0x8a   :  { %v4739_v4 = vadd.f32 %v4738_v63, %v2177_v57  ;;  %v1680_v57 = vsub.f32 %v656_v50, %v1168_v51  ;;  %v2191_v63 = vmul.f32 %v1679_v52, %v1679_v52  ;;  %v669_v51 = vld [vmem:[#allocation3 + $0x2c8] sm:$0xff] }
  0x8b   :  { %v1181_v52 = vld [vmem:[#allocation6 + $0x2c8] sm:$0xff] }
  0x8c   :  { %v4740_v9 = vadd.f32 %v4739_v4, %v2178_v62  ;;  %v1681_v62 = vsub.f32 %v657_v55, %v1169_v56  ;;  %v2192_v4 = vmul.f32 %v1680_v57, %v1680_v57  ;;  %v670_v56 = vld [vmem:[#allocation3 + $0x2d0] sm:$0xff] }
  0x8d   :  { %v1182_v57 = vld [vmem:[#allocation6 + $0x2d0] sm:$0xff] }
  0x8e   :  { %v4741_v14 = vadd.f32 %v4740_v9, %v2179_v3  ;;  %v1682_v3 = vsub.f32 %v658_v60, %v1170_v61  ;;  %v2193_v9 = vmul.f32 %v1681_v62, %v1681_v62  ;;  %v671_v61 = vld [vmem:[#allocation3 + $0x2d8] sm:$0xff] }
  0x8f   :  { %v1183_v62 = vld [vmem:[#allocation6 + $0x2d8] sm:$0xff] }
  0x90   :  { %v4742_v19 = vadd.f32 %v4741_v14, %v2180_v8  ;;  %v1683_v8 = vsub.f32 %v659_v1, %v1171_v2  ;;  %v2194_v14 = vmul.f32 %v1682_v3, %v1682_v3  ;;  %v672_v2 = vld [vmem:[#allocation3 + $0x2e0] sm:$0xff] }
  0x91   :  { %v1184_v3 = vld [vmem:[#allocation6 + $0x2e0] sm:$0xff] }
  0x92   :  { %v4743_v24 = vadd.f32 %v4742_v19, %v2181_v13  ;;  %v1684_v13 = vsub.f32 %v660_v6, %v1172_v7  ;;  %v2195_v19 = vmul.f32 %v1683_v8, %v1683_v8  ;;  %v673_v7 = vld [vmem:[#allocation3 + $0x2e8] sm:$0xff] }
  0x93   :  { %v1185_v8 = vld [vmem:[#allocation6 + $0x2e8] sm:$0xff] }
  0x94   :  { %v4744_v29 = vadd.f32 %v4743_v24, %v2182_v18  ;;  %v1685_v18 = vsub.f32 %v661_v11, %v1173_v12  ;;  %v2196_v24 = vmul.f32 %v1684_v13, %v1684_v13  ;;  %v674_v12 = vld [vmem:[#allocation3 + $0x2f0] sm:$0xff] }
  0x95   :  { %v1186_v13 = vld [vmem:[#allocation6 + $0x2f0] sm:$0xff] }
  0x96   :  { %v4745_v34 = vadd.f32 %v4744_v29, %v2183_v23  ;;  %v1686_v23 = vsub.f32 %v662_v16, %v1174_v17  ;;  %v2197_v29 = vmul.f32 %v1685_v18, %v1685_v18  ;;  %v675_v17 = vld [vmem:[#allocation3 + $0x2f8] sm:$0xff] }
  0x97   :  { %v1187_v18 = vld [vmem:[#allocation6 + $0x2f8] sm:$0xff] }
  0x98   :  { %v4746_v39 = vadd.f32 %v4745_v34, %v2184_v28  ;;  %v1687_v28 = vsub.f32 %v663_v21, %v1175_v22  ;;  %v2198_v34 = vmul.f32 %v1686_v23, %v1686_v23  ;;  %v676_v22 = vld [vmem:[#allocation3 + $0x300] sm:$0xff] }
  0x99   :  { %v1188_v23 = vld [vmem:[#allocation6 + $0x300] sm:$0xff] }
  0x9a   :  { %v4747_v44 = vadd.f32 %v4746_v39, %v2185_v33  ;;  %v1688_v33 = vsub.f32 %v664_v26, %v1176_v27  ;;  %v2199_v39 = vmul.f32 %v1687_v28, %v1687_v28  ;;  %v677_v27 = vld [vmem:[#allocation3 + $0x308] sm:$0xff] }
  0x9b   :  { %v1189_v28 = vld [vmem:[#allocation6 + $0x308] sm:$0xff] }
  0x9c   :  { %v4748_v49 = vadd.f32 %v4747_v44, %v2186_v38  ;;  %v1689_v38 = vsub.f32 %v665_v31, %v1177_v32  ;;  %v2200_v44 = vmul.f32 %v1688_v33, %v1688_v33  ;;  %v678_v32 = vld [vmem:[#allocation3 + $0x310] sm:$0xff] }
  0x9d   :  { %v1190_v33 = vld [vmem:[#allocation6 + $0x310] sm:$0xff] }
  0x9e   :  { %v4749_v54 = vadd.f32 %v4748_v49, %v2187_v43  ;;  %v1690_v43 = vsub.f32 %v666_v36, %v1178_v37  ;;  %v2201_v49 = vmul.f32 %v1689_v38, %v1689_v38  ;;  %v679_v37 = vld [vmem:[#allocation3 + $0x318] sm:$0xff] }
  0x9f   :  { %v1191_v38 = vld [vmem:[#allocation6 + $0x318] sm:$0xff] }
  0xa0   :  { %v4750_v59 = vadd.f32 %v4749_v54, %v2188_v48  ;;  %v1691_v48 = vsub.f32 %v667_v41, %v1179_v42  ;;  %v2202_v54 = vmul.f32 %v1690_v43, %v1690_v43  ;;  %v680_v42 = vld [vmem:[#allocation3 + $0x320] sm:$0xff] }
  0xa1   :  { %v1192_v43 = vld [vmem:[#allocation6 + $0x320] sm:$0xff] }
  0xa2   :  { %v4751_v0 = vadd.f32 %v4750_v59, %v2189_v53  ;;  %v1692_v53 = vsub.f32 %v668_v46, %v1180_v47  ;;  %v2203_v59 = vmul.f32 %v1691_v48, %v1691_v48  ;;  %v681_v47 = vld [vmem:[#allocation3 + $0x328] sm:$0xff] }
  0xa3   :  { %v1193_v48 = vld [vmem:[#allocation6 + $0x328] sm:$0xff] }
  0xa4   :  { %v4752_v5 = vadd.f32 %v4751_v0, %v2190_v58  ;;  %v1693_v58 = vsub.f32 %v669_v51, %v1181_v52  ;;  %v2204_v0 = vmul.f32 %v1692_v53, %v1692_v53  ;;  %v682_v52 = vld [vmem:[#allocation3 + $0x330] sm:$0xff] }
  0xa5   :  { %v1194_v53 = vld [vmem:[#allocation6 + $0x330] sm:$0xff] }
  0xa6   :  { %v4753_v10 = vadd.f32 %v4752_v5, %v2191_v63  ;;  %v1694_v63 = vsub.f32 %v670_v56, %v1182_v57  ;;  %v2205_v5 = vmul.f32 %v1693_v58, %v1693_v58  ;;  %v683_v57 = vld [vmem:[#allocation3 + $0x338] sm:$0xff] }
  0xa7   :  { %v1195_v58 = vld [vmem:[#allocation6 + $0x338] sm:$0xff] }
  0xa8   :  { %v4754_v15 = vadd.f32 %v4753_v10, %v2192_v4  ;;  %v1695_v4 = vsub.f32 %v671_v61, %v1183_v62  ;;  %v2206_v10 = vmul.f32 %v1694_v63, %v1694_v63  ;;  %v684_v62 = vld [vmem:[#allocation3 + $0x340] sm:$0xff] }
  0xa9   :  { %v1196_v63 = vld [vmem:[#allocation6 + $0x340] sm:$0xff] }
  0xaa   :  { %v4755_v20 = vadd.f32 %v4754_v15, %v2193_v9  ;;  %v1696_v9 = vsub.f32 %v672_v2, %v1184_v3  ;;  %v2207_v15 = vmul.f32 %v1695_v4, %v1695_v4  ;;  %v685_v3 = vld [vmem:[#allocation3 + $0x348] sm:$0xff] }
  0xab   :  { %v1197_v4 = vld [vmem:[#allocation6 + $0x348] sm:$0xff] }
  0xac   :  { %v4756_v25 = vadd.f32 %v4755_v20, %v2194_v14  ;;  %v1697_v14 = vsub.f32 %v673_v7, %v1185_v8  ;;  %v2208_v20 = vmul.f32 %v1696_v9, %v1696_v9  ;;  %v686_v8 = vld [vmem:[#allocation3 + $0x350] sm:$0xff] }
  0xad   :  { %v1198_v9 = vld [vmem:[#allocation6 + $0x350] sm:$0xff] }
  0xae   :  { %v4757_v30 = vadd.f32 %v4756_v25, %v2195_v19  ;;  %v1698_v19 = vsub.f32 %v674_v12, %v1186_v13  ;;  %v2209_v25 = vmul.f32 %v1697_v14, %v1697_v14  ;;  %v687_v13 = vld [vmem:[#allocation3 + $0x358] sm:$0xff] }
  0xaf   :  { %v1199_v14 = vld [vmem:[#allocation6 + $0x358] sm:$0xff] }
  0xb0   :  { %v4758_v35 = vadd.f32 %v4757_v30, %v2196_v24  ;;  %v1699_v24 = vsub.f32 %v675_v17, %v1187_v18  ;;  %v2210_v30 = vmul.f32 %v1698_v19, %v1698_v19  ;;  %v688_v18 = vld [vmem:[#allocation3 + $0x360] sm:$0xff] }
  0xb1   :  { %v1200_v19 = vld [vmem:[#allocation6 + $0x360] sm:$0xff] }
  0xb2   :  { %v4759_v40 = vadd.f32 %v4758_v35, %v2197_v29  ;;  %v1700_v29 = vsub.f32 %v676_v22, %v1188_v23  ;;  %v2211_v35 = vmul.f32 %v1699_v24, %v1699_v24  ;;  %v689_v23 = vld [vmem:[#allocation3 + $0x368] sm:$0xff] }
  0xb3   :  { %v1201_v24 = vld [vmem:[#allocation6 + $0x368] sm:$0xff] }
  0xb4   :  { %v4760_v45 = vadd.f32 %v4759_v40, %v2198_v34  ;;  %v1701_v34 = vsub.f32 %v677_v27, %v1189_v28  ;;  %v2212_v40 = vmul.f32 %v1700_v29, %v1700_v29  ;;  %v690_v28 = vld [vmem:[#allocation3 + $0x370] sm:$0xff] }
  0xb5   :  { %v1202_v29 = vld [vmem:[#allocation6 + $0x370] sm:$0xff] }
  0xb6   :  { %v4761_v50 = vadd.f32 %v4760_v45, %v2199_v39  ;;  %v1702_v39 = vsub.f32 %v678_v32, %v1190_v33  ;;  %v2213_v45 = vmul.f32 %v1701_v34, %v1701_v34  ;;  %v691_v33 = vld [vmem:[#allocation3 + $0x378] sm:$0xff] }
  0xb7   :  { %v1203_v34 = vld [vmem:[#allocation6 + $0x378] sm:$0xff] }
  0xb8   :  { %v4762_v55 = vadd.f32 %v4761_v50, %v2200_v44  ;;  %v1703_v44 = vsub.f32 %v679_v37, %v1191_v38  ;;  %v2214_v50 = vmul.f32 %v1702_v39, %v1702_v39  ;;  %v692_v38 = vld [vmem:[#allocation3 + $0x380] sm:$0xff] }
  0xb9   :  { %v1204_v39 = vld [vmem:[#allocation6 + $0x380] sm:$0xff] }
  0xba   :  { %v4763_v60 = vadd.f32 %v4762_v55, %v2201_v49  ;;  %v1704_v49 = vsub.f32 %v680_v42, %v1192_v43  ;;  %v2215_v55 = vmul.f32 %v1703_v44, %v1703_v44  ;;  %v693_v43 = vld [vmem:[#allocation3 + $0x388] sm:$0xff] }
  0xbb   :  { %v1205_v44 = vld [vmem:[#allocation6 + $0x388] sm:$0xff] }
  0xbc   :  { %v4764_v1 = vadd.f32 %v4763_v60, %v2202_v54  ;;  %v1705_v54 = vsub.f32 %v681_v47, %v1193_v48  ;;  %v2216_v60 = vmul.f32 %v1704_v49, %v1704_v49  ;;  %v694_v48 = vld [vmem:[#allocation3 + $0x390] sm:$0xff] }
  0xbd   :  { %v1206_v49 = vld [vmem:[#allocation6 + $0x390] sm:$0xff] }
  0xbe   :  { %v4765_v6 = vadd.f32 %v4764_v1, %v2203_v59  ;;  %v1706_v59 = vsub.f32 %v682_v52, %v1194_v53  ;;  %v2217_v1 = vmul.f32 %v1705_v54, %v1705_v54  ;;  %v695_v53 = vld [vmem:[#allocation3 + $0x398] sm:$0xff] }
  0xbf   :  { %v1207_v54 = vld [vmem:[#allocation6 + $0x398] sm:$0xff] }
  0xc0   :  { %v4766_v11 = vadd.f32 %v4765_v6, %v2204_v0  ;;  %v1707_v0 = vsub.f32 %v683_v57, %v1195_v58  ;;  %v2218_v6 = vmul.f32 %v1706_v59, %v1706_v59  ;;  %v696_v58 = vld [vmem:[#allocation3 + $0x3a0] sm:$0xff] }
  0xc1   :  { %v1208_v59 = vld [vmem:[#allocation6 + $0x3a0] sm:$0xff] }
  0xc2   :  { %v4767_v16 = vadd.f32 %v4766_v11, %v2205_v5  ;;  %v1708_v5 = vsub.f32 %v684_v62, %v1196_v63  ;;  %v2219_v11 = vmul.f32 %v1707_v0, %v1707_v0  ;;  %v697_v63 = vld [vmem:[#allocation3 + $0x3a8] sm:$0xff] }
  0xc3   :  { %v1209_v0 = vld [vmem:[#allocation6 + $0x3a8] sm:$0xff] }
  0xc4   :  { %v4768_v21 = vadd.f32 %v4767_v16, %v2206_v10  ;;  %v1709_v10 = vsub.f32 %v685_v3, %v1197_v4  ;;  %v2220_v16 = vmul.f32 %v1708_v5, %v1708_v5  ;;  %v698_v4 = vld [vmem:[#allocation3 + $0x3b0] sm:$0xff] }
  0xc5   :  { %v1210_v5 = vld [vmem:[#allocation6 + $0x3b0] sm:$0xff] }
  0xc6   :  { %v4769_v26 = vadd.f32 %v4768_v21, %v2207_v15  ;;  %v1710_v15 = vsub.f32 %v686_v8, %v1198_v9  ;;  %v2221_v21 = vmul.f32 %v1709_v10, %v1709_v10  ;;  %v699_v9 = vld [vmem:[#allocation3 + $0x3b8] sm:$0xff] }
  0xc7   :  { %v1211_v10 = vld [vmem:[#allocation6 + $0x3b8] sm:$0xff] }
  0xc8   :  { %v4770_v31 = vadd.f32 %v4769_v26, %v2208_v20  ;;  %v1711_v20 = vsub.f32 %v687_v13, %v1199_v14  ;;  %v2222_v26 = vmul.f32 %v1710_v15, %v1710_v15  ;;  %v700_v14 = vld [vmem:[#allocation3 + $0x3c0] sm:$0xff] }
  0xc9   :  { %v1212_v15 = vld [vmem:[#allocation6 + $0x3c0] sm:$0xff] }
  0xca   :  { %v4771_v36 = vadd.f32 %v4770_v31, %v2209_v25  ;;  %v1712_v25 = vsub.f32 %v688_v18, %v1200_v19  ;;  %v2223_v31 = vmul.f32 %v1711_v20, %v1711_v20  ;;  %v701_v19 = vld [vmem:[#allocation3 + $0x3c8] sm:$0xff] }
  0xcb   :  { %v1213_v20 = vld [vmem:[#allocation6 + $0x3c8] sm:$0xff] }
  0xcc   :  { %v4772_v41 = vadd.f32 %v4771_v36, %v2210_v30  ;;  %v1713_v30 = vsub.f32 %v689_v23, %v1201_v24  ;;  %v2224_v36 = vmul.f32 %v1712_v25, %v1712_v25  ;;  %v702_v24 = vld [vmem:[#allocation3 + $0x3d0] sm:$0xff] }
  0xcd   :  { %v1214_v25 = vld [vmem:[#allocation6 + $0x3d0] sm:$0xff] }
  0xce   :  { %v4773_v46 = vadd.f32 %v4772_v41, %v2211_v35  ;;  %v1714_v35 = vsub.f32 %v690_v28, %v1202_v29  ;;  %v2225_v41 = vmul.f32 %v1713_v30, %v1713_v30  ;;  %v703_v29 = vld [vmem:[#allocation3 + $0x3d8] sm:$0xff] }
  0xcf   :  { %v1215_v30 = vld [vmem:[#allocation6 + $0x3d8] sm:$0xff] }
  0xd0   :  { %v4774_v51 = vadd.f32 %v4773_v46, %v2212_v40  ;;  %v1715_v40 = vsub.f32 %v691_v33, %v1203_v34  ;;  %v2226_v46 = vmul.f32 %v1714_v35, %v1714_v35  ;;  %v704_v34 = vld [vmem:[#allocation3 + $0x3e0] sm:$0xff] }
  0xd1   :  { %v1216_v35 = vld [vmem:[#allocation6 + $0x3e0] sm:$0xff] }
  0xd2   :  { %v4775_v56 = vadd.f32 %v4774_v51, %v2213_v45  ;;  %v1716_v45 = vsub.f32 %v692_v38, %v1204_v39  ;;  %v2227_v51 = vmul.f32 %v1715_v40, %v1715_v40  ;;  %v705_v39 = vld [vmem:[#allocation3 + $0x3e8] sm:$0xff] }
  0xd3   :  { %v1217_v40 = vld [vmem:[#allocation6 + $0x3e8] sm:$0xff] }
  0xd4   :  { %v4776_v61 = vadd.f32 %v4775_v56, %v2214_v50  ;;  %v1717_v50 = vsub.f32 %v693_v43, %v1205_v44  ;;  %v2228_v56 = vmul.f32 %v1716_v45, %v1716_v45  ;;  %v706_v44 = vld [vmem:[#allocation3 + $0x3f0] sm:$0xff] }
  0xd5   :  { %v1218_v45 = vld [vmem:[#allocation6 + $0x3f0] sm:$0xff] }
  0xd6   :  { %v4777_v2 = vadd.f32 %v4776_v61, %v2215_v55  ;;  %v1718_v55 = vsub.f32 %v694_v48, %v1206_v49  ;;  %v2229_v61 = vmul.f32 %v1717_v50, %v1717_v50  ;;  %v707_v49 = vld [vmem:[#allocation3 + $0x3f8] sm:$0xff] }
  0xd7   :  { %v1219_v50 = vld [vmem:[#allocation6 + $0x3f8] sm:$0xff] }
  0xd8   :  { %v4778_v7 = vadd.f32 %v4777_v2, %v2216_v60  ;;  %v1719_v60 = vsub.f32 %v695_v53, %v1207_v54  ;;  %v2230_v2 = vmul.f32 %v1718_v55, %v1718_v55  ;;  %v708_v54 = vld [vmem:[#allocation3 + $0x400] sm:$0xff] }
  0xd9   :  { %v1220_v55 = vld [vmem:[#allocation6 + $0x400] sm:$0xff] }
  0xda   :  { %v4779_v12 = vadd.f32 %v4778_v7, %v2217_v1  ;;  %v1720_v1 = vsub.f32 %v696_v58, %v1208_v59  ;;  %v2231_v7 = vmul.f32 %v1719_v60, %v1719_v60  ;;  %v709_v59 = vld [vmem:[#allocation3 + $0x408] sm:$0xff] }
  0xdb   :  { %v1221_v60 = vld [vmem:[#allocation6 + $0x408] sm:$0xff] }
  0xdc   :  { %v4780_v17 = vadd.f32 %v4779_v12, %v2218_v6  ;;  %v1721_v6 = vsub.f32 %v697_v63, %v1209_v0  ;;  %v2232_v12 = vmul.f32 %v1720_v1, %v1720_v1  ;;  %v710_v0 = vld [vmem:[#allocation3 + $0x410] sm:$0xff] }
  0xdd   :  { %v1222_v1 = vld [vmem:[#allocation6 + $0x410] sm:$0xff] }
  0xde   :  { %v4781_v22 = vadd.f32 %v4780_v17, %v2219_v11  ;;  %v1722_v11 = vsub.f32 %v698_v4, %v1210_v5  ;;  %v2233_v17 = vmul.f32 %v1721_v6, %v1721_v6  ;;  %v711_v5 = vld [vmem:[#allocation3 + $0x418] sm:$0xff] }
  0xdf   :  { %v1223_v6 = vld [vmem:[#allocation6 + $0x418] sm:$0xff] }
  0xe0   :  { %v4782_v27 = vadd.f32 %v4781_v22, %v2220_v16  ;;  %v1723_v16 = vsub.f32 %v699_v9, %v1211_v10  ;;  %v2234_v22 = vmul.f32 %v1722_v11, %v1722_v11  ;;  %v712_v10 = vld [vmem:[#allocation3 + $0x420] sm:$0xff] }
  0xe1   :  { %v1224_v11 = vld [vmem:[#allocation6 + $0x420] sm:$0xff] }
  0xe2   :  { %v4783_v32 = vadd.f32 %v4782_v27, %v2221_v21  ;;  %v1724_v21 = vsub.f32 %v700_v14, %v1212_v15  ;;  %v2235_v27 = vmul.f32 %v1723_v16, %v1723_v16  ;;  %v713_v15 = vld [vmem:[#allocation3 + $0x428] sm:$0xff] }
  0xe3   :  { %v1225_v16 = vld [vmem:[#allocation6 + $0x428] sm:$0xff] }
  0xe4   :  { %v4784_v37 = vadd.f32 %v4783_v32, %v2222_v26  ;;  %v1725_v26 = vsub.f32 %v701_v19, %v1213_v20  ;;  %v2236_v32 = vmul.f32 %v1724_v21, %v1724_v21  ;;  %v714_v20 = vld [vmem:[#allocation3 + $0x430] sm:$0xff] }
  0xe5   :  { %v1226_v21 = vld [vmem:[#allocation6 + $0x430] sm:$0xff] }
  0xe6   :  { %v4785_v42 = vadd.f32 %v4784_v37, %v2223_v31  ;;  %v1726_v31 = vsub.f32 %v702_v24, %v1214_v25  ;;  %v2237_v37 = vmul.f32 %v1725_v26, %v1725_v26  ;;  %v715_v25 = vld [vmem:[#allocation3 + $0x438] sm:$0xff] }
  0xe7   :  { %v1227_v26 = vld [vmem:[#allocation6 + $0x438] sm:$0xff] }
  0xe8   :  { %v4786_v47 = vadd.f32 %v4785_v42, %v2224_v36  ;;  %v1727_v36 = vsub.f32 %v703_v29, %v1215_v30  ;;  %v2238_v42 = vmul.f32 %v1726_v31, %v1726_v31  ;;  %v716_v30 = vld [vmem:[#allocation3 + $0x440] sm:$0xff] }
  0xe9   :  { %v1228_v31 = vld [vmem:[#allocation6 + $0x440] sm:$0xff] }
  0xea   :  { %v4787_v52 = vadd.f32 %v4786_v47, %v2225_v41  ;;  %v1728_v41 = vsub.f32 %v704_v34, %v1216_v35  ;;  %v2239_v47 = vmul.f32 %v1727_v36, %v1727_v36  ;;  %v717_v35 = vld [vmem:[#allocation3 + $0x448] sm:$0xff] }
  0xeb   :  { %v1229_v36 = vld [vmem:[#allocation6 + $0x448] sm:$0xff] }
  0xec   :  { %v4788_v57 = vadd.f32 %v4787_v52, %v2226_v46  ;;  %v1729_v46 = vsub.f32 %v705_v39, %v1217_v40  ;;  %v2240_v52 = vmul.f32 %v1728_v41, %v1728_v41  ;;  %v718_v40 = vld [vmem:[#allocation3 + $0x450] sm:$0xff] }
  0xed   :  { %v1230_v41 = vld [vmem:[#allocation6 + $0x450] sm:$0xff] }
  0xee   :  { %v4789_v62 = vadd.f32 %v4788_v57, %v2227_v51  ;;  %v1730_v51 = vsub.f32 %v706_v44, %v1218_v45  ;;  %v2241_v57 = vmul.f32 %v1729_v46, %v1729_v46  ;;  %v719_v45 = vld [vmem:[#allocation3 + $0x458] sm:$0xff] }
  0xef   :  { %v1231_v46 = vld [vmem:[#allocation6 + $0x458] sm:$0xff] }
  0xf0   :  { %v4790_v3 = vadd.f32 %v4789_v62, %v2228_v56  ;;  %v1731_v56 = vsub.f32 %v707_v49, %v1219_v50  ;;  %v2242_v62 = vmul.f32 %v1730_v51, %v1730_v51  ;;  %v720_v50 = vld [vmem:[#allocation3 + $0x460] sm:$0xff] }
  0xf1   :  { %v1232_v51 = vld [vmem:[#allocation6 + $0x460] sm:$0xff] }
  0xf2   :  { %v4791_v8 = vadd.f32 %v4790_v3, %v2229_v61  ;;  %v1732_v61 = vsub.f32 %v708_v54, %v1220_v55  ;;  %v2243_v3 = vmul.f32 %v1731_v56, %v1731_v56  ;;  %v721_v55 = vld [vmem:[#allocation3 + $0x468] sm:$0xff] }
  0xf3   :  { %v1233_v56 = vld [vmem:[#allocation6 + $0x468] sm:$0xff] }
  0xf4   :  { %v4792_v13 = vadd.f32 %v4791_v8, %v2230_v2  ;;  %v1733_v2 = vsub.f32 %v709_v59, %v1221_v60  ;;  %v2244_v8 = vmul.f32 %v1732_v61, %v1732_v61  ;;  %v722_v60 = vld [vmem:[#allocation3 + $0x470] sm:$0xff] }
  0xf5   :  { %v1234_v61 = vld [vmem:[#allocation6 + $0x470] sm:$0xff] }
  0xf6   :  { %v4793_v18 = vadd.f32 %v4792_v13, %v2231_v7  ;;  %v1734_v7 = vsub.f32 %v710_v0, %v1222_v1  ;;  %v2245_v13 = vmul.f32 %v1733_v2, %v1733_v2  ;;  %v723_v1 = vld [vmem:[#allocation3 + $0x478] sm:$0xff] }
  0xf7   :  { %v1235_v2 = vld [vmem:[#allocation6 + $0x478] sm:$0xff] }
  0xf8   :  { %v4794_v23 = vadd.f32 %v4793_v18, %v2232_v12  ;;  %v1735_v12 = vsub.f32 %v711_v5, %v1223_v6  ;;  %v2246_v18 = vmul.f32 %v1734_v7, %v1734_v7  ;;  %v724_v6 = vld [vmem:[#allocation3 + $0x480] sm:$0xff] }
  0xf9   :  { %v1236_v7 = vld [vmem:[#allocation6 + $0x480] sm:$0xff] }
  0xfa   :  { %v4795_v28 = vadd.f32 %v4794_v23, %v2233_v17  ;;  %v1736_v17 = vsub.f32 %v712_v10, %v1224_v11  ;;  %v2247_v23 = vmul.f32 %v1735_v12, %v1735_v12  ;;  %v725_v11 = vld [vmem:[#allocation3 + $0x488] sm:$0xff] }
  0xfb   :  { %v1237_v12 = vld [vmem:[#allocation6 + $0x488] sm:$0xff] }
  0xfc   :  { %v4796_v33 = vadd.f32 %v4795_v28, %v2234_v22  ;;  %v1737_v22 = vsub.f32 %v713_v15, %v1225_v16  ;;  %v2248_v28 = vmul.f32 %v1736_v17, %v1736_v17  ;;  %v726_v16 = vld [vmem:[#allocation3 + $0x490] sm:$0xff] }
  0xfd   :  { %v1238_v17 = vld [vmem:[#allocation6 + $0x490] sm:$0xff] }
  0xfe   :  { %v4797_v38 = vadd.f32 %v4796_v33, %v2235_v27  ;;  %v1738_v27 = vsub.f32 %v714_v20, %v1226_v21  ;;  %v2249_v33 = vmul.f32 %v1737_v22, %v1737_v22  ;;  %v727_v21 = vld [vmem:[#allocation3 + $0x498] sm:$0xff] }
  0xff   :  { %v1239_v22 = vld [vmem:[#allocation6 + $0x498] sm:$0xff] }
 0x100   :  { %v4798_v43 = vadd.f32 %v4797_v38, %v2236_v32  ;;  %v1739_v32 = vsub.f32 %v715_v25, %v1227_v26  ;;  %v2250_v38 = vmul.f32 %v1738_v27, %v1738_v27  ;;  %v728_v26 = vld [vmem:[#allocation3 + $0x4a0] sm:$0xff] }
 0x101   :  { %v1240_v27 = vld [vmem:[#allocation6 + $0x4a0] sm:$0xff] }
 0x102   :  { %v4799_v48 = vadd.f32 %v4798_v43, %v2237_v37  ;;  %v1740_v37 = vsub.f32 %v716_v30, %v1228_v31  ;;  %v2251_v43 = vmul.f32 %v1739_v32, %v1739_v32  ;;  %v729_v31 = vld [vmem:[#allocation3 + $0x4a8] sm:$0xff] }
 0x103   :  { %v1241_v32 = vld [vmem:[#allocation6 + $0x4a8] sm:$0xff] }
 0x104   :  { %v4800_v53 = vadd.f32 %v4799_v48, %v2238_v42  ;;  %v1741_v42 = vsub.f32 %v717_v35, %v1229_v36  ;;  %v2252_v48 = vmul.f32 %v1740_v37, %v1740_v37  ;;  %v730_v36 = vld [vmem:[#allocation3 + $0x4b0] sm:$0xff] }
 0x105   :  { %v1242_v37 = vld [vmem:[#allocation6 + $0x4b0] sm:$0xff] }
 0x106   :  { %v4801_v58 = vadd.f32 %v4800_v53, %v2239_v47  ;;  %v1742_v47 = vsub.f32 %v718_v40, %v1230_v41  ;;  %v2253_v53 = vmul.f32 %v1741_v42, %v1741_v42  ;;  %v731_v41 = vld [vmem:[#allocation3 + $0x4b8] sm:$0xff] }
 0x107   :  { %v1243_v42 = vld [vmem:[#allocation6 + $0x4b8] sm:$0xff] }
 0x108   :  { %v4802_v63 = vadd.f32 %v4801_v58, %v2240_v52  ;;  %v1743_v52 = vsub.f32 %v719_v45, %v1231_v46  ;;  %v2254_v58 = vmul.f32 %v1742_v47, %v1742_v47  ;;  %v732_v46 = vld [vmem:[#allocation3 + $0x4c0] sm:$0xff] }
 0x109   :  { %v1244_v47 = vld [vmem:[#allocation6 + $0x4c0] sm:$0xff] }
 0x10a   :  { %v4803_v4 = vadd.f32 %v4802_v63, %v2241_v57  ;;  %v1744_v57 = vsub.f32 %v720_v50, %v1232_v51  ;;  %v2255_v63 = vmul.f32 %v1743_v52, %v1743_v52  ;;  %v733_v51 = vld [vmem:[#allocation3 + $0x4c8] sm:$0xff] }
 0x10b   :  { %v1245_v52 = vld [vmem:[#allocation6 + $0x4c8] sm:$0xff] }
 0x10c   :  { %v4804_v9 = vadd.f32 %v4803_v4, %v2242_v62  ;;  %v1745_v62 = vsub.f32 %v721_v55, %v1233_v56  ;;  %v2256_v4 = vmul.f32 %v1744_v57, %v1744_v57  ;;  %v734_v56 = vld [vmem:[#allocation3 + $0x4d0] sm:$0xff] }
 0x10d   :  { %v1246_v57 = vld [vmem:[#allocation6 + $0x4d0] sm:$0xff] }
 0x10e   :  { %v4805_v14 = vadd.f32 %v4804_v9, %v2243_v3  ;;  %v1746_v3 = vsub.f32 %v722_v60, %v1234_v61  ;;  %v2257_v9 = vmul.f32 %v1745_v62, %v1745_v62  ;;  %v735_v61 = vld [vmem:[#allocation3 + $0x4d8] sm:$0xff] }
 0x10f   :  { %v1247_v62 = vld [vmem:[#allocation6 + $0x4d8] sm:$0xff] }
 0x110   :  { %v4806_v19 = vadd.f32 %v4805_v14, %v2244_v8  ;;  %v1747_v8 = vsub.f32 %v723_v1, %v1235_v2  ;;  %v2258_v14 = vmul.f32 %v1746_v3, %v1746_v3  ;;  %v736_v2 = vld [vmem:[#allocation3 + $0x4e0] sm:$0xff] }
 0x111   :  { %v1248_v3 = vld [vmem:[#allocation6 + $0x4e0] sm:$0xff] }
 0x112   :  { %v4807_v24 = vadd.f32 %v4806_v19, %v2245_v13  ;;  %v1748_v13 = vsub.f32 %v724_v6, %v1236_v7  ;;  %v2259_v19 = vmul.f32 %v1747_v8, %v1747_v8  ;;  %v737_v7 = vld [vmem:[#allocation3 + $0x4e8] sm:$0xff] }
 0x113   :  { %v1249_v8 = vld [vmem:[#allocation6 + $0x4e8] sm:$0xff] }
 0x114   :  { %v4808_v29 = vadd.f32 %v4807_v24, %v2246_v18  ;;  %v1749_v18 = vsub.f32 %v725_v11, %v1237_v12  ;;  %v2260_v24 = vmul.f32 %v1748_v13, %v1748_v13  ;;  %v738_v12 = vld [vmem:[#allocation3 + $0x4f0] sm:$0xff] }
 0x115   :  { %v1250_v13 = vld [vmem:[#allocation6 + $0x4f0] sm:$0xff] }
 0x116   :  { %v4809_v34 = vadd.f32 %v4808_v29, %v2247_v23  ;;  %v1750_v23 = vsub.f32 %v726_v16, %v1238_v17  ;;  %v2261_v29 = vmul.f32 %v1749_v18, %v1749_v18  ;;  %v739_v17 = vld [vmem:[#allocation3 + $0x4f8] sm:$0xff] }
 0x117   :  { %v1251_v18 = vld [vmem:[#allocation6 + $0x4f8] sm:$0xff] }
 0x118   :  { %v4810_v39 = vadd.f32 %v4809_v34, %v2248_v28  ;;  %v1751_v28 = vsub.f32 %v727_v21, %v1239_v22  ;;  %v2262_v34 = vmul.f32 %v1750_v23, %v1750_v23  ;;  %v740_v22 = vld [vmem:[#allocation3 + $0x500] sm:$0xff] }
 0x119   :  { %v1252_v23 = vld [vmem:[#allocation6 + $0x500] sm:$0xff] }
 0x11a   :  { %v4811_v44 = vadd.f32 %v4810_v39, %v2249_v33  ;;  %v1752_v33 = vsub.f32 %v728_v26, %v1240_v27  ;;  %v2263_v39 = vmul.f32 %v1751_v28, %v1751_v28  ;;  %v741_v27 = vld [vmem:[#allocation3 + $0x508] sm:$0xff] }
 0x11b   :  { %v1253_v28 = vld [vmem:[#allocation6 + $0x508] sm:$0xff] }
 0x11c   :  { %v4812_v49 = vadd.f32 %v4811_v44, %v2250_v38  ;;  %v1753_v38 = vsub.f32 %v729_v31, %v1241_v32  ;;  %v2264_v44 = vmul.f32 %v1752_v33, %v1752_v33  ;;  %v742_v32 = vld [vmem:[#allocation3 + $0x510] sm:$0xff] }
 0x11d   :  { %v1254_v33 = vld [vmem:[#allocation6 + $0x510] sm:$0xff] }
 0x11e   :  { %v4813_v54 = vadd.f32 %v4812_v49, %v2251_v43  ;;  %v1754_v43 = vsub.f32 %v730_v36, %v1242_v37  ;;  %v2265_v49 = vmul.f32 %v1753_v38, %v1753_v38  ;;  %v743_v37 = vld [vmem:[#allocation3 + $0x518] sm:$0xff] }
 0x11f   :  { %v1255_v38 = vld [vmem:[#allocation6 + $0x518] sm:$0xff] }
 0x120   :  { %v4814_v59 = vadd.f32 %v4813_v54, %v2252_v48  ;;  %v1755_v48 = vsub.f32 %v731_v41, %v1243_v42  ;;  %v2266_v54 = vmul.f32 %v1754_v43, %v1754_v43  ;;  %v744_v42 = vld [vmem:[#allocation3 + $0x520] sm:$0xff] }
 0x121   :  { %v1256_v43 = vld [vmem:[#allocation6 + $0x520] sm:$0xff] }
 0x122   :  { %v4815_v0 = vadd.f32 %v4814_v59, %v2253_v53  ;;  %v1756_v53 = vsub.f32 %v732_v46, %v1244_v47  ;;  %v2267_v59 = vmul.f32 %v1755_v48, %v1755_v48  ;;  %v745_v47 = vld [vmem:[#allocation3 + $0x528] sm:$0xff] }
 0x123   :  { %v1257_v48 = vld [vmem:[#allocation6 + $0x528] sm:$0xff] }
 0x124   :  { %v4816_v5 = vadd.f32 %v4815_v0, %v2254_v58  ;;  %v1757_v58 = vsub.f32 %v733_v51, %v1245_v52  ;;  %v2268_v0 = vmul.f32 %v1756_v53, %v1756_v53  ;;  %v746_v52 = vld [vmem:[#allocation3 + $0x530] sm:$0xff] }
 0x125   :  { %v1258_v53 = vld [vmem:[#allocation6 + $0x530] sm:$0xff] }
 0x126   :  { %v4817_v10 = vadd.f32 %v4816_v5, %v2255_v63  ;;  %v1758_v63 = vsub.f32 %v734_v56, %v1246_v57  ;;  %v2269_v5 = vmul.f32 %v1757_v58, %v1757_v58  ;;  %v747_v57 = vld [vmem:[#allocation3 + $0x538] sm:$0xff] }
 0x127   :  { %v1259_v58 = vld [vmem:[#allocation6 + $0x538] sm:$0xff] }
 0x128   :  { %v4818_v15 = vadd.f32 %v4817_v10, %v2256_v4  ;;  %v1759_v4 = vsub.f32 %v735_v61, %v1247_v62  ;;  %v2270_v10 = vmul.f32 %v1758_v63, %v1758_v63  ;;  %v748_v62 = vld [vmem:[#allocation3 + $0x540] sm:$0xff] }
 0x129   :  { %v1260_v63 = vld [vmem:[#allocation6 + $0x540] sm:$0xff] }
 0x12a   :  { %v4819_v20 = vadd.f32 %v4818_v15, %v2257_v9  ;;  %v1760_v9 = vsub.f32 %v736_v2, %v1248_v3  ;;  %v2271_v15 = vmul.f32 %v1759_v4, %v1759_v4  ;;  %v749_v3 = vld [vmem:[#allocation3 + $0x548] sm:$0xff] }
 0x12b   :  { %v1261_v4 = vld [vmem:[#allocation6 + $0x548] sm:$0xff] }
 0x12c   :  { %v4820_v25 = vadd.f32 %v4819_v20, %v2258_v14  ;;  %v1761_v14 = vsub.f32 %v737_v7, %v1249_v8  ;;  %v2272_v20 = vmul.f32 %v1760_v9, %v1760_v9  ;;  %v750_v8 = vld [vmem:[#allocation3 + $0x550] sm:$0xff] }
 0x12d   :  { %v1262_v9 = vld [vmem:[#allocation6 + $0x550] sm:$0xff] }
 0x12e   :  { %v4821_v30 = vadd.f32 %v4820_v25, %v2259_v19  ;;  %v1762_v19 = vsub.f32 %v738_v12, %v1250_v13  ;;  %v2273_v25 = vmul.f32 %v1761_v14, %v1761_v14  ;;  %v751_v13 = vld [vmem:[#allocation3 + $0x558] sm:$0xff] }
 0x12f   :  { %v1263_v14 = vld [vmem:[#allocation6 + $0x558] sm:$0xff] }
 0x130   :  { %v4822_v35 = vadd.f32 %v4821_v30, %v2260_v24  ;;  %v1763_v24 = vsub.f32 %v739_v17, %v1251_v18  ;;  %v2274_v30 = vmul.f32 %v1762_v19, %v1762_v19  ;;  %v752_v18 = vld [vmem:[#allocation3 + $0x560] sm:$0xff] }
 0x131   :  { %v1264_v19 = vld [vmem:[#allocation6 + $0x560] sm:$0xff] }
 0x132   :  { %v4823_v40 = vadd.f32 %v4822_v35, %v2261_v29  ;;  %v1764_v29 = vsub.f32 %v740_v22, %v1252_v23  ;;  %v2275_v35 = vmul.f32 %v1763_v24, %v1763_v24  ;;  %v753_v23 = vld [vmem:[#allocation3 + $0x568] sm:$0xff] }
 0x133   :  { %v1265_v24 = vld [vmem:[#allocation6 + $0x568] sm:$0xff] }
 0x134   :  { %v4824_v45 = vadd.f32 %v4823_v40, %v2262_v34  ;;  %v1765_v34 = vsub.f32 %v741_v27, %v1253_v28  ;;  %v2276_v40 = vmul.f32 %v1764_v29, %v1764_v29  ;;  %v754_v28 = vld [vmem:[#allocation3 + $0x570] sm:$0xff] }
 0x135   :  { %v1266_v29 = vld [vmem:[#allocation6 + $0x570] sm:$0xff] }
 0x136   :  { %v4825_v50 = vadd.f32 %v4824_v45, %v2263_v39  ;;  %v1766_v39 = vsub.f32 %v742_v32, %v1254_v33  ;;  %v2277_v45 = vmul.f32 %v1765_v34, %v1765_v34  ;;  %v755_v33 = vld [vmem:[#allocation3 + $0x578] sm:$0xff] }
 0x137   :  { %v1267_v34 = vld [vmem:[#allocation6 + $0x578] sm:$0xff] }
 0x138   :  { %v4826_v55 = vadd.f32 %v4825_v50, %v2264_v44  ;;  %v1767_v44 = vsub.f32 %v743_v37, %v1255_v38  ;;  %v2278_v50 = vmul.f32 %v1766_v39, %v1766_v39  ;;  %v756_v38 = vld [vmem:[#allocation3 + $0x580] sm:$0xff] }
 0x139   :  { %v1268_v39 = vld [vmem:[#allocation6 + $0x580] sm:$0xff] }
 0x13a   :  { %v4827_v60 = vadd.f32 %v4826_v55, %v2265_v49  ;;  %v1768_v49 = vsub.f32 %v744_v42, %v1256_v43  ;;  %v2279_v55 = vmul.f32 %v1767_v44, %v1767_v44  ;;  %v757_v43 = vld [vmem:[#allocation3 + $0x588] sm:$0xff] }
 0x13b   :  { %v1269_v44 = vld [vmem:[#allocation6 + $0x588] sm:$0xff] }
 0x13c   :  { %v4828_v1 = vadd.f32 %v4827_v60, %v2266_v54  ;;  %v1769_v54 = vsub.f32 %v745_v47, %v1257_v48  ;;  %v2280_v60 = vmul.f32 %v1768_v49, %v1768_v49  ;;  %v758_v48 = vld [vmem:[#allocation3 + $0x590] sm:$0xff] }
 0x13d   :  { %v1270_v49 = vld [vmem:[#allocation6 + $0x590] sm:$0xff] }
 0x13e   :  { %v4829_v6 = vadd.f32 %v4828_v1, %v2267_v59  ;;  %v1770_v59 = vsub.f32 %v746_v52, %v1258_v53  ;;  %v2281_v1 = vmul.f32 %v1769_v54, %v1769_v54  ;;  %v759_v53 = vld [vmem:[#allocation3 + $0x598] sm:$0xff] }
 0x13f   :  { %v1271_v54 = vld [vmem:[#allocation6 + $0x598] sm:$0xff] }
 0x140   :  { %v4830_v11 = vadd.f32 %v4829_v6, %v2268_v0  ;;  %v1771_v0 = vsub.f32 %v747_v57, %v1259_v58  ;;  %v2282_v6 = vmul.f32 %v1770_v59, %v1770_v59  ;;  %v760_v58 = vld [vmem:[#allocation3 + $0x5a0] sm:$0xff] }
 0x141   :  { %v1272_v59 = vld [vmem:[#allocation6 + $0x5a0] sm:$0xff] }
 0x142   :  { %v4831_v16 = vadd.f32 %v4830_v11, %v2269_v5  ;;  %v1772_v5 = vsub.f32 %v748_v62, %v1260_v63  ;;  %v2283_v11 = vmul.f32 %v1771_v0, %v1771_v0  ;;  %v761_v63 = vld [vmem:[#allocation3 + $0x5a8] sm:$0xff] }
 0x143   :  { %v1273_v0 = vld [vmem:[#allocation6 + $0x5a8] sm:$0xff] }
 0x144   :  { %v4832_v21 = vadd.f32 %v4831_v16, %v2270_v10  ;;  %v1773_v10 = vsub.f32 %v749_v3, %v1261_v4  ;;  %v2284_v16 = vmul.f32 %v1772_v5, %v1772_v5  ;;  %v762_v4 = vld [vmem:[#allocation3 + $0x5b0] sm:$0xff] }
 0x145   :  { %v1274_v5 = vld [vmem:[#allocation6 + $0x5b0] sm:$0xff] }
 0x146   :  { %v4833_v26 = vadd.f32 %v4832_v21, %v2271_v15  ;;  %v1774_v15 = vsub.f32 %v750_v8, %v1262_v9  ;;  %v2285_v21 = vmul.f32 %v1773_v10, %v1773_v10  ;;  %v763_v9 = vld [vmem:[#allocation3 + $0x5b8] sm:$0xff] }
 0x147   :  { %v1275_v10 = vld [vmem:[#allocation6 + $0x5b8] sm:$0xff] }
 0x148   :  { %v4834_v31 = vadd.f32 %v4833_v26, %v2272_v20  ;;  %v1775_v20 = vsub.f32 %v751_v13, %v1263_v14  ;;  %v2286_v26 = vmul.f32 %v1774_v15, %v1774_v15  ;;  %v764_v14 = vld [vmem:[#allocation3 + $0x5c0] sm:$0xff] }
 0x149   :  { %v1276_v15 = vld [vmem:[#allocation6 + $0x5c0] sm:$0xff] }
 0x14a   :  { %v4835_v36 = vadd.f32 %v4834_v31, %v2273_v25  ;;  %v1776_v25 = vsub.f32 %v752_v18, %v1264_v19  ;;  %v2287_v31 = vmul.f32 %v1775_v20, %v1775_v20  ;;  %v765_v19 = vld [vmem:[#allocation3 + $0x5c8] sm:$0xff] }
 0x14b   :  { %v1277_v20 = vld [vmem:[#allocation6 + $0x5c8] sm:$0xff] }
 0x14c   :  { %v4836_v41 = vadd.f32 %v4835_v36, %v2274_v30  ;;  %v1777_v30 = vsub.f32 %v753_v23, %v1265_v24  ;;  %v2288_v36 = vmul.f32 %v1776_v25, %v1776_v25  ;;  %v766_v24 = vld [vmem:[#allocation3 + $0x5d0] sm:$0xff] }
 0x14d   :  { %v1278_v25 = vld [vmem:[#allocation6 + $0x5d0] sm:$0xff] }
 0x14e   :  { %v4837_v46 = vadd.f32 %v4836_v41, %v2275_v35  ;;  %v1778_v35 = vsub.f32 %v754_v28, %v1266_v29  ;;  %v2289_v41 = vmul.f32 %v1777_v30, %v1777_v30  ;;  %v767_v29 = vld [vmem:[#allocation3 + $0x5d8] sm:$0xff] }
 0x14f   :  { %v1279_v30 = vld [vmem:[#allocation6 + $0x5d8] sm:$0xff] }
 0x150   :  { %v4838_v51 = vadd.f32 %v4837_v46, %v2276_v40  ;;  %v1779_v40 = vsub.f32 %v755_v33, %v1267_v34  ;;  %v2290_v46 = vmul.f32 %v1778_v35, %v1778_v35  ;;  %v768_v34 = vld [vmem:[#allocation3 + $0x5e0] sm:$0xff] }
 0x151   :  { %v1280_v35 = vld [vmem:[#allocation6 + $0x5e0] sm:$0xff] }
 0x152   :  { %v4839_v56 = vadd.f32 %v4838_v51, %v2277_v45  ;;  %v1780_v45 = vsub.f32 %v756_v38, %v1268_v39  ;;  %v2291_v51 = vmul.f32 %v1779_v40, %v1779_v40  ;;  %v769_v39 = vld [vmem:[#allocation3 + $0x5e8] sm:$0xff] }
 0x153   :  { %v1281_v40 = vld [vmem:[#allocation6 + $0x5e8] sm:$0xff] }
 0x154   :  { %v4840_v61 = vadd.f32 %v4839_v56, %v2278_v50  ;;  %v1781_v50 = vsub.f32 %v757_v43, %v1269_v44  ;;  %v2292_v56 = vmul.f32 %v1780_v45, %v1780_v45  ;;  %v770_v44 = vld [vmem:[#allocation3 + $0x5f0] sm:$0xff] }
 0x155   :  { %v1282_v45 = vld [vmem:[#allocation6 + $0x5f0] sm:$0xff] }
 0x156   :  { %v4841_v2 = vadd.f32 %v4840_v61, %v2279_v55  ;;  %v1782_v55 = vsub.f32 %v758_v48, %v1270_v49  ;;  %v2293_v61 = vmul.f32 %v1781_v50, %v1781_v50  ;;  %v771_v49 = vld [vmem:[#allocation3 + $0x5f8] sm:$0xff] }
 0x157   :  { %v1283_v50 = vld [vmem:[#allocation6 + $0x5f8] sm:$0xff] }
 0x158   :  { %v4842_v7 = vadd.f32 %v4841_v2, %v2280_v60  ;;  %v1783_v60 = vsub.f32 %v759_v53, %v1271_v54  ;;  %v2294_v2 = vmul.f32 %v1782_v55, %v1782_v55  ;;  %v772_v54 = vld [vmem:[#allocation3 + $0x600] sm:$0xff] }
 0x159   :  { %v1284_v55 = vld [vmem:[#allocation6 + $0x600] sm:$0xff] }
 0x15a   :  { %v4843_v12 = vadd.f32 %v4842_v7, %v2281_v1  ;;  %v1784_v1 = vsub.f32 %v760_v58, %v1272_v59  ;;  %v2295_v7 = vmul.f32 %v1783_v60, %v1783_v60  ;;  %v773_v59 = vld [vmem:[#allocation3 + $0x608] sm:$0xff] }
 0x15b   :  { %v1285_v60 = vld [vmem:[#allocation6 + $0x608] sm:$0xff] }
 0x15c   :  { %v4844_v17 = vadd.f32 %v4843_v12, %v2282_v6  ;;  %v1785_v6 = vsub.f32 %v761_v63, %v1273_v0  ;;  %v2296_v12 = vmul.f32 %v1784_v1, %v1784_v1  ;;  %v774_v0 = vld [vmem:[#allocation3 + $0x610] sm:$0xff] }
 0x15d   :  { %v1286_v1 = vld [vmem:[#allocation6 + $0x610] sm:$0xff] }
 0x15e   :  { %v4845_v22 = vadd.f32 %v4844_v17, %v2283_v11  ;;  %v1786_v11 = vsub.f32 %v762_v4, %v1274_v5  ;;  %v2297_v17 = vmul.f32 %v1785_v6, %v1785_v6  ;;  %v775_v5 = vld [vmem:[#allocation3 + $0x618] sm:$0xff] }
 0x15f   :  { %v1287_v6 = vld [vmem:[#allocation6 + $0x618] sm:$0xff] }
 0x160   :  { %v4846_v27 = vadd.f32 %v4845_v22, %v2284_v16  ;;  %v1787_v16 = vsub.f32 %v763_v9, %v1275_v10  ;;  %v2298_v22 = vmul.f32 %v1786_v11, %v1786_v11  ;;  %v776_v10 = vld [vmem:[#allocation3 + $0x620] sm:$0xff] }
 0x161   :  { %v1288_v11 = vld [vmem:[#allocation6 + $0x620] sm:$0xff] }
 0x162   :  { %v4847_v32 = vadd.f32 %v4846_v27, %v2285_v21  ;;  %v1788_v21 = vsub.f32 %v764_v14, %v1276_v15  ;;  %v2299_v27 = vmul.f32 %v1787_v16, %v1787_v16  ;;  %v777_v15 = vld [vmem:[#allocation3 + $0x628] sm:$0xff] }
 0x163   :  { %v1289_v16 = vld [vmem:[#allocation6 + $0x628] sm:$0xff] }
 0x164   :  { %v4848_v37 = vadd.f32 %v4847_v32, %v2286_v26  ;;  %v1789_v26 = vsub.f32 %v765_v19, %v1277_v20  ;;  %v2300_v32 = vmul.f32 %v1788_v21, %v1788_v21  ;;  %v778_v20 = vld [vmem:[#allocation3 + $0x630] sm:$0xff] }
 0x165   :  { %v1290_v21 = vld [vmem:[#allocation6 + $0x630] sm:$0xff] }
 0x166   :  { %v4849_v42 = vadd.f32 %v4848_v37, %v2287_v31  ;;  %v1790_v31 = vsub.f32 %v766_v24, %v1278_v25  ;;  %v2301_v37 = vmul.f32 %v1789_v26, %v1789_v26  ;;  %v779_v25 = vld [vmem:[#allocation3 + $0x638] sm:$0xff] }
 0x167   :  { %v1291_v26 = vld [vmem:[#allocation6 + $0x638] sm:$0xff] }
 0x168   :  { %v4850_v47 = vadd.f32 %v4849_v42, %v2288_v36  ;;  %v1791_v36 = vsub.f32 %v767_v29, %v1279_v30  ;;  %v2302_v42 = vmul.f32 %v1790_v31, %v1790_v31  ;;  %v780_v30 = vld [vmem:[#allocation3 + $0x640] sm:$0xff] }
 0x169   :  { %v1292_v31 = vld [vmem:[#allocation6 + $0x640] sm:$0xff] }
 0x16a   :  { %v4851_v52 = vadd.f32 %v4850_v47, %v2289_v41  ;;  %v1792_v41 = vsub.f32 %v768_v34, %v1280_v35  ;;  %v2303_v47 = vmul.f32 %v1791_v36, %v1791_v36  ;;  %v781_v35 = vld [vmem:[#allocation3 + $0x648] sm:$0xff] }
 0x16b   :  { %v1293_v36 = vld [vmem:[#allocation6 + $0x648] sm:$0xff] }
 0x16c   :  { %v4852_v57 = vadd.f32 %v4851_v52, %v2290_v46  ;;  %v1793_v46 = vsub.f32 %v769_v39, %v1281_v40  ;;  %v2304_v52 = vmul.f32 %v1792_v41, %v1792_v41  ;;  %v782_v40 = vld [vmem:[#allocation3 + $0x650] sm:$0xff] }
 0x16d   :  { %v1294_v41 = vld [vmem:[#allocation6 + $0x650] sm:$0xff] }
 0x16e   :  { %v4853_v62 = vadd.f32 %v4852_v57, %v2291_v51  ;;  %v1794_v51 = vsub.f32 %v770_v44, %v1282_v45  ;;  %v2305_v57 = vmul.f32 %v1793_v46, %v1793_v46  ;;  %v783_v45 = vld [vmem:[#allocation3 + $0x658] sm:$0xff] }
 0x16f   :  { %v1295_v46 = vld [vmem:[#allocation6 + $0x658] sm:$0xff] }
 0x170   :  { %v4854_v3 = vadd.f32 %v4853_v62, %v2292_v56  ;;  %v1795_v56 = vsub.f32 %v771_v49, %v1283_v50  ;;  %v2306_v62 = vmul.f32 %v1794_v51, %v1794_v51  ;;  %v784_v50 = vld [vmem:[#allocation3 + $0x660] sm:$0xff] }
 0x171   :  { %v1296_v51 = vld [vmem:[#allocation6 + $0x660] sm:$0xff] }
 0x172   :  { %v4855_v8 = vadd.f32 %v4854_v3, %v2293_v61  ;;  %v1796_v61 = vsub.f32 %v772_v54, %v1284_v55  ;;  %v2307_v3 = vmul.f32 %v1795_v56, %v1795_v56  ;;  %v785_v55 = vld [vmem:[#allocation3 + $0x668] sm:$0xff] }
 0x173   :  { %v1297_v56 = vld [vmem:[#allocation6 + $0x668] sm:$0xff] }
 0x174   :  { %v4856_v13 = vadd.f32 %v4855_v8, %v2294_v2  ;;  %v1797_v2 = vsub.f32 %v773_v59, %v1285_v60  ;;  %v2308_v8 = vmul.f32 %v1796_v61, %v1796_v61  ;;  %v786_v60 = vld [vmem:[#allocation3 + $0x670] sm:$0xff] }
 0x175   :  { %v1298_v61 = vld [vmem:[#allocation6 + $0x670] sm:$0xff] }
 0x176   :  { %v4857_v18 = vadd.f32 %v4856_v13, %v2295_v7  ;;  %v1798_v7 = vsub.f32 %v774_v0, %v1286_v1  ;;  %v2309_v13 = vmul.f32 %v1797_v2, %v1797_v2  ;;  %v787_v1 = vld [vmem:[#allocation3 + $0x678] sm:$0xff] }
 0x177   :  { %v1299_v2 = vld [vmem:[#allocation6 + $0x678] sm:$0xff] }
 0x178   :  { %v4858_v23 = vadd.f32 %v4857_v18, %v2296_v12  ;;  %v1799_v12 = vsub.f32 %v775_v5, %v1287_v6  ;;  %v2310_v18 = vmul.f32 %v1798_v7, %v1798_v7  ;;  %v788_v6 = vld [vmem:[#allocation3 + $0x680] sm:$0xff] }
 0x179   :  { %v1300_v7 = vld [vmem:[#allocation6 + $0x680] sm:$0xff] }
 0x17a   :  { %v4859_v28 = vadd.f32 %v4858_v23, %v2297_v17  ;;  %v1800_v17 = vsub.f32 %v776_v10, %v1288_v11  ;;  %v2311_v23 = vmul.f32 %v1799_v12, %v1799_v12  ;;  %v789_v11 = vld [vmem:[#allocation3 + $0x688] sm:$0xff] }
 0x17b   :  { %v1301_v12 = vld [vmem:[#allocation6 + $0x688] sm:$0xff] }
 0x17c   :  { %v4860_v33 = vadd.f32 %v4859_v28, %v2298_v22  ;;  %v1801_v22 = vsub.f32 %v777_v15, %v1289_v16  ;;  %v2312_v28 = vmul.f32 %v1800_v17, %v1800_v17  ;;  %v790_v16 = vld [vmem:[#allocation3 + $0x690] sm:$0xff] }
 0x17d   :  { %v1302_v17 = vld [vmem:[#allocation6 + $0x690] sm:$0xff] }
 0x17e   :  { %v4861_v38 = vadd.f32 %v4860_v33, %v2299_v27  ;;  %v1802_v27 = vsub.f32 %v778_v20, %v1290_v21  ;;  %v2313_v33 = vmul.f32 %v1801_v22, %v1801_v22  ;;  %v791_v21 = vld [vmem:[#allocation3 + $0x698] sm:$0xff] }
 0x17f   :  { %v1303_v22 = vld [vmem:[#allocation6 + $0x698] sm:$0xff] }
 0x180   :  { %v4862_v43 = vadd.f32 %v4861_v38, %v2300_v32  ;;  %v1803_v32 = vsub.f32 %v779_v25, %v1291_v26  ;;  %v2314_v38 = vmul.f32 %v1802_v27, %v1802_v27  ;;  %v792_v26 = vld [vmem:[#allocation3 + $0x6a0] sm:$0xff] }
 0x181   :  { %v1304_v27 = vld [vmem:[#allocation6 + $0x6a0] sm:$0xff] }
 0x182   :  { %v4863_v48 = vadd.f32 %v4862_v43, %v2301_v37  ;;  %v1804_v37 = vsub.f32 %v780_v30, %v1292_v31  ;;  %v2315_v43 = vmul.f32 %v1803_v32, %v1803_v32  ;;  %v793_v31 = vld [vmem:[#allocation3 + $0x6a8] sm:$0xff] }
 0x183   :  { %v1305_v32 = vld [vmem:[#allocation6 + $0x6a8] sm:$0xff] }
 0x184   :  { %v4864_v53 = vadd.f32 %v4863_v48, %v2302_v42  ;;  %v1805_v42 = vsub.f32 %v781_v35, %v1293_v36  ;;  %v2316_v48 = vmul.f32 %v1804_v37, %v1804_v37  ;;  %v794_v36 = vld [vmem:[#allocation3 + $0x6b0] sm:$0xff] }
 0x185   :  { %v1306_v37 = vld [vmem:[#allocation6 + $0x6b0] sm:$0xff] }
 0x186   :  { %v4865_v58 = vadd.f32 %v4864_v53, %v2303_v47  ;;  %v1806_v47 = vsub.f32 %v782_v40, %v1294_v41  ;;  %v2317_v53 = vmul.f32 %v1805_v42, %v1805_v42  ;;  %v795_v41 = vld [vmem:[#allocation3 + $0x6b8] sm:$0xff] }
 0x187   :  { %v1307_v42 = vld [vmem:[#allocation6 + $0x6b8] sm:$0xff] }
 0x188   :  { %v4866_v63 = vadd.f32 %v4865_v58, %v2304_v52  ;;  %v1807_v52 = vsub.f32 %v783_v45, %v1295_v46  ;;  %v2318_v58 = vmul.f32 %v1806_v47, %v1806_v47  ;;  %v796_v46 = vld [vmem:[#allocation3 + $0x6c0] sm:$0xff] }
 0x189   :  { %v1308_v47 = vld [vmem:[#allocation6 + $0x6c0] sm:$0xff] }
 0x18a   :  { %v4867_v4 = vadd.f32 %v4866_v63, %v2305_v57  ;;  %v1808_v57 = vsub.f32 %v784_v50, %v1296_v51  ;;  %v2319_v63 = vmul.f32 %v1807_v52, %v1807_v52  ;;  %v797_v51 = vld [vmem:[#allocation3 + $0x6c8] sm:$0xff] }
 0x18b   :  { %v1309_v52 = vld [vmem:[#allocation6 + $0x6c8] sm:$0xff] }
 0x18c   :  { %v4868_v9 = vadd.f32 %v4867_v4, %v2306_v62  ;;  %v1809_v62 = vsub.f32 %v785_v55, %v1297_v56  ;;  %v2320_v4 = vmul.f32 %v1808_v57, %v1808_v57  ;;  %v798_v56 = vld [vmem:[#allocation3 + $0x6d0] sm:$0xff] }
 0x18d   :  { %v1310_v57 = vld [vmem:[#allocation6 + $0x6d0] sm:$0xff] }
 0x18e   :  { %v4869_v14 = vadd.f32 %v4868_v9, %v2307_v3  ;;  %v1810_v3 = vsub.f32 %v786_v60, %v1298_v61  ;;  %v2321_v9 = vmul.f32 %v1809_v62, %v1809_v62  ;;  %v799_v61 = vld [vmem:[#allocation3 + $0x6d8] sm:$0xff] }
 0x18f   :  { %v1311_v62 = vld [vmem:[#allocation6 + $0x6d8] sm:$0xff] }
 0x190   :  { %v4870_v19 = vadd.f32 %v4869_v14, %v2308_v8  ;;  %v1811_v8 = vsub.f32 %v787_v1, %v1299_v2  ;;  %v2322_v14 = vmul.f32 %v1810_v3, %v1810_v3  ;;  %v800_v2 = vld [vmem:[#allocation3 + $0x6e0] sm:$0xff] }
 0x191   :  { %v1312_v3 = vld [vmem:[#allocation6 + $0x6e0] sm:$0xff] }
 0x192   :  { %v4871_v24 = vadd.f32 %v4870_v19, %v2309_v13  ;;  %v1812_v13 = vsub.f32 %v788_v6, %v1300_v7  ;;  %v2323_v19 = vmul.f32 %v1811_v8, %v1811_v8  ;;  %v801_v7 = vld [vmem:[#allocation3 + $0x6e8] sm:$0xff] }
 0x193   :  { %v1313_v8 = vld [vmem:[#allocation6 + $0x6e8] sm:$0xff] }
 0x194   :  { %v4872_v29 = vadd.f32 %v4871_v24, %v2310_v18  ;;  %v1813_v18 = vsub.f32 %v789_v11, %v1301_v12  ;;  %v2324_v24 = vmul.f32 %v1812_v13, %v1812_v13  ;;  %v802_v12 = vld [vmem:[#allocation3 + $0x6f0] sm:$0xff] }
 0x195   :  { %v1314_v13 = vld [vmem:[#allocation6 + $0x6f0] sm:$0xff] }
 0x196   :  { %v4873_v34 = vadd.f32 %v4872_v29, %v2311_v23  ;;  %v1814_v23 = vsub.f32 %v790_v16, %v1302_v17  ;;  %v2325_v29 = vmul.f32 %v1813_v18, %v1813_v18  ;;  %v803_v17 = vld [vmem:[#allocation3 + $0x6f8] sm:$0xff] }
 0x197   :  { %v1315_v18 = vld [vmem:[#allocation6 + $0x6f8] sm:$0xff] }
 0x198   :  { %v4874_v39 = vadd.f32 %v4873_v34, %v2312_v28  ;;  %v1815_v28 = vsub.f32 %v791_v21, %v1303_v22  ;;  %v2326_v34 = vmul.f32 %v1814_v23, %v1814_v23  ;;  %v804_v22 = vld [vmem:[#allocation3 + $0x700] sm:$0xff] }
 0x199   :  { %v1316_v23 = vld [vmem:[#allocation6 + $0x700] sm:$0xff] }
 0x19a   :  { %v4875_v44 = vadd.f32 %v4874_v39, %v2313_v33  ;;  %v1816_v33 = vsub.f32 %v792_v26, %v1304_v27  ;;  %v2327_v39 = vmul.f32 %v1815_v28, %v1815_v28  ;;  %v805_v27 = vld [vmem:[#allocation3 + $0x708] sm:$0xff] }
 0x19b   :  { %v1317_v28 = vld [vmem:[#allocation6 + $0x708] sm:$0xff] }
 0x19c   :  { %v4876_v49 = vadd.f32 %v4875_v44, %v2314_v38  ;;  %v1817_v38 = vsub.f32 %v793_v31, %v1305_v32  ;;  %v2328_v44 = vmul.f32 %v1816_v33, %v1816_v33  ;;  %v806_v32 = vld [vmem:[#allocation3 + $0x710] sm:$0xff] }
 0x19d   :  { %v1318_v33 = vld [vmem:[#allocation6 + $0x710] sm:$0xff] }
 0x19e   :  { %v4877_v54 = vadd.f32 %v4876_v49, %v2315_v43  ;;  %v1818_v43 = vsub.f32 %v794_v36, %v1306_v37  ;;  %v2329_v49 = vmul.f32 %v1817_v38, %v1817_v38  ;;  %v807_v37 = vld [vmem:[#allocation3 + $0x718] sm:$0xff] }
 0x19f   :  { %v1319_v38 = vld [vmem:[#allocation6 + $0x718] sm:$0xff] }
 0x1a0   :  { %v4878_v59 = vadd.f32 %v4877_v54, %v2316_v48  ;;  %v1819_v48 = vsub.f32 %v795_v41, %v1307_v42  ;;  %v2330_v54 = vmul.f32 %v1818_v43, %v1818_v43  ;;  %v808_v42 = vld [vmem:[#allocation3 + $0x720] sm:$0xff] }
 0x1a1   :  { %v1320_v43 = vld [vmem:[#allocation6 + $0x720] sm:$0xff] }
 0x1a2   :  { %v4879_v0 = vadd.f32 %v4878_v59, %v2317_v53  ;;  %v1820_v53 = vsub.f32 %v796_v46, %v1308_v47  ;;  %v2331_v59 = vmul.f32 %v1819_v48, %v1819_v48  ;;  %v809_v47 = vld [vmem:[#allocation3 + $0x728] sm:$0xff] }
 0x1a3   :  { %v1321_v48 = vld [vmem:[#allocation6 + $0x728] sm:$0xff] }
 0x1a4   :  { %v4880_v5 = vadd.f32 %v4879_v0, %v2318_v58  ;;  %v1821_v58 = vsub.f32 %v797_v51, %v1309_v52  ;;  %v2332_v0 = vmul.f32 %v1820_v53, %v1820_v53  ;;  %v810_v52 = vld [vmem:[#allocation3 + $0x730] sm:$0xff] }
 0x1a5   :  { %v1322_v53 = vld [vmem:[#allocation6 + $0x730] sm:$0xff] }
 0x1a6   :  { %v4881_v10 = vadd.f32 %v4880_v5, %v2319_v63  ;;  %v1822_v63 = vsub.f32 %v798_v56, %v1310_v57  ;;  %v2333_v5 = vmul.f32 %v1821_v58, %v1821_v58  ;;  %v811_v57 = vld [vmem:[#allocation3 + $0x738] sm:$0xff] }
 0x1a7   :  { %v1323_v58 = vld [vmem:[#allocation6 + $0x738] sm:$0xff] }
 0x1a8   :  { %v4882_v15 = vadd.f32 %v4881_v10, %v2320_v4  ;;  %v1823_v4 = vsub.f32 %v799_v61, %v1311_v62  ;;  %v2334_v10 = vmul.f32 %v1822_v63, %v1822_v63  ;;  %v812_v62 = vld [vmem:[#allocation3 + $0x740] sm:$0xff] }
 0x1a9   :  { %v1324_v63 = vld [vmem:[#allocation6 + $0x740] sm:$0xff] }
 0x1aa   :  { %v4883_v20 = vadd.f32 %v4882_v15, %v2321_v9  ;;  %v1824_v9 = vsub.f32 %v800_v2, %v1312_v3  ;;  %v2335_v15 = vmul.f32 %v1823_v4, %v1823_v4  ;;  %v813_v3 = vld [vmem:[#allocation3 + $0x748] sm:$0xff] }
 0x1ab   :  { %v1325_v4 = vld [vmem:[#allocation6 + $0x748] sm:$0xff] }
 0x1ac   :  { %v4884_v25 = vadd.f32 %v4883_v20, %v2322_v14  ;;  %v1825_v14 = vsub.f32 %v801_v7, %v1313_v8  ;;  %v2336_v20 = vmul.f32 %v1824_v9, %v1824_v9  ;;  %v814_v8 = vld [vmem:[#allocation3 + $0x750] sm:$0xff] }
 0x1ad   :  { %v1326_v9 = vld [vmem:[#allocation6 + $0x750] sm:$0xff] }
 0x1ae   :  { %v4885_v30 = vadd.f32 %v4884_v25, %v2323_v19  ;;  %v1826_v19 = vsub.f32 %v802_v12, %v1314_v13  ;;  %v2337_v25 = vmul.f32 %v1825_v14, %v1825_v14  ;;  %v815_v13 = vld [vmem:[#allocation3 + $0x758] sm:$0xff] }
 0x1af   :  { %v1327_v14 = vld [vmem:[#allocation6 + $0x758] sm:$0xff] }
 0x1b0   :  { %v4886_v35 = vadd.f32 %v4885_v30, %v2324_v24  ;;  %v1827_v24 = vsub.f32 %v803_v17, %v1315_v18  ;;  %v2338_v30 = vmul.f32 %v1826_v19, %v1826_v19  ;;  %v816_v18 = vld [vmem:[#allocation3 + $0x760] sm:$0xff] }
 0x1b1   :  { %v1328_v19 = vld [vmem:[#allocation6 + $0x760] sm:$0xff] }
 0x1b2   :  { %v4887_v40 = vadd.f32 %v4886_v35, %v2325_v29  ;;  %v1828_v29 = vsub.f32 %v804_v22, %v1316_v23  ;;  %v2339_v35 = vmul.f32 %v1827_v24, %v1827_v24  ;;  %v817_v23 = vld [vmem:[#allocation3 + $0x768] sm:$0xff] }
 0x1b3   :  { %v1329_v24 = vld [vmem:[#allocation6 + $0x768] sm:$0xff] }
 0x1b4   :  { %v4888_v45 = vadd.f32 %v4887_v40, %v2326_v34  ;;  %v1829_v34 = vsub.f32 %v805_v27, %v1317_v28  ;;  %v2340_v40 = vmul.f32 %v1828_v29, %v1828_v29  ;;  %v818_v28 = vld [vmem:[#allocation3 + $0x770] sm:$0xff] }
 0x1b5   :  { %v1330_v29 = vld [vmem:[#allocation6 + $0x770] sm:$0xff] }
 0x1b6   :  { %v4889_v50 = vadd.f32 %v4888_v45, %v2327_v39  ;;  %v1830_v39 = vsub.f32 %v806_v32, %v1318_v33  ;;  %v2341_v45 = vmul.f32 %v1829_v34, %v1829_v34  ;;  %v819_v33 = vld [vmem:[#allocation3 + $0x778] sm:$0xff] }
 0x1b7   :  { %v1331_v34 = vld [vmem:[#allocation6 + $0x778] sm:$0xff] }
 0x1b8   :  { %v4890_v55 = vadd.f32 %v4889_v50, %v2328_v44  ;;  %v1831_v44 = vsub.f32 %v807_v37, %v1319_v38  ;;  %v2342_v50 = vmul.f32 %v1830_v39, %v1830_v39  ;;  %v820_v38 = vld [vmem:[#allocation3 + $0x780] sm:$0xff] }
 0x1b9   :  { %v1332_v39 = vld [vmem:[#allocation6 + $0x780] sm:$0xff] }
 0x1ba   :  { %v4891_v60 = vadd.f32 %v4890_v55, %v2329_v49  ;;  %v1832_v49 = vsub.f32 %v808_v42, %v1320_v43  ;;  %v2343_v55 = vmul.f32 %v1831_v44, %v1831_v44  ;;  %v821_v43 = vld [vmem:[#allocation3 + $0x788] sm:$0xff] }
 0x1bb   :  { %v1333_v44 = vld [vmem:[#allocation6 + $0x788] sm:$0xff] }
 0x1bc   :  { %v4892_v1 = vadd.f32 %v4891_v60, %v2330_v54  ;;  %v1833_v54 = vsub.f32 %v809_v47, %v1321_v48  ;;  %v2344_v60 = vmul.f32 %v1832_v49, %v1832_v49  ;;  %v822_v48 = vld [vmem:[#allocation3 + $0x790] sm:$0xff] }
 0x1bd   :  { %v1334_v49 = vld [vmem:[#allocation6 + $0x790] sm:$0xff] }
 0x1be   :  { %v4893_v6 = vadd.f32 %v4892_v1, %v2331_v59  ;;  %v1834_v59 = vsub.f32 %v810_v52, %v1322_v53  ;;  %v2345_v1 = vmul.f32 %v1833_v54, %v1833_v54  ;;  %v823_v53 = vld [vmem:[#allocation3 + $0x798] sm:$0xff] }
 0x1bf   :  { %v1335_v54 = vld [vmem:[#allocation6 + $0x798] sm:$0xff] }
 0x1c0   :  { %v4894_v11 = vadd.f32 %v4893_v6, %v2332_v0  ;;  %v1835_v0 = vsub.f32 %v811_v57, %v1323_v58  ;;  %v2346_v6 = vmul.f32 %v1834_v59, %v1834_v59  ;;  %v824_v58 = vld [vmem:[#allocation3 + $0x7a0] sm:$0xff] }
 0x1c1   :  { %v1336_v59 = vld [vmem:[#allocation6 + $0x7a0] sm:$0xff] }
 0x1c2   :  { %v4895_v16 = vadd.f32 %v4894_v11, %v2333_v5  ;;  %v1836_v5 = vsub.f32 %v812_v62, %v1324_v63  ;;  %v2347_v11 = vmul.f32 %v1835_v0, %v1835_v0  ;;  %v825_v63 = vld [vmem:[#allocation3 + $0x7a8] sm:$0xff] }
 0x1c3   :  { %v1337_v0 = vld [vmem:[#allocation6 + $0x7a8] sm:$0xff] }
 0x1c4   :  { %v4896_v21 = vadd.f32 %v4895_v16, %v2334_v10  ;;  %v1837_v10 = vsub.f32 %v813_v3, %v1325_v4  ;;  %v2348_v16 = vmul.f32 %v1836_v5, %v1836_v5  ;;  %v826_v4 = vld [vmem:[#allocation3 + $0x7b0] sm:$0xff] }
 0x1c5   :  { %v1338_v5 = vld [vmem:[#allocation6 + $0x7b0] sm:$0xff] }
 0x1c6   :  { %v4897_v26 = vadd.f32 %v4896_v21, %v2335_v15  ;;  %v1838_v15 = vsub.f32 %v814_v8, %v1326_v9  ;;  %v2349_v21 = vmul.f32 %v1837_v10, %v1837_v10  ;;  %v827_v9 = vld [vmem:[#allocation3 + $0x7b8] sm:$0xff] }
 0x1c7   :  { %v1339_v10 = vld [vmem:[#allocation6 + $0x7b8] sm:$0xff] }
 0x1c8   :  { %v4898_v31 = vadd.f32 %v4897_v26, %v2336_v20  ;;  %v1839_v20 = vsub.f32 %v815_v13, %v1327_v14  ;;  %v2350_v26 = vmul.f32 %v1838_v15, %v1838_v15  ;;  %v828_v14 = vld [vmem:[#allocation3 + $0x7c0] sm:$0xff] }
 0x1c9   :  { %v1340_v15 = vld [vmem:[#allocation6 + $0x7c0] sm:$0xff] }
 0x1ca   :  { %v4899_v36 = vadd.f32 %v4898_v31, %v2337_v25  ;;  %v1840_v25 = vsub.f32 %v816_v18, %v1328_v19  ;;  %v2351_v31 = vmul.f32 %v1839_v20, %v1839_v20  ;;  %v829_v19 = vld [vmem:[#allocation3 + $0x7c8] sm:$0xff] }
 0x1cb   :  { %v1341_v20 = vld [vmem:[#allocation6 + $0x7c8] sm:$0xff] }
 0x1cc   :  { %v4900_v41 = vadd.f32 %v4899_v36, %v2338_v30  ;;  %v1841_v30 = vsub.f32 %v817_v23, %v1329_v24  ;;  %v2352_v36 = vmul.f32 %v1840_v25, %v1840_v25  ;;  %v830_v24 = vld [vmem:[#allocation3 + $0x7d0] sm:$0xff] }
 0x1cd   :  { %v1342_v25 = vld [vmem:[#allocation6 + $0x7d0] sm:$0xff] }
 0x1ce   :  { %v4901_v46 = vadd.f32 %v4900_v41, %v2339_v35  ;;  %v1842_v35 = vsub.f32 %v818_v28, %v1330_v29  ;;  %v2353_v41 = vmul.f32 %v1841_v30, %v1841_v30  ;;  %v831_v29 = vld [vmem:[#allocation3 + $0x7d8] sm:$0xff] }
 0x1cf   :  { %v1343_v30 = vld [vmem:[#allocation6 + $0x7d8] sm:$0xff] }
 0x1d0   :  { %v4902_v51 = vadd.f32 %v4901_v46, %v2340_v40  ;;  %v1843_v40 = vsub.f32 %v819_v33, %v1331_v34  ;;  %v2354_v46 = vmul.f32 %v1842_v35, %v1842_v35  ;;  %v832_v34 = vld [vmem:[#allocation3 + $0x7e0] sm:$0xff] }
 0x1d1   :  { %v1344_v35 = vld [vmem:[#allocation6 + $0x7e0] sm:$0xff] }
 0x1d2   :  { %v4903_v56 = vadd.f32 %v4902_v51, %v2341_v45  ;;  %v1844_v45 = vsub.f32 %v820_v38, %v1332_v39  ;;  %v2355_v51 = vmul.f32 %v1843_v40, %v1843_v40  ;;  %v833_v39 = vld [vmem:[#allocation3 + $0x7e8] sm:$0xff] }
 0x1d3   :  { %v1345_v40 = vld [vmem:[#allocation6 + $0x7e8] sm:$0xff] }
 0x1d4   :  { %v4904_v61 = vadd.f32 %v4903_v56, %v2342_v50  ;;  %v1845_v50 = vsub.f32 %v821_v43, %v1333_v44  ;;  %v2356_v56 = vmul.f32 %v1844_v45, %v1844_v45  ;;  %v834_v44 = vld [vmem:[#allocation3 + $0x7f0] sm:$0xff] }
 0x1d5   :  { %v1346_v45 = vld [vmem:[#allocation6 + $0x7f0] sm:$0xff] }
 0x1d6   :  { %v4905_v2 = vadd.f32 %v4904_v61, %v2343_v55  ;;  %v1846_v55 = vsub.f32 %v822_v48, %v1334_v49  ;;  %v2357_v61 = vmul.f32 %v1845_v50, %v1845_v50  ;;  %v835_v49 = vld [vmem:[#allocation3 + $0x7f8] sm:$0xff] }
 0x1d7   :  { %v1347_v50 = vld [vmem:[#allocation6 + $0x7f8] sm:$0xff] }
 0x1d8   :  { %v4906_v7 = vadd.f32 %v4905_v2, %v2344_v60  ;;  %v1847_v60 = vsub.f32 %v823_v53, %v1335_v54  ;;  %v2358_v2 = vmul.f32 %v1846_v55, %v1846_v55  ;;  %v836_v54 = vld [vmem:[#allocation3 + $0x800] sm:$0xff] }
 0x1d9   :  { %v1348_v55 = vld [vmem:[#allocation6 + $0x800] sm:$0xff] }
 0x1da   :  { %v4907_v12 = vadd.f32 %v4906_v7, %v2345_v1  ;;  %v1848_v1 = vsub.f32 %v824_v58, %v1336_v59  ;;  %v2359_v7 = vmul.f32 %v1847_v60, %v1847_v60  ;;  %v837_v59 = vld [vmem:[#allocation3 + $0x808] sm:$0xff] }
 0x1db   :  { %v1349_v60 = vld [vmem:[#allocation6 + $0x808] sm:$0xff] }
 0x1dc   :  { %v4908_v17 = vadd.f32 %v4907_v12, %v2346_v6  ;;  %v1849_v6 = vsub.f32 %v825_v63, %v1337_v0  ;;  %v2360_v12 = vmul.f32 %v1848_v1, %v1848_v1  ;;  %v838_v0 = vld [vmem:[#allocation3 + $0x810] sm:$0xff] }
 0x1dd   :  { %v1350_v1 = vld [vmem:[#allocation6 + $0x810] sm:$0xff] }
 0x1de   :  { %v4909_v22 = vadd.f32 %v4908_v17, %v2347_v11  ;;  %v1850_v11 = vsub.f32 %v826_v4, %v1338_v5  ;;  %v2361_v17 = vmul.f32 %v1849_v6, %v1849_v6  ;;  %v839_v5 = vld [vmem:[#allocation3 + $0x818] sm:$0xff] }
 0x1df   :  { %v1351_v6 = vld [vmem:[#allocation6 + $0x818] sm:$0xff] }
 0x1e0   :  { %v4910_v27 = vadd.f32 %v4909_v22, %v2348_v16  ;;  %v1851_v16 = vsub.f32 %v827_v9, %v1339_v10  ;;  %v2362_v22 = vmul.f32 %v1850_v11, %v1850_v11  ;;  %v840_v10 = vld [vmem:[#allocation3 + $0x820] sm:$0xff] }
 0x1e1   :  { %v1352_v11 = vld [vmem:[#allocation6 + $0x820] sm:$0xff] }
 0x1e2   :  { %v4911_v32 = vadd.f32 %v4910_v27, %v2349_v21  ;;  %v1852_v21 = vsub.f32 %v828_v14, %v1340_v15  ;;  %v2363_v27 = vmul.f32 %v1851_v16, %v1851_v16  ;;  %v841_v15 = vld [vmem:[#allocation3 + $0x828] sm:$0xff] }
 0x1e3   :  { %v1353_v16 = vld [vmem:[#allocation6 + $0x828] sm:$0xff] }
 0x1e4   :  { %v4912_v37 = vadd.f32 %v4911_v32, %v2350_v26  ;;  %v1853_v26 = vsub.f32 %v829_v19, %v1341_v20  ;;  %v2364_v32 = vmul.f32 %v1852_v21, %v1852_v21  ;;  %v842_v20 = vld [vmem:[#allocation3 + $0x830] sm:$0xff] }
 0x1e5   :  { %v1354_v21 = vld [vmem:[#allocation6 + $0x830] sm:$0xff] }
 0x1e6   :  { %v4913_v42 = vadd.f32 %v4912_v37, %v2351_v31  ;;  %v1854_v31 = vsub.f32 %v830_v24, %v1342_v25  ;;  %v2365_v37 = vmul.f32 %v1853_v26, %v1853_v26  ;;  %v843_v25 = vld [vmem:[#allocation3 + $0x838] sm:$0xff] }
 0x1e7   :  { %v1355_v26 = vld [vmem:[#allocation6 + $0x838] sm:$0xff] }
 0x1e8   :  { %v4914_v47 = vadd.f32 %v4913_v42, %v2352_v36  ;;  %v1855_v36 = vsub.f32 %v831_v29, %v1343_v30  ;;  %v2366_v42 = vmul.f32 %v1854_v31, %v1854_v31  ;;  %v844_v30 = vld [vmem:[#allocation3 + $0x840] sm:$0xff] }
 0x1e9   :  { %v1356_v31 = vld [vmem:[#allocation6 + $0x840] sm:$0xff] }
 0x1ea   :  { %v4915_v52 = vadd.f32 %v4914_v47, %v2353_v41  ;;  %v1856_v41 = vsub.f32 %v832_v34, %v1344_v35  ;;  %v2367_v47 = vmul.f32 %v1855_v36, %v1855_v36  ;;  %v845_v35 = vld [vmem:[#allocation3 + $0x848] sm:$0xff] }
 0x1eb   :  { %v1357_v36 = vld [vmem:[#allocation6 + $0x848] sm:$0xff] }
 0x1ec   :  { %v4916_v57 = vadd.f32 %v4915_v52, %v2354_v46  ;;  %v1857_v46 = vsub.f32 %v833_v39, %v1345_v40  ;;  %v2368_v52 = vmul.f32 %v1856_v41, %v1856_v41  ;;  %v846_v40 = vld [vmem:[#allocation3 + $0x850] sm:$0xff] }
 0x1ed   :  { %v1358_v41 = vld [vmem:[#allocation6 + $0x850] sm:$0xff] }
 0x1ee   :  { %v4917_v62 = vadd.f32 %v4916_v57, %v2355_v51  ;;  %v1858_v51 = vsub.f32 %v834_v44, %v1346_v45  ;;  %v2369_v57 = vmul.f32 %v1857_v46, %v1857_v46  ;;  %v847_v45 = vld [vmem:[#allocation3 + $0x858] sm:$0xff] }
 0x1ef   :  { %v1359_v46 = vld [vmem:[#allocation6 + $0x858] sm:$0xff] }
 0x1f0   :  { %v4918_v3 = vadd.f32 %v4917_v62, %v2356_v56  ;;  %v1859_v56 = vsub.f32 %v835_v49, %v1347_v50  ;;  %v2370_v62 = vmul.f32 %v1858_v51, %v1858_v51  ;;  %v848_v50 = vld [vmem:[#allocation3 + $0x860] sm:$0xff] }
 0x1f1   :  { %v1360_v51 = vld [vmem:[#allocation6 + $0x860] sm:$0xff] }
 0x1f2   :  { %v4919_v8 = vadd.f32 %v4918_v3, %v2357_v61  ;;  %v1860_v61 = vsub.f32 %v836_v54, %v1348_v55  ;;  %v2371_v3 = vmul.f32 %v1859_v56, %v1859_v56  ;;  %v849_v55 = vld [vmem:[#allocation3 + $0x868] sm:$0xff] }
 0x1f3   :  { %v1361_v56 = vld [vmem:[#allocation6 + $0x868] sm:$0xff] }
 0x1f4   :  { %v4920_v13 = vadd.f32 %v4919_v8, %v2358_v2  ;;  %v1861_v2 = vsub.f32 %v837_v59, %v1349_v60  ;;  %v2372_v8 = vmul.f32 %v1860_v61, %v1860_v61  ;;  %v850_v60 = vld [vmem:[#allocation3 + $0x870] sm:$0xff] }
 0x1f5   :  { %v1362_v61 = vld [vmem:[#allocation6 + $0x870] sm:$0xff] }
 0x1f6   :  { %v4921_v18 = vadd.f32 %v4920_v13, %v2359_v7  ;;  %v1862_v7 = vsub.f32 %v838_v0, %v1350_v1  ;;  %v2373_v13 = vmul.f32 %v1861_v2, %v1861_v2  ;;  %v851_v1 = vld [vmem:[#allocation3 + $0x878] sm:$0xff] }
 0x1f7   :  { %v1363_v2 = vld [vmem:[#allocation6 + $0x878] sm:$0xff] }
 0x1f8   :  { %v4922_v23 = vadd.f32 %v4921_v18, %v2360_v12  ;;  %v1863_v12 = vsub.f32 %v839_v5, %v1351_v6  ;;  %v2374_v18 = vmul.f32 %v1862_v7, %v1862_v7  ;;  %v852_v6 = vld [vmem:[#allocation3 + $0x880] sm:$0xff] }
 0x1f9   :  { %v1364_v7 = vld [vmem:[#allocation6 + $0x880] sm:$0xff] }
 0x1fa   :  { %v4923_v28 = vadd.f32 %v4922_v23, %v2361_v17  ;;  %v1864_v17 = vsub.f32 %v840_v10, %v1352_v11  ;;  %v2375_v23 = vmul.f32 %v1863_v12, %v1863_v12  ;;  %v853_v11 = vld [vmem:[#allocation3 + $0x888] sm:$0xff] }
 0x1fb   :  { %v1365_v12 = vld [vmem:[#allocation6 + $0x888] sm:$0xff] }
 0x1fc   :  { %v4924_v33 = vadd.f32 %v4923_v28, %v2362_v22  ;;  %v1865_v22 = vsub.f32 %v841_v15, %v1353_v16  ;;  %v2376_v28 = vmul.f32 %v1864_v17, %v1864_v17  ;;  %v854_v16 = vld [vmem:[#allocation3 + $0x890] sm:$0xff] }
 0x1fd   :  { %v1366_v17 = vld [vmem:[#allocation6 + $0x890] sm:$0xff] }
 0x1fe   :  { %v4925_v38 = vadd.f32 %v4924_v33, %v2363_v27  ;;  %v1866_v27 = vsub.f32 %v842_v20, %v1354_v21  ;;  %v2377_v33 = vmul.f32 %v1865_v22, %v1865_v22  ;;  %v855_v21 = vld [vmem:[#allocation3 + $0x898] sm:$0xff] }
 0x1ff   :  { %v1367_v22 = vld [vmem:[#allocation6 + $0x898] sm:$0xff] }
 0x200   :  { %v4926_v43 = vadd.f32 %v4925_v38, %v2364_v32  ;;  %v1867_v32 = vsub.f32 %v843_v25, %v1355_v26  ;;  %v2378_v38 = vmul.f32 %v1866_v27, %v1866_v27  ;;  %v856_v26 = vld [vmem:[#allocation3 + $0x8a0] sm:$0xff] }
 0x201   :  { %v1368_v27 = vld [vmem:[#allocation6 + $0x8a0] sm:$0xff] }
 0x202   :  { %v4927_v48 = vadd.f32 %v4926_v43, %v2365_v37  ;;  %v1868_v37 = vsub.f32 %v844_v30, %v1356_v31  ;;  %v2379_v43 = vmul.f32 %v1867_v32, %v1867_v32  ;;  %v857_v31 = vld [vmem:[#allocation3 + $0x8a8] sm:$0xff] }
 0x203   :  { %v1369_v32 = vld [vmem:[#allocation6 + $0x8a8] sm:$0xff] }
 0x204   :  { %v4928_v53 = vadd.f32 %v4927_v48, %v2366_v42  ;;  %v1869_v42 = vsub.f32 %v845_v35, %v1357_v36  ;;  %v2380_v48 = vmul.f32 %v1868_v37, %v1868_v37  ;;  %v858_v36 = vld [vmem:[#allocation3 + $0x8b0] sm:$0xff] }
 0x205   :  { %v1370_v37 = vld [vmem:[#allocation6 + $0x8b0] sm:$0xff] }
 0x206   :  { %v4929_v58 = vadd.f32 %v4928_v53, %v2367_v47  ;;  %v1870_v47 = vsub.f32 %v846_v40, %v1358_v41  ;;  %v2381_v53 = vmul.f32 %v1869_v42, %v1869_v42  ;;  %v859_v41 = vld [vmem:[#allocation3 + $0x8b8] sm:$0xff] }
 0x207   :  { %v1371_v42 = vld [vmem:[#allocation6 + $0x8b8] sm:$0xff] }
 0x208   :  { %v4930_v63 = vadd.f32 %v4929_v58, %v2368_v52  ;;  %v1871_v52 = vsub.f32 %v847_v45, %v1359_v46  ;;  %v2382_v58 = vmul.f32 %v1870_v47, %v1870_v47  ;;  %v860_v46 = vld [vmem:[#allocation3 + $0x8c0] sm:$0xff] }
 0x209   :  { %v1372_v47 = vld [vmem:[#allocation6 + $0x8c0] sm:$0xff] }
 0x20a   :  { %v4931_v4 = vadd.f32 %v4930_v63, %v2369_v57  ;;  %v1872_v57 = vsub.f32 %v848_v50, %v1360_v51  ;;  %v2383_v63 = vmul.f32 %v1871_v52, %v1871_v52  ;;  %v861_v51 = vld [vmem:[#allocation3 + $0x8c8] sm:$0xff] }
 0x20b   :  { %v1373_v52 = vld [vmem:[#allocation6 + $0x8c8] sm:$0xff] }
 0x20c   :  { %v4932_v9 = vadd.f32 %v4931_v4, %v2370_v62  ;;  %v1873_v62 = vsub.f32 %v849_v55, %v1361_v56  ;;  %v2384_v4 = vmul.f32 %v1872_v57, %v1872_v57  ;;  %v862_v56 = vld [vmem:[#allocation3 + $0x8d0] sm:$0xff] }
 0x20d   :  { %v1374_v57 = vld [vmem:[#allocation6 + $0x8d0] sm:$0xff] }
 0x20e   :  { %v4933_v14 = vadd.f32 %v4932_v9, %v2371_v3  ;;  %v1874_v3 = vsub.f32 %v850_v60, %v1362_v61  ;;  %v2385_v9 = vmul.f32 %v1873_v62, %v1873_v62  ;;  %v863_v61 = vld [vmem:[#allocation3 + $0x8d8] sm:$0xff] }
 0x20f   :  { %v1375_v62 = vld [vmem:[#allocation6 + $0x8d8] sm:$0xff] }
 0x210   :  { %v4934_v19 = vadd.f32 %v4933_v14, %v2372_v8  ;;  %v1875_v8 = vsub.f32 %v851_v1, %v1363_v2  ;;  %v2386_v14 = vmul.f32 %v1874_v3, %v1874_v3  ;;  %v864_v2 = vld [vmem:[#allocation3 + $0x8e0] sm:$0xff] }
 0x211   :  { %v1376_v3 = vld [vmem:[#allocation6 + $0x8e0] sm:$0xff] }
 0x212   :  { %v4935_v24 = vadd.f32 %v4934_v19, %v2373_v13  ;;  %v1876_v13 = vsub.f32 %v852_v6, %v1364_v7  ;;  %v2387_v19 = vmul.f32 %v1875_v8, %v1875_v8  ;;  %v865_v7 = vld [vmem:[#allocation3 + $0x8e8] sm:$0xff] }
 0x213   :  { %v1377_v8 = vld [vmem:[#allocation6 + $0x8e8] sm:$0xff] }
 0x214   :  { %v4936_v29 = vadd.f32 %v4935_v24, %v2374_v18  ;;  %v1877_v18 = vsub.f32 %v853_v11, %v1365_v12  ;;  %v2388_v24 = vmul.f32 %v1876_v13, %v1876_v13  ;;  %v866_v12 = vld [vmem:[#allocation3 + $0x8f0] sm:$0xff] }
 0x215   :  { %v1378_v13 = vld [vmem:[#allocation6 + $0x8f0] sm:$0xff] }
 0x216   :  { %v4937_v34 = vadd.f32 %v4936_v29, %v2375_v23  ;;  %v1878_v23 = vsub.f32 %v854_v16, %v1366_v17  ;;  %v2389_v29 = vmul.f32 %v1877_v18, %v1877_v18  ;;  %v867_v17 = vld [vmem:[#allocation3 + $0x8f8] sm:$0xff] }
 0x217   :  { %v1379_v18 = vld [vmem:[#allocation6 + $0x8f8] sm:$0xff] }
 0x218   :  { %v4938_v39 = vadd.f32 %v4937_v34, %v2376_v28  ;;  %v1879_v28 = vsub.f32 %v855_v21, %v1367_v22  ;;  %v2390_v34 = vmul.f32 %v1878_v23, %v1878_v23  ;;  %v868_v22 = vld [vmem:[#allocation3 + $0x900] sm:$0xff] }
 0x219   :  { %v1380_v23 = vld [vmem:[#allocation6 + $0x900] sm:$0xff] }
 0x21a   :  { %v4939_v44 = vadd.f32 %v4938_v39, %v2377_v33  ;;  %v1880_v33 = vsub.f32 %v856_v26, %v1368_v27  ;;  %v2391_v39 = vmul.f32 %v1879_v28, %v1879_v28  ;;  %v869_v27 = vld [vmem:[#allocation3 + $0x908] sm:$0xff] }
 0x21b   :  { %v1381_v28 = vld [vmem:[#allocation6 + $0x908] sm:$0xff] }
 0x21c   :  { %v4940_v49 = vadd.f32 %v4939_v44, %v2378_v38  ;;  %v1881_v38 = vsub.f32 %v857_v31, %v1369_v32  ;;  %v2392_v44 = vmul.f32 %v1880_v33, %v1880_v33  ;;  %v870_v32 = vld [vmem:[#allocation3 + $0x910] sm:$0xff] }
 0x21d   :  { %v1382_v33 = vld [vmem:[#allocation6 + $0x910] sm:$0xff] }
 0x21e   :  { %v4941_v54 = vadd.f32 %v4940_v49, %v2379_v43  ;;  %v1882_v43 = vsub.f32 %v858_v36, %v1370_v37  ;;  %v2393_v49 = vmul.f32 %v1881_v38, %v1881_v38  ;;  %v871_v37 = vld [vmem:[#allocation3 + $0x918] sm:$0xff] }
 0x21f   :  { %v1383_v38 = vld [vmem:[#allocation6 + $0x918] sm:$0xff] }
 0x220   :  { %v4942_v59 = vadd.f32 %v4941_v54, %v2380_v48  ;;  %v1883_v48 = vsub.f32 %v859_v41, %v1371_v42  ;;  %v2394_v54 = vmul.f32 %v1882_v43, %v1882_v43  ;;  %v872_v42 = vld [vmem:[#allocation3 + $0x920] sm:$0xff] }
 0x221   :  { %v1384_v43 = vld [vmem:[#allocation6 + $0x920] sm:$0xff] }
 0x222   :  { %v4943_v0 = vadd.f32 %v4942_v59, %v2381_v53  ;;  %v1884_v53 = vsub.f32 %v860_v46, %v1372_v47  ;;  %v2395_v59 = vmul.f32 %v1883_v48, %v1883_v48  ;;  %v873_v47 = vld [vmem:[#allocation3 + $0x928] sm:$0xff] }
 0x223   :  { %v1385_v48 = vld [vmem:[#allocation6 + $0x928] sm:$0xff] }
 0x224   :  { %v4944_v5 = vadd.f32 %v4943_v0, %v2382_v58  ;;  %v1885_v58 = vsub.f32 %v861_v51, %v1373_v52  ;;  %v2396_v0 = vmul.f32 %v1884_v53, %v1884_v53  ;;  %v874_v52 = vld [vmem:[#allocation3 + $0x930] sm:$0xff] }
 0x225   :  { %v1386_v53 = vld [vmem:[#allocation6 + $0x930] sm:$0xff] }
 0x226   :  { %v4945_v10 = vadd.f32 %v4944_v5, %v2383_v63  ;;  %v1886_v63 = vsub.f32 %v862_v56, %v1374_v57  ;;  %v2397_v5 = vmul.f32 %v1885_v58, %v1885_v58  ;;  %v875_v57 = vld [vmem:[#allocation3 + $0x938] sm:$0xff] }
 0x227   :  { %v1387_v58 = vld [vmem:[#allocation6 + $0x938] sm:$0xff] }
 0x228   :  { %v4946_v15 = vadd.f32 %v4945_v10, %v2384_v4  ;;  %v1887_v4 = vsub.f32 %v863_v61, %v1375_v62  ;;  %v2398_v10 = vmul.f32 %v1886_v63, %v1886_v63  ;;  %v876_v62 = vld [vmem:[#allocation3 + $0x940] sm:$0xff] }
 0x229   :  { %v1388_v63 = vld [vmem:[#allocation6 + $0x940] sm:$0xff] }
 0x22a   :  { %v4947_v20 = vadd.f32 %v4946_v15, %v2385_v9  ;;  %v1888_v9 = vsub.f32 %v864_v2, %v1376_v3  ;;  %v2399_v15 = vmul.f32 %v1887_v4, %v1887_v4  ;;  %v877_v3 = vld [vmem:[#allocation3 + $0x948] sm:$0xff] }
 0x22b   :  { %v1389_v4 = vld [vmem:[#allocation6 + $0x948] sm:$0xff] }
 0x22c   :  { %v4948_v25 = vadd.f32 %v4947_v20, %v2386_v14  ;;  %v1889_v14 = vsub.f32 %v865_v7, %v1377_v8  ;;  %v2400_v20 = vmul.f32 %v1888_v9, %v1888_v9  ;;  %v878_v8 = vld [vmem:[#allocation3 + $0x950] sm:$0xff] }
 0x22d   :  { %v1390_v9 = vld [vmem:[#allocation6 + $0x950] sm:$0xff] }
 0x22e   :  { %v4949_v30 = vadd.f32 %v4948_v25, %v2387_v19  ;;  %v1890_v19 = vsub.f32 %v866_v12, %v1378_v13  ;;  %v2401_v25 = vmul.f32 %v1889_v14, %v1889_v14  ;;  %v879_v13 = vld [vmem:[#allocation3 + $0x958] sm:$0xff] }
 0x22f   :  { %v1391_v14 = vld [vmem:[#allocation6 + $0x958] sm:$0xff] }
 0x230   :  { %v4950_v35 = vadd.f32 %v4949_v30, %v2388_v24  ;;  %v1891_v24 = vsub.f32 %v867_v17, %v1379_v18  ;;  %v2402_v30 = vmul.f32 %v1890_v19, %v1890_v19  ;;  %v880_v18 = vld [vmem:[#allocation3 + $0x960] sm:$0xff] }
 0x231   :  { %v1392_v19 = vld [vmem:[#allocation6 + $0x960] sm:$0xff] }
 0x232   :  { %v4951_v40 = vadd.f32 %v4950_v35, %v2389_v29  ;;  %v1892_v29 = vsub.f32 %v868_v22, %v1380_v23  ;;  %v2403_v35 = vmul.f32 %v1891_v24, %v1891_v24  ;;  %v881_v23 = vld [vmem:[#allocation3 + $0x968] sm:$0xff] }
 0x233   :  { %v1393_v24 = vld [vmem:[#allocation6 + $0x968] sm:$0xff] }
 0x234   :  { %v4952_v45 = vadd.f32 %v4951_v40, %v2390_v34  ;;  %v1893_v34 = vsub.f32 %v869_v27, %v1381_v28  ;;  %v2404_v40 = vmul.f32 %v1892_v29, %v1892_v29  ;;  %v882_v28 = vld [vmem:[#allocation3 + $0x970] sm:$0xff] }
 0x235   :  { %v1394_v29 = vld [vmem:[#allocation6 + $0x970] sm:$0xff] }
 0x236   :  { %v4953_v50 = vadd.f32 %v4952_v45, %v2391_v39  ;;  %v1894_v39 = vsub.f32 %v870_v32, %v1382_v33  ;;  %v2405_v45 = vmul.f32 %v1893_v34, %v1893_v34  ;;  %v883_v33 = vld [vmem:[#allocation3 + $0x978] sm:$0xff] }
 0x237   :  { %v1395_v34 = vld [vmem:[#allocation6 + $0x978] sm:$0xff] }
 0x238   :  { %v4954_v55 = vadd.f32 %v4953_v50, %v2392_v44  ;;  %v1895_v44 = vsub.f32 %v871_v37, %v1383_v38  ;;  %v2406_v50 = vmul.f32 %v1894_v39, %v1894_v39  ;;  %v884_v38 = vld [vmem:[#allocation3 + $0x980] sm:$0xff] }
 0x239   :  { %v1396_v39 = vld [vmem:[#allocation6 + $0x980] sm:$0xff] }
 0x23a   :  { %v4955_v60 = vadd.f32 %v4954_v55, %v2393_v49  ;;  %v1896_v49 = vsub.f32 %v872_v42, %v1384_v43  ;;  %v2407_v55 = vmul.f32 %v1895_v44, %v1895_v44  ;;  %v885_v43 = vld [vmem:[#allocation3 + $0x988] sm:$0xff] }
 0x23b   :  { %v1397_v44 = vld [vmem:[#allocation6 + $0x988] sm:$0xff] }
 0x23c   :  { %v4956_v1 = vadd.f32 %v4955_v60, %v2394_v54  ;;  %v1897_v54 = vsub.f32 %v873_v47, %v1385_v48  ;;  %v2408_v60 = vmul.f32 %v1896_v49, %v1896_v49  ;;  %v886_v48 = vld [vmem:[#allocation3 + $0x990] sm:$0xff] }
 0x23d   :  { %v1398_v49 = vld [vmem:[#allocation6 + $0x990] sm:$0xff] }
 0x23e   :  { %v4957_v6 = vadd.f32 %v4956_v1, %v2395_v59  ;;  %v1898_v59 = vsub.f32 %v874_v52, %v1386_v53  ;;  %v2409_v1 = vmul.f32 %v1897_v54, %v1897_v54  ;;  %v887_v53 = vld [vmem:[#allocation3 + $0x998] sm:$0xff] }
 0x23f   :  { %v1399_v54 = vld [vmem:[#allocation6 + $0x998] sm:$0xff] }
 0x240   :  { %v4958_v11 = vadd.f32 %v4957_v6, %v2396_v0  ;;  %v1899_v0 = vsub.f32 %v875_v57, %v1387_v58  ;;  %v2410_v6 = vmul.f32 %v1898_v59, %v1898_v59  ;;  %v888_v58 = vld [vmem:[#allocation3 + $0x9a0] sm:$0xff] }
 0x241   :  { %v1400_v59 = vld [vmem:[#allocation6 + $0x9a0] sm:$0xff] }
 0x242   :  { %v4959_v16 = vadd.f32 %v4958_v11, %v2397_v5  ;;  %v1900_v5 = vsub.f32 %v876_v62, %v1388_v63  ;;  %v2411_v11 = vmul.f32 %v1899_v0, %v1899_v0  ;;  %v889_v63 = vld [vmem:[#allocation3 + $0x9a8] sm:$0xff] }
 0x243   :  { %v1401_v0 = vld [vmem:[#allocation6 + $0x9a8] sm:$0xff] }
 0x244   :  { %v4960_v21 = vadd.f32 %v4959_v16, %v2398_v10  ;;  %v1901_v10 = vsub.f32 %v877_v3, %v1389_v4  ;;  %v2412_v16 = vmul.f32 %v1900_v5, %v1900_v5  ;;  %v890_v4 = vld [vmem:[#allocation3 + $0x9b0] sm:$0xff] }
 0x245   :  { %v1402_v5 = vld [vmem:[#allocation6 + $0x9b0] sm:$0xff] }
 0x246   :  { %v4961_v26 = vadd.f32 %v4960_v21, %v2399_v15  ;;  %v1902_v15 = vsub.f32 %v878_v8, %v1390_v9  ;;  %v2413_v21 = vmul.f32 %v1901_v10, %v1901_v10  ;;  %v891_v9 = vld [vmem:[#allocation3 + $0x9b8] sm:$0xff] }
 0x247   :  { %v1403_v10 = vld [vmem:[#allocation6 + $0x9b8] sm:$0xff] }
 0x248   :  { %v4962_v31 = vadd.f32 %v4961_v26, %v2400_v20  ;;  %v1903_v20 = vsub.f32 %v879_v13, %v1391_v14  ;;  %v2414_v26 = vmul.f32 %v1902_v15, %v1902_v15  ;;  %v892_v14 = vld [vmem:[#allocation3 + $0x9c0] sm:$0xff] }
 0x249   :  { %v1404_v15 = vld [vmem:[#allocation6 + $0x9c0] sm:$0xff] }
 0x24a   :  { %v4963_v36 = vadd.f32 %v4962_v31, %v2401_v25  ;;  %v1904_v25 = vsub.f32 %v880_v18, %v1392_v19  ;;  %v2415_v31 = vmul.f32 %v1903_v20, %v1903_v20  ;;  %v893_v19 = vld [vmem:[#allocation3 + $0x9c8] sm:$0xff] }
 0x24b   :  { %v1405_v20 = vld [vmem:[#allocation6 + $0x9c8] sm:$0xff] }
 0x24c   :  { %v4964_v41 = vadd.f32 %v4963_v36, %v2402_v30  ;;  %v1905_v30 = vsub.f32 %v881_v23, %v1393_v24  ;;  %v2416_v36 = vmul.f32 %v1904_v25, %v1904_v25  ;;  %v894_v24 = vld [vmem:[#allocation3 + $0x9d0] sm:$0xff] }
 0x24d   :  { %v1406_v25 = vld [vmem:[#allocation6 + $0x9d0] sm:$0xff] }
 0x24e   :  { %v4965_v46 = vadd.f32 %v4964_v41, %v2403_v35  ;;  %v1906_v35 = vsub.f32 %v882_v28, %v1394_v29  ;;  %v2417_v41 = vmul.f32 %v1905_v30, %v1905_v30  ;;  %v895_v29 = vld [vmem:[#allocation3 + $0x9d8] sm:$0xff] }
 0x24f   :  { %v1407_v30 = vld [vmem:[#allocation6 + $0x9d8] sm:$0xff] }
 0x250   :  { %v4966_v51 = vadd.f32 %v4965_v46, %v2404_v40  ;;  %v1907_v40 = vsub.f32 %v883_v33, %v1395_v34  ;;  %v2418_v46 = vmul.f32 %v1906_v35, %v1906_v35  ;;  %v896_v34 = vld [vmem:[#allocation3 + $0x9e0] sm:$0xff] }
 0x251   :  { %v1408_v35 = vld [vmem:[#allocation6 + $0x9e0] sm:$0xff] }
 0x252   :  { %v4967_v56 = vadd.f32 %v4966_v51, %v2405_v45  ;;  %v1908_v45 = vsub.f32 %v884_v38, %v1396_v39  ;;  %v2419_v51 = vmul.f32 %v1907_v40, %v1907_v40  ;;  %v897_v39 = vld [vmem:[#allocation3 + $0x9e8] sm:$0xff] }
 0x253   :  { %v1409_v40 = vld [vmem:[#allocation6 + $0x9e8] sm:$0xff] }
 0x254   :  { %v4968_v61 = vadd.f32 %v4967_v56, %v2406_v50  ;;  %v1909_v50 = vsub.f32 %v885_v43, %v1397_v44  ;;  %v2420_v56 = vmul.f32 %v1908_v45, %v1908_v45  ;;  %v898_v44 = vld [vmem:[#allocation3 + $0x9f0] sm:$0xff] }
 0x255   :  { %v1410_v45 = vld [vmem:[#allocation6 + $0x9f0] sm:$0xff] }
 0x256   :  { %v4969_v2 = vadd.f32 %v4968_v61, %v2407_v55  ;;  %v1910_v55 = vsub.f32 %v886_v48, %v1398_v49  ;;  %v2421_v61 = vmul.f32 %v1909_v50, %v1909_v50  ;;  %v899_v49 = vld [vmem:[#allocation3 + $0x9f8] sm:$0xff] }
 0x257   :  { %v1411_v50 = vld [vmem:[#allocation6 + $0x9f8] sm:$0xff] }
 0x258   :  { %v4970_v7 = vadd.f32 %v4969_v2, %v2408_v60  ;;  %v1911_v60 = vsub.f32 %v887_v53, %v1399_v54  ;;  %v2422_v2 = vmul.f32 %v1910_v55, %v1910_v55  ;;  %v900_v54 = vld [vmem:[#allocation3 + $0xa00] sm:$0xff] }
 0x259   :  { %v1412_v55 = vld [vmem:[#allocation6 + $0xa00] sm:$0xff] }
 0x25a   :  { %v4971_v12 = vadd.f32 %v4970_v7, %v2409_v1  ;;  %v1912_v1 = vsub.f32 %v888_v58, %v1400_v59  ;;  %v2423_v7 = vmul.f32 %v1911_v60, %v1911_v60  ;;  %v901_v59 = vld [vmem:[#allocation3 + $0xa08] sm:$0xff] }
 0x25b   :  { %v1413_v60 = vld [vmem:[#allocation6 + $0xa08] sm:$0xff] }
 0x25c   :  { %v4972_v17 = vadd.f32 %v4971_v12, %v2410_v6  ;;  %v1913_v6 = vsub.f32 %v889_v63, %v1401_v0  ;;  %v2424_v12 = vmul.f32 %v1912_v1, %v1912_v1  ;;  %v902_v0 = vld [vmem:[#allocation3 + $0xa10] sm:$0xff] }
 0x25d   :  { %v1414_v1 = vld [vmem:[#allocation6 + $0xa10] sm:$0xff] }
 0x25e   :  { %v4973_v22 = vadd.f32 %v4972_v17, %v2411_v11  ;;  %v1914_v11 = vsub.f32 %v890_v4, %v1402_v5  ;;  %v2425_v17 = vmul.f32 %v1913_v6, %v1913_v6  ;;  %v903_v5 = vld [vmem:[#allocation3 + $0xa18] sm:$0xff] }
 0x25f   :  { %v1415_v6 = vld [vmem:[#allocation6 + $0xa18] sm:$0xff] }
 0x260   :  { %v4974_v27 = vadd.f32 %v4973_v22, %v2412_v16  ;;  %v1915_v16 = vsub.f32 %v891_v9, %v1403_v10  ;;  %v2426_v22 = vmul.f32 %v1914_v11, %v1914_v11  ;;  %v904_v10 = vld [vmem:[#allocation3 + $0xa20] sm:$0xff] }
 0x261   :  { %v1416_v11 = vld [vmem:[#allocation6 + $0xa20] sm:$0xff] }
 0x262   :  { %v4975_v32 = vadd.f32 %v4974_v27, %v2413_v21  ;;  %v1916_v21 = vsub.f32 %v892_v14, %v1404_v15  ;;  %v2427_v27 = vmul.f32 %v1915_v16, %v1915_v16  ;;  %v905_v15 = vld [vmem:[#allocation3 + $0xa28] sm:$0xff] }
 0x263   :  { %v1417_v16 = vld [vmem:[#allocation6 + $0xa28] sm:$0xff] }
 0x264   :  { %v4976_v37 = vadd.f32 %v4975_v32, %v2414_v26  ;;  %v1917_v26 = vsub.f32 %v893_v19, %v1405_v20  ;;  %v2428_v32 = vmul.f32 %v1916_v21, %v1916_v21  ;;  %v906_v20 = vld [vmem:[#allocation3 + $0xa30] sm:$0xff] }
 0x265   :  { %v1418_v21 = vld [vmem:[#allocation6 + $0xa30] sm:$0xff] }
 0x266   :  { %v4977_v42 = vadd.f32 %v4976_v37, %v2415_v31  ;;  %v1918_v31 = vsub.f32 %v894_v24, %v1406_v25  ;;  %v2429_v37 = vmul.f32 %v1917_v26, %v1917_v26  ;;  %v907_v25 = vld [vmem:[#allocation3 + $0xa38] sm:$0xff] }
 0x267   :  { %v1419_v26 = vld [vmem:[#allocation6 + $0xa38] sm:$0xff] }
 0x268   :  { %v4978_v47 = vadd.f32 %v4977_v42, %v2416_v36  ;;  %v1919_v36 = vsub.f32 %v895_v29, %v1407_v30  ;;  %v2430_v42 = vmul.f32 %v1918_v31, %v1918_v31  ;;  %v908_v30 = vld [vmem:[#allocation3 + $0xa40] sm:$0xff] }
 0x269   :  { %v1420_v31 = vld [vmem:[#allocation6 + $0xa40] sm:$0xff] }
 0x26a   :  { %v4979_v52 = vadd.f32 %v4978_v47, %v2417_v41  ;;  %v1920_v41 = vsub.f32 %v896_v34, %v1408_v35  ;;  %v2431_v47 = vmul.f32 %v1919_v36, %v1919_v36  ;;  %v909_v35 = vld [vmem:[#allocation3 + $0xa48] sm:$0xff] }
 0x26b   :  { %v1421_v36 = vld [vmem:[#allocation6 + $0xa48] sm:$0xff] }
 0x26c   :  { %v4980_v57 = vadd.f32 %v4979_v52, %v2418_v46  ;;  %v1921_v46 = vsub.f32 %v897_v39, %v1409_v40  ;;  %v2432_v52 = vmul.f32 %v1920_v41, %v1920_v41  ;;  %v910_v40 = vld [vmem:[#allocation3 + $0xa50] sm:$0xff] }
 0x26d   :  { %v1422_v41 = vld [vmem:[#allocation6 + $0xa50] sm:$0xff] }
 0x26e   :  { %v4981_v62 = vadd.f32 %v4980_v57, %v2419_v51  ;;  %v1922_v51 = vsub.f32 %v898_v44, %v1410_v45  ;;  %v2433_v57 = vmul.f32 %v1921_v46, %v1921_v46  ;;  %v911_v45 = vld [vmem:[#allocation3 + $0xa58] sm:$0xff] }
 0x26f   :  { %v1423_v46 = vld [vmem:[#allocation6 + $0xa58] sm:$0xff] }
 0x270   :  { %v4982_v3 = vadd.f32 %v4981_v62, %v2420_v56  ;;  %v1923_v56 = vsub.f32 %v899_v49, %v1411_v50  ;;  %v2434_v62 = vmul.f32 %v1922_v51, %v1922_v51  ;;  %v912_v50 = vld [vmem:[#allocation3 + $0xa60] sm:$0xff] }
 0x271   :  { %v1424_v51 = vld [vmem:[#allocation6 + $0xa60] sm:$0xff] }
 0x272   :  { %v4983_v8 = vadd.f32 %v4982_v3, %v2421_v61  ;;  %v1924_v61 = vsub.f32 %v900_v54, %v1412_v55  ;;  %v2435_v3 = vmul.f32 %v1923_v56, %v1923_v56  ;;  %v913_v55 = vld [vmem:[#allocation3 + $0xa68] sm:$0xff] }
 0x273   :  { %v1425_v56 = vld [vmem:[#allocation6 + $0xa68] sm:$0xff] }
 0x274   :  { %v4984_v13 = vadd.f32 %v4983_v8, %v2422_v2  ;;  %v1925_v2 = vsub.f32 %v901_v59, %v1413_v60  ;;  %v2436_v8 = vmul.f32 %v1924_v61, %v1924_v61  ;;  %v914_v60 = vld [vmem:[#allocation3 + $0xa70] sm:$0xff] }
 0x275   :  { %v1426_v61 = vld [vmem:[#allocation6 + $0xa70] sm:$0xff] }
 0x276   :  { %v4985_v18 = vadd.f32 %v4984_v13, %v2423_v7  ;;  %v1926_v7 = vsub.f32 %v902_v0, %v1414_v1  ;;  %v2437_v13 = vmul.f32 %v1925_v2, %v1925_v2  ;;  %v915_v1 = vld [vmem:[#allocation3 + $0xa78] sm:$0xff] }
 0x277   :  { %v1427_v2 = vld [vmem:[#allocation6 + $0xa78] sm:$0xff] }
 0x278   :  { %v4986_v23 = vadd.f32 %v4985_v18, %v2424_v12  ;;  %v1927_v12 = vsub.f32 %v903_v5, %v1415_v6  ;;  %v2438_v18 = vmul.f32 %v1926_v7, %v1926_v7  ;;  %v916_v6 = vld [vmem:[#allocation3 + $0xa80] sm:$0xff] }
 0x279   :  { %v1428_v7 = vld [vmem:[#allocation6 + $0xa80] sm:$0xff] }
 0x27a   :  { %v4987_v28 = vadd.f32 %v4986_v23, %v2425_v17  ;;  %v1928_v17 = vsub.f32 %v904_v10, %v1416_v11  ;;  %v2439_v23 = vmul.f32 %v1927_v12, %v1927_v12  ;;  %v917_v11 = vld [vmem:[#allocation3 + $0xa88] sm:$0xff] }
 0x27b   :  { %v1429_v12 = vld [vmem:[#allocation6 + $0xa88] sm:$0xff] }
 0x27c   :  { %v4988_v33 = vadd.f32 %v4987_v28, %v2426_v22  ;;  %v1929_v22 = vsub.f32 %v905_v15, %v1417_v16  ;;  %v2440_v28 = vmul.f32 %v1928_v17, %v1928_v17  ;;  %v918_v16 = vld [vmem:[#allocation3 + $0xa90] sm:$0xff] }
 0x27d   :  { %v1430_v17 = vld [vmem:[#allocation6 + $0xa90] sm:$0xff] }
 0x27e   :  { %v4989_v38 = vadd.f32 %v4988_v33, %v2427_v27  ;;  %v1930_v27 = vsub.f32 %v906_v20, %v1418_v21  ;;  %v2441_v33 = vmul.f32 %v1929_v22, %v1929_v22  ;;  %v919_v21 = vld [vmem:[#allocation3 + $0xa98] sm:$0xff] }
 0x27f   :  { %v1431_v22 = vld [vmem:[#allocation6 + $0xa98] sm:$0xff] }
 0x280   :  { %v4990_v43 = vadd.f32 %v4989_v38, %v2428_v32  ;;  %v1931_v32 = vsub.f32 %v907_v25, %v1419_v26  ;;  %v2442_v38 = vmul.f32 %v1930_v27, %v1930_v27  ;;  %v920_v26 = vld [vmem:[#allocation3 + $0xaa0] sm:$0xff] }
 0x281   :  { %v1432_v27 = vld [vmem:[#allocation6 + $0xaa0] sm:$0xff] }
 0x282   :  { %v4991_v48 = vadd.f32 %v4990_v43, %v2429_v37  ;;  %v1932_v37 = vsub.f32 %v908_v30, %v1420_v31  ;;  %v2443_v43 = vmul.f32 %v1931_v32, %v1931_v32  ;;  %v921_v31 = vld [vmem:[#allocation3 + $0xaa8] sm:$0xff] }
 0x283   :  { %v1433_v32 = vld [vmem:[#allocation6 + $0xaa8] sm:$0xff] }
 0x284   :  { %v4992_v53 = vadd.f32 %v4991_v48, %v2430_v42  ;;  %v1933_v42 = vsub.f32 %v909_v35, %v1421_v36  ;;  %v2444_v48 = vmul.f32 %v1932_v37, %v1932_v37  ;;  %v922_v36 = vld [vmem:[#allocation3 + $0xab0] sm:$0xff] }
 0x285   :  { %v1434_v37 = vld [vmem:[#allocation6 + $0xab0] sm:$0xff] }
 0x286   :  { %v4993_v58 = vadd.f32 %v4992_v53, %v2431_v47  ;;  %v1934_v47 = vsub.f32 %v910_v40, %v1422_v41  ;;  %v2445_v53 = vmul.f32 %v1933_v42, %v1933_v42  ;;  %v923_v41 = vld [vmem:[#allocation3 + $0xab8] sm:$0xff] }
 0x287   :  { %v1435_v42 = vld [vmem:[#allocation6 + $0xab8] sm:$0xff] }
 0x288   :  { %v4994_v63 = vadd.f32 %v4993_v58, %v2432_v52  ;;  %v1935_v52 = vsub.f32 %v911_v45, %v1423_v46  ;;  %v2446_v58 = vmul.f32 %v1934_v47, %v1934_v47  ;;  %v924_v46 = vld [vmem:[#allocation3 + $0xac0] sm:$0xff] }
 0x289   :  { %v1436_v47 = vld [vmem:[#allocation6 + $0xac0] sm:$0xff] }
 0x28a   :  { %v4995_v4 = vadd.f32 %v4994_v63, %v2433_v57  ;;  %v1936_v57 = vsub.f32 %v912_v50, %v1424_v51  ;;  %v2447_v63 = vmul.f32 %v1935_v52, %v1935_v52  ;;  %v925_v51 = vld [vmem:[#allocation3 + $0xac8] sm:$0xff] }
 0x28b   :  { %v1437_v52 = vld [vmem:[#allocation6 + $0xac8] sm:$0xff] }
 0x28c   :  { %v4996_v9 = vadd.f32 %v4995_v4, %v2434_v62  ;;  %v1937_v62 = vsub.f32 %v913_v55, %v1425_v56  ;;  %v2448_v4 = vmul.f32 %v1936_v57, %v1936_v57  ;;  %v926_v56 = vld [vmem:[#allocation3 + $0xad0] sm:$0xff] }
 0x28d   :  { %v1438_v57 = vld [vmem:[#allocation6 + $0xad0] sm:$0xff] }
 0x28e   :  { %v4997_v14 = vadd.f32 %v4996_v9, %v2435_v3  ;;  %v1938_v3 = vsub.f32 %v914_v60, %v1426_v61  ;;  %v2449_v9 = vmul.f32 %v1937_v62, %v1937_v62  ;;  %v927_v61 = vld [vmem:[#allocation3 + $0xad8] sm:$0xff] }
 0x28f   :  { %v1439_v62 = vld [vmem:[#allocation6 + $0xad8] sm:$0xff] }
 0x290   :  { %v4998_v19 = vadd.f32 %v4997_v14, %v2436_v8  ;;  %v1939_v8 = vsub.f32 %v915_v1, %v1427_v2  ;;  %v2450_v14 = vmul.f32 %v1938_v3, %v1938_v3  ;;  %v928_v2 = vld [vmem:[#allocation3 + $0xae0] sm:$0xff] }
 0x291   :  { %v1440_v3 = vld [vmem:[#allocation6 + $0xae0] sm:$0xff] }
 0x292   :  { %v4999_v24 = vadd.f32 %v4998_v19, %v2437_v13  ;;  %v1940_v13 = vsub.f32 %v916_v6, %v1428_v7  ;;  %v2451_v19 = vmul.f32 %v1939_v8, %v1939_v8  ;;  %v929_v7 = vld [vmem:[#allocation3 + $0xae8] sm:$0xff] }
 0x293   :  { %v1441_v8 = vld [vmem:[#allocation6 + $0xae8] sm:$0xff] }
 0x294   :  { %v5000_v29 = vadd.f32 %v4999_v24, %v2438_v18  ;;  %v1941_v18 = vsub.f32 %v917_v11, %v1429_v12  ;;  %v2452_v24 = vmul.f32 %v1940_v13, %v1940_v13  ;;  %v930_v12 = vld [vmem:[#allocation3 + $0xaf0] sm:$0xff] }
 0x295   :  { %v1442_v13 = vld [vmem:[#allocation6 + $0xaf0] sm:$0xff] }
 0x296   :  { %v5001_v34 = vadd.f32 %v5000_v29, %v2439_v23  ;;  %v1942_v23 = vsub.f32 %v918_v16, %v1430_v17  ;;  %v2453_v29 = vmul.f32 %v1941_v18, %v1941_v18  ;;  %v931_v17 = vld [vmem:[#allocation3 + $0xaf8] sm:$0xff] }
 0x297   :  { %v1443_v18 = vld [vmem:[#allocation6 + $0xaf8] sm:$0xff] }
 0x298   :  { %v5002_v39 = vadd.f32 %v5001_v34, %v2440_v28  ;;  %v1943_v28 = vsub.f32 %v919_v21, %v1431_v22  ;;  %v2454_v34 = vmul.f32 %v1942_v23, %v1942_v23  ;;  %v932_v22 = vld [vmem:[#allocation3 + $0xb00] sm:$0xff] }
 0x299   :  { %v1444_v23 = vld [vmem:[#allocation6 + $0xb00] sm:$0xff] }
 0x29a   :  { %v5003_v44 = vadd.f32 %v5002_v39, %v2441_v33  ;;  %v1944_v33 = vsub.f32 %v920_v26, %v1432_v27  ;;  %v2455_v39 = vmul.f32 %v1943_v28, %v1943_v28  ;;  %v933_v27 = vld [vmem:[#allocation3 + $0xb08] sm:$0xff] }
 0x29b   :  { %v1445_v28 = vld [vmem:[#allocation6 + $0xb08] sm:$0xff] }
 0x29c   :  { %v5004_v49 = vadd.f32 %v5003_v44, %v2442_v38  ;;  %v1945_v38 = vsub.f32 %v921_v31, %v1433_v32  ;;  %v2456_v44 = vmul.f32 %v1944_v33, %v1944_v33  ;;  %v934_v32 = vld [vmem:[#allocation3 + $0xb10] sm:$0xff] }
 0x29d   :  { %v1446_v33 = vld [vmem:[#allocation6 + $0xb10] sm:$0xff] }
 0x29e   :  { %v5005_v54 = vadd.f32 %v5004_v49, %v2443_v43  ;;  %v1946_v43 = vsub.f32 %v922_v36, %v1434_v37  ;;  %v2457_v49 = vmul.f32 %v1945_v38, %v1945_v38  ;;  %v935_v37 = vld [vmem:[#allocation3 + $0xb18] sm:$0xff] }
 0x29f   :  { %v1447_v38 = vld [vmem:[#allocation6 + $0xb18] sm:$0xff] }
 0x2a0   :  { %v5006_v59 = vadd.f32 %v5005_v54, %v2444_v48  ;;  %v1947_v48 = vsub.f32 %v923_v41, %v1435_v42  ;;  %v2458_v54 = vmul.f32 %v1946_v43, %v1946_v43  ;;  %v936_v42 = vld [vmem:[#allocation3 + $0xb20] sm:$0xff] }
 0x2a1   :  { %v1448_v43 = vld [vmem:[#allocation6 + $0xb20] sm:$0xff] }
 0x2a2   :  { %v5007_v0 = vadd.f32 %v5006_v59, %v2445_v53  ;;  %v1948_v53 = vsub.f32 %v924_v46, %v1436_v47  ;;  %v2459_v59 = vmul.f32 %v1947_v48, %v1947_v48  ;;  %v937_v47 = vld [vmem:[#allocation3 + $0xb28] sm:$0xff] }
 0x2a3   :  { %v1449_v48 = vld [vmem:[#allocation6 + $0xb28] sm:$0xff] }
 0x2a4   :  { %v5008_v5 = vadd.f32 %v5007_v0, %v2446_v58  ;;  %v1949_v58 = vsub.f32 %v925_v51, %v1437_v52  ;;  %v2460_v0 = vmul.f32 %v1948_v53, %v1948_v53  ;;  %v938_v52 = vld [vmem:[#allocation3 + $0xb30] sm:$0xff] }
 0x2a5   :  { %v1450_v53 = vld [vmem:[#allocation6 + $0xb30] sm:$0xff] }
 0x2a6   :  { %v5009_v10 = vadd.f32 %v5008_v5, %v2447_v63  ;;  %v1950_v63 = vsub.f32 %v926_v56, %v1438_v57  ;;  %v2461_v5 = vmul.f32 %v1949_v58, %v1949_v58  ;;  %v939_v57 = vld [vmem:[#allocation3 + $0xb38] sm:$0xff] }
 0x2a7   :  { %v1451_v58 = vld [vmem:[#allocation6 + $0xb38] sm:$0xff] }
 0x2a8   :  { %v5010_v15 = vadd.f32 %v5009_v10, %v2448_v4  ;;  %v1951_v4 = vsub.f32 %v927_v61, %v1439_v62  ;;  %v2462_v10 = vmul.f32 %v1950_v63, %v1950_v63  ;;  %v940_v62 = vld [vmem:[#allocation3 + $0xb40] sm:$0xff] }
 0x2a9   :  { %v1452_v63 = vld [vmem:[#allocation6 + $0xb40] sm:$0xff] }
 0x2aa   :  { %v5011_v20 = vadd.f32 %v5010_v15, %v2449_v9  ;;  %v1952_v9 = vsub.f32 %v928_v2, %v1440_v3  ;;  %v2463_v15 = vmul.f32 %v1951_v4, %v1951_v4  ;;  %v941_v3 = vld [vmem:[#allocation3 + $0xb48] sm:$0xff] }
 0x2ab   :  { %v1453_v4 = vld [vmem:[#allocation6 + $0xb48] sm:$0xff] }
 0x2ac   :  { %v5012_v25 = vadd.f32 %v5011_v20, %v2450_v14  ;;  %v1953_v14 = vsub.f32 %v929_v7, %v1441_v8  ;;  %v2464_v20 = vmul.f32 %v1952_v9, %v1952_v9  ;;  %v942_v8 = vld [vmem:[#allocation3 + $0xb50] sm:$0xff] }
 0x2ad   :  { %v1454_v9 = vld [vmem:[#allocation6 + $0xb50] sm:$0xff] }
 0x2ae   :  { %v5013_v30 = vadd.f32 %v5012_v25, %v2451_v19  ;;  %v1954_v19 = vsub.f32 %v930_v12, %v1442_v13  ;;  %v2465_v25 = vmul.f32 %v1953_v14, %v1953_v14  ;;  %v943_v13 = vld [vmem:[#allocation3 + $0xb58] sm:$0xff] }
 0x2af   :  { %v1455_v14 = vld [vmem:[#allocation6 + $0xb58] sm:$0xff] }
 0x2b0   :  { %v5014_v35 = vadd.f32 %v5013_v30, %v2452_v24  ;;  %v1955_v24 = vsub.f32 %v931_v17, %v1443_v18  ;;  %v2466_v30 = vmul.f32 %v1954_v19, %v1954_v19  ;;  %v944_v18 = vld [vmem:[#allocation3 + $0xb60] sm:$0xff] }
 0x2b1   :  { %v1456_v19 = vld [vmem:[#allocation6 + $0xb60] sm:$0xff] }
 0x2b2   :  { %v5015_v40 = vadd.f32 %v5014_v35, %v2453_v29  ;;  %v1956_v29 = vsub.f32 %v932_v22, %v1444_v23  ;;  %v2467_v35 = vmul.f32 %v1955_v24, %v1955_v24  ;;  %v945_v23 = vld [vmem:[#allocation3 + $0xb68] sm:$0xff] }
 0x2b3   :  { %v1457_v24 = vld [vmem:[#allocation6 + $0xb68] sm:$0xff] }
 0x2b4   :  { %v5016_v45 = vadd.f32 %v5015_v40, %v2454_v34  ;;  %v1957_v34 = vsub.f32 %v933_v27, %v1445_v28  ;;  %v2468_v40 = vmul.f32 %v1956_v29, %v1956_v29  ;;  %v946_v28 = vld [vmem:[#allocation3 + $0xb70] sm:$0xff] }
 0x2b5   :  { %v1458_v29 = vld [vmem:[#allocation6 + $0xb70] sm:$0xff] }
 0x2b6   :  { %v5017_v50 = vadd.f32 %v5016_v45, %v2455_v39  ;;  %v1958_v39 = vsub.f32 %v934_v32, %v1446_v33  ;;  %v2469_v45 = vmul.f32 %v1957_v34, %v1957_v34  ;;  %v947_v33 = vld [vmem:[#allocation3 + $0xb78] sm:$0xff] }
 0x2b7   :  { %v1459_v34 = vld [vmem:[#allocation6 + $0xb78] sm:$0xff] }
 0x2b8   :  { %v5018_v55 = vadd.f32 %v5017_v50, %v2456_v44  ;;  %v1959_v44 = vsub.f32 %v935_v37, %v1447_v38  ;;  %v2470_v50 = vmul.f32 %v1958_v39, %v1958_v39  ;;  %v948_v38 = vld [vmem:[#allocation3 + $0xb80] sm:$0xff] }
 0x2b9   :  { %v1460_v39 = vld [vmem:[#allocation6 + $0xb80] sm:$0xff] }
 0x2ba   :  { %v5019_v60 = vadd.f32 %v5018_v55, %v2457_v49  ;;  %v1960_v49 = vsub.f32 %v936_v42, %v1448_v43  ;;  %v2471_v55 = vmul.f32 %v1959_v44, %v1959_v44  ;;  %v949_v43 = vld [vmem:[#allocation3 + $0xb88] sm:$0xff] }
 0x2bb   :  { %v1461_v44 = vld [vmem:[#allocation6 + $0xb88] sm:$0xff] }
 0x2bc   :  { %v5020_v1 = vadd.f32 %v5019_v60, %v2458_v54  ;;  %v1961_v54 = vsub.f32 %v937_v47, %v1449_v48  ;;  %v2472_v60 = vmul.f32 %v1960_v49, %v1960_v49  ;;  %v950_v48 = vld [vmem:[#allocation3 + $0xb90] sm:$0xff] }
 0x2bd   :  { %v1462_v49 = vld [vmem:[#allocation6 + $0xb90] sm:$0xff] }
 0x2be   :  { %v5021_v6 = vadd.f32 %v5020_v1, %v2459_v59  ;;  %v1962_v59 = vsub.f32 %v938_v52, %v1450_v53  ;;  %v2473_v1 = vmul.f32 %v1961_v54, %v1961_v54  ;;  %v951_v53 = vld [vmem:[#allocation3 + $0xb98] sm:$0xff] }
 0x2bf   :  { %v1463_v54 = vld [vmem:[#allocation6 + $0xb98] sm:$0xff] }
 0x2c0   :  { %v5022_v11 = vadd.f32 %v5021_v6, %v2460_v0  ;;  %v1963_v0 = vsub.f32 %v939_v57, %v1451_v58  ;;  %v2474_v6 = vmul.f32 %v1962_v59, %v1962_v59  ;;  %v952_v58 = vld [vmem:[#allocation3 + $0xba0] sm:$0xff] }
 0x2c1   :  { %v1464_v59 = vld [vmem:[#allocation6 + $0xba0] sm:$0xff] }
 0x2c2   :  { %v5023_v16 = vadd.f32 %v5022_v11, %v2461_v5  ;;  %v1964_v5 = vsub.f32 %v940_v62, %v1452_v63  ;;  %v2475_v11 = vmul.f32 %v1963_v0, %v1963_v0  ;;  %v953_v63 = vld [vmem:[#allocation3 + $0xba8] sm:$0xff] }
 0x2c3   :  { %v1465_v0 = vld [vmem:[#allocation6 + $0xba8] sm:$0xff] }
 0x2c4   :  { %v5024_v21 = vadd.f32 %v5023_v16, %v2462_v10  ;;  %v1965_v10 = vsub.f32 %v941_v3, %v1453_v4  ;;  %v2476_v16 = vmul.f32 %v1964_v5, %v1964_v5  ;;  %v954_v4 = vld [vmem:[#allocation3 + $0xbb0] sm:$0xff] }
 0x2c5   :  { %v1466_v5 = vld [vmem:[#allocation6 + $0xbb0] sm:$0xff] }
 0x2c6   :  { %v5025_v26 = vadd.f32 %v5024_v21, %v2463_v15  ;;  %v1966_v15 = vsub.f32 %v942_v8, %v1454_v9  ;;  %v2477_v21 = vmul.f32 %v1965_v10, %v1965_v10  ;;  %v955_v9 = vld [vmem:[#allocation3 + $0xbb8] sm:$0xff] }
 0x2c7   :  { %v1467_v10 = vld [vmem:[#allocation6 + $0xbb8] sm:$0xff] }
 0x2c8   :  { %v5026_v31 = vadd.f32 %v5025_v26, %v2464_v20  ;;  %v1967_v20 = vsub.f32 %v943_v13, %v1455_v14  ;;  %v2478_v26 = vmul.f32 %v1966_v15, %v1966_v15  ;;  %v956_v14 = vld [vmem:[#allocation3 + $0xbc0] sm:$0xff] }
 0x2c9   :  { %v1468_v15 = vld [vmem:[#allocation6 + $0xbc0] sm:$0xff] }
 0x2ca   :  { %v5027_v36 = vadd.f32 %v5026_v31, %v2465_v25  ;;  %v1968_v25 = vsub.f32 %v944_v18, %v1456_v19  ;;  %v2479_v31 = vmul.f32 %v1967_v20, %v1967_v20  ;;  %v957_v19 = vld [vmem:[#allocation3 + $0xbc8] sm:$0xff] }
 0x2cb   :  { %v1469_v20 = vld [vmem:[#allocation6 + $0xbc8] sm:$0xff] }
 0x2cc   :  { %v5028_v41 = vadd.f32 %v5027_v36, %v2466_v30  ;;  %v1969_v30 = vsub.f32 %v945_v23, %v1457_v24  ;;  %v2480_v36 = vmul.f32 %v1968_v25, %v1968_v25  ;;  %v958_v24 = vld [vmem:[#allocation3 + $0xbd0] sm:$0xff] }
 0x2cd   :  { %v1470_v25 = vld [vmem:[#allocation6 + $0xbd0] sm:$0xff] }
 0x2ce   :  { %v5029_v46 = vadd.f32 %v5028_v41, %v2467_v35  ;;  %v1970_v35 = vsub.f32 %v946_v28, %v1458_v29  ;;  %v2481_v41 = vmul.f32 %v1969_v30, %v1969_v30  ;;  %v959_v29 = vld [vmem:[#allocation3 + $0xbd8] sm:$0xff] }
 0x2cf   :  { %v1471_v30 = vld [vmem:[#allocation6 + $0xbd8] sm:$0xff] }
 0x2d0   :  { %v5030_v51 = vadd.f32 %v5029_v46, %v2468_v40  ;;  %v1971_v40 = vsub.f32 %v947_v33, %v1459_v34  ;;  %v2482_v46 = vmul.f32 %v1970_v35, %v1970_v35  ;;  %v960_v34 = vld [vmem:[#allocation3 + $0xbe0] sm:$0xff] }
 0x2d1   :  { %v1472_v35 = vld [vmem:[#allocation6 + $0xbe0] sm:$0xff] }
 0x2d2   :  { %v5031_v56 = vadd.f32 %v5030_v51, %v2469_v45  ;;  %v1972_v45 = vsub.f32 %v948_v38, %v1460_v39  ;;  %v2483_v51 = vmul.f32 %v1971_v40, %v1971_v40  ;;  %v961_v39 = vld [vmem:[#allocation3 + $0xbe8] sm:$0xff] }
 0x2d3   :  { %v1473_v40 = vld [vmem:[#allocation6 + $0xbe8] sm:$0xff] }
 0x2d4   :  { %v5032_v61 = vadd.f32 %v5031_v56, %v2470_v50  ;;  %v1973_v50 = vsub.f32 %v949_v43, %v1461_v44  ;;  %v2484_v56 = vmul.f32 %v1972_v45, %v1972_v45  ;;  %v962_v44 = vld [vmem:[#allocation3 + $0xbf0] sm:$0xff] }
 0x2d5   :  { %v1474_v45 = vld [vmem:[#allocation6 + $0xbf0] sm:$0xff] }
 0x2d6   :  { %v5033_v2 = vadd.f32 %v5032_v61, %v2471_v55  ;;  %v1974_v55 = vsub.f32 %v950_v48, %v1462_v49  ;;  %v2485_v61 = vmul.f32 %v1973_v50, %v1973_v50  ;;  %v963_v49 = vld [vmem:[#allocation3 + $0xbf8] sm:$0xff] }
 0x2d7   :  { %v1475_v50 = vld [vmem:[#allocation6 + $0xbf8] sm:$0xff] }
 0x2d8   :  { %v5034_v7 = vadd.f32 %v5033_v2, %v2472_v60  ;;  %v1975_v60 = vsub.f32 %v951_v53, %v1463_v54  ;;  %v2486_v2 = vmul.f32 %v1974_v55, %v1974_v55  ;;  %v964_v54 = vld [vmem:[#allocation3 + $0xc00] sm:$0xff] }
 0x2d9   :  { %v1476_v55 = vld [vmem:[#allocation6 + $0xc00] sm:$0xff] }
 0x2da   :  { %v5035_v12 = vadd.f32 %v5034_v7, %v2473_v1  ;;  %v1976_v1 = vsub.f32 %v952_v58, %v1464_v59  ;;  %v2487_v7 = vmul.f32 %v1975_v60, %v1975_v60  ;;  %v965_v59 = vld [vmem:[#allocation3 + $0xc08] sm:$0xff] }
 0x2db   :  { %v1477_v60 = vld [vmem:[#allocation6 + $0xc08] sm:$0xff] }
 0x2dc   :  { %v5036_v17 = vadd.f32 %v5035_v12, %v2474_v6  ;;  %v1977_v6 = vsub.f32 %v953_v63, %v1465_v0  ;;  %v2488_v12 = vmul.f32 %v1976_v1, %v1976_v1  ;;  %v966_v0 = vld [vmem:[#allocation3 + $0xc10] sm:$0xff] }
 0x2dd   :  { %v1478_v1 = vld [vmem:[#allocation6 + $0xc10] sm:$0xff] }
 0x2de   :  { %v5037_v22 = vadd.f32 %v5036_v17, %v2475_v11  ;;  %v1978_v11 = vsub.f32 %v954_v4, %v1466_v5  ;;  %v2489_v17 = vmul.f32 %v1977_v6, %v1977_v6  ;;  %v967_v5 = vld [vmem:[#allocation3 + $0xc18] sm:$0xff] }
 0x2df   :  { %v1479_v6 = vld [vmem:[#allocation6 + $0xc18] sm:$0xff] }
 0x2e0   :  { %v5038_v27 = vadd.f32 %v5037_v22, %v2476_v16  ;;  %v1979_v16 = vsub.f32 %v955_v9, %v1467_v10  ;;  %v2490_v22 = vmul.f32 %v1978_v11, %v1978_v11  ;;  %v968_v10 = vld [vmem:[#allocation3 + $0xc20] sm:$0xff] }
 0x2e1   :  { %v1480_v11 = vld [vmem:[#allocation6 + $0xc20] sm:$0xff] }
 0x2e2   :  { %v5039_v32 = vadd.f32 %v5038_v27, %v2477_v21  ;;  %v1980_v21 = vsub.f32 %v956_v14, %v1468_v15  ;;  %v2491_v27 = vmul.f32 %v1979_v16, %v1979_v16  ;;  %v969_v15 = vld [vmem:[#allocation3 + $0xc28] sm:$0xff] }
 0x2e3   :  { %v1481_v16 = vld [vmem:[#allocation6 + $0xc28] sm:$0xff] }
 0x2e4   :  { %v5040_v37 = vadd.f32 %v5039_v32, %v2478_v26  ;;  %v1981_v26 = vsub.f32 %v957_v19, %v1469_v20  ;;  %v2492_v32 = vmul.f32 %v1980_v21, %v1980_v21  ;;  %v970_v20 = vld [vmem:[#allocation3 + $0xc30] sm:$0xff] }
 0x2e5   :  { %v1482_v21 = vld [vmem:[#allocation6 + $0xc30] sm:$0xff] }
 0x2e6   :  { %v5041_v42 = vadd.f32 %v5040_v37, %v2479_v31  ;;  %v1982_v31 = vsub.f32 %v958_v24, %v1470_v25  ;;  %v2493_v37 = vmul.f32 %v1981_v26, %v1981_v26  ;;  %v971_v25 = vld [vmem:[#allocation3 + $0xc38] sm:$0xff] }
 0x2e7   :  { %v1483_v26 = vld [vmem:[#allocation6 + $0xc38] sm:$0xff] }
 0x2e8   :  { %v5042_v47 = vadd.f32 %v5041_v42, %v2480_v36  ;;  %v1983_v36 = vsub.f32 %v959_v29, %v1471_v30  ;;  %v2494_v42 = vmul.f32 %v1982_v31, %v1982_v31  ;;  %v972_v30 = vld [vmem:[#allocation3 + $0xc40] sm:$0xff] }
 0x2e9   :  { %v1484_v31 = vld [vmem:[#allocation6 + $0xc40] sm:$0xff] }
 0x2ea   :  { %v5043_v52 = vadd.f32 %v5042_v47, %v2481_v41  ;;  %v1984_v41 = vsub.f32 %v960_v34, %v1472_v35  ;;  %v2495_v47 = vmul.f32 %v1983_v36, %v1983_v36  ;;  %v973_v35 = vld [vmem:[#allocation3 + $0xc48] sm:$0xff] }
 0x2eb   :  { %v1485_v36 = vld [vmem:[#allocation6 + $0xc48] sm:$0xff] }
 0x2ec   :  { %v5044_v57 = vadd.f32 %v5043_v52, %v2482_v46  ;;  %v1985_v46 = vsub.f32 %v961_v39, %v1473_v40  ;;  %v2496_v52 = vmul.f32 %v1984_v41, %v1984_v41  ;;  %v974_v40 = vld [vmem:[#allocation3 + $0xc50] sm:$0xff] }
 0x2ed   :  { %v1486_v41 = vld [vmem:[#allocation6 + $0xc50] sm:$0xff] }
 0x2ee   :  { %v5045_v62 = vadd.f32 %v5044_v57, %v2483_v51  ;;  %v1986_v51 = vsub.f32 %v962_v44, %v1474_v45  ;;  %v2497_v57 = vmul.f32 %v1985_v46, %v1985_v46  ;;  %v975_v45 = vld [vmem:[#allocation3 + $0xc58] sm:$0xff] }
 0x2ef   :  { %v1487_v46 = vld [vmem:[#allocation6 + $0xc58] sm:$0xff] }
 0x2f0   :  { %v5046_v3 = vadd.f32 %v5045_v62, %v2484_v56  ;;  %v1987_v56 = vsub.f32 %v963_v49, %v1475_v50  ;;  %v2498_v62 = vmul.f32 %v1986_v51, %v1986_v51  ;;  %v976_v50 = vld [vmem:[#allocation3 + $0xc60] sm:$0xff] }
 0x2f1   :  { %v1488_v51 = vld [vmem:[#allocation6 + $0xc60] sm:$0xff] }
 0x2f2   :  { %v5047_v8 = vadd.f32 %v5046_v3, %v2485_v61  ;;  %v1988_v61 = vsub.f32 %v964_v54, %v1476_v55  ;;  %v2499_v3 = vmul.f32 %v1987_v56, %v1987_v56  ;;  %v977_v55 = vld [vmem:[#allocation3 + $0xc68] sm:$0xff] }
 0x2f3   :  { %v1489_v56 = vld [vmem:[#allocation6 + $0xc68] sm:$0xff] }
 0x2f4   :  { %v5048_v13 = vadd.f32 %v5047_v8, %v2486_v2  ;;  %v1989_v2 = vsub.f32 %v965_v59, %v1477_v60  ;;  %v2500_v8 = vmul.f32 %v1988_v61, %v1988_v61  ;;  %v978_v60 = vld [vmem:[#allocation3 + $0xc70] sm:$0xff] }
 0x2f5   :  { %v1490_v61 = vld [vmem:[#allocation6 + $0xc70] sm:$0xff] }
 0x2f6   :  { %v5049_v18 = vadd.f32 %v5048_v13, %v2487_v7  ;;  %v1990_v7 = vsub.f32 %v966_v0, %v1478_v1  ;;  %v2501_v13 = vmul.f32 %v1989_v2, %v1989_v2  ;;  %v979_v1 = vld [vmem:[#allocation3 + $0xc78] sm:$0xff] }
 0x2f7   :  { %v1491_v2 = vld [vmem:[#allocation6 + $0xc78] sm:$0xff] }
 0x2f8   :  { %v5050_v23 = vadd.f32 %v5049_v18, %v2488_v12  ;;  %v1991_v12 = vsub.f32 %v967_v5, %v1479_v6  ;;  %v2502_v18 = vmul.f32 %v1990_v7, %v1990_v7  ;;  %v980_v6 = vld [vmem:[#allocation3 + $0xc80] sm:$0xff] }
 0x2f9   :  { %v1492_v7 = vld [vmem:[#allocation6 + $0xc80] sm:$0xff] }
 0x2fa   :  { %v5051_v28 = vadd.f32 %v5050_v23, %v2489_v17  ;;  %v1992_v17 = vsub.f32 %v968_v10, %v1480_v11  ;;  %v2503_v23 = vmul.f32 %v1991_v12, %v1991_v12  ;;  %v981_v11 = vld [vmem:[#allocation3 + $0xc88] sm:$0xff] }
 0x2fb   :  { %v1493_v12 = vld [vmem:[#allocation6 + $0xc88] sm:$0xff] }
 0x2fc   :  { %v5052_v33 = vadd.f32 %v5051_v28, %v2490_v22  ;;  %v1993_v22 = vsub.f32 %v969_v15, %v1481_v16  ;;  %v2504_v28 = vmul.f32 %v1992_v17, %v1992_v17  ;;  %v982_v16 = vld [vmem:[#allocation3 + $0xc90] sm:$0xff] }
 0x2fd   :  { %v1494_v17 = vld [vmem:[#allocation6 + $0xc90] sm:$0xff] }
 0x2fe   :  { %v5053_v38 = vadd.f32 %v5052_v33, %v2491_v27  ;;  %v1994_v27 = vsub.f32 %v970_v20, %v1482_v21  ;;  %v2505_v33 = vmul.f32 %v1993_v22, %v1993_v22  ;;  %v983_v21 = vld [vmem:[#allocation3 + $0xc98] sm:$0xff] }
 0x2ff   :  { %v1495_v22 = vld [vmem:[#allocation6 + $0xc98] sm:$0xff] }
 0x300   :  { %v5054_v43 = vadd.f32 %v5053_v38, %v2492_v32  ;;  %v1995_v32 = vsub.f32 %v971_v25, %v1483_v26  ;;  %v2506_v38 = vmul.f32 %v1994_v27, %v1994_v27  ;;  %v984_v26 = vld [vmem:[#allocation3 + $0xca0] sm:$0xff] }
 0x301   :  { %v1496_v27 = vld [vmem:[#allocation6 + $0xca0] sm:$0xff] }
 0x302   :  { %v5055_v48 = vadd.f32 %v5054_v43, %v2493_v37  ;;  %v1996_v37 = vsub.f32 %v972_v30, %v1484_v31  ;;  %v2507_v43 = vmul.f32 %v1995_v32, %v1995_v32  ;;  %v985_v31 = vld [vmem:[#allocation3 + $0xca8] sm:$0xff] }
 0x303   :  { %v1497_v32 = vld [vmem:[#allocation6 + $0xca8] sm:$0xff] }
 0x304   :  { %v5056_v53 = vadd.f32 %v5055_v48, %v2494_v42  ;;  %v1997_v42 = vsub.f32 %v973_v35, %v1485_v36  ;;  %v2508_v48 = vmul.f32 %v1996_v37, %v1996_v37  ;;  %v986_v36 = vld [vmem:[#allocation3 + $0xcb0] sm:$0xff] }
 0x305   :  { %v1498_v37 = vld [vmem:[#allocation6 + $0xcb0] sm:$0xff] }
 0x306   :  { %v5057_v58 = vadd.f32 %v5056_v53, %v2495_v47  ;;  %v1998_v47 = vsub.f32 %v974_v40, %v1486_v41  ;;  %v2509_v53 = vmul.f32 %v1997_v42, %v1997_v42  ;;  %v987_v41 = vld [vmem:[#allocation3 + $0xcb8] sm:$0xff] }
 0x307   :  { %v1499_v42 = vld [vmem:[#allocation6 + $0xcb8] sm:$0xff] }
 0x308   :  { %v5058_v63 = vadd.f32 %v5057_v58, %v2496_v52  ;;  %v1999_v52 = vsub.f32 %v975_v45, %v1487_v46  ;;  %v2510_v58 = vmul.f32 %v1998_v47, %v1998_v47  ;;  %v988_v46 = vld [vmem:[#allocation3 + $0xcc0] sm:$0xff] }
 0x309   :  { %v1500_v47 = vld [vmem:[#allocation6 + $0xcc0] sm:$0xff] }
 0x30a   :  { %v5059_v4 = vadd.f32 %v5058_v63, %v2497_v57  ;;  %v2000_v57 = vsub.f32 %v976_v50, %v1488_v51  ;;  %v2511_v63 = vmul.f32 %v1999_v52, %v1999_v52  ;;  %v989_v51 = vld [vmem:[#allocation3 + $0xcc8] sm:$0xff] }
 0x30b   :  { %v1501_v52 = vld [vmem:[#allocation6 + $0xcc8] sm:$0xff] }
 0x30c   :  { %v5060_v9 = vadd.f32 %v5059_v4, %v2498_v62  ;;  %v2001_v62 = vsub.f32 %v977_v55, %v1489_v56  ;;  %v2512_v4 = vmul.f32 %v2000_v57, %v2000_v57  ;;  %v990_v56 = vld [vmem:[#allocation3 + $0xcd0] sm:$0xff] }
 0x30d   :  { %v1502_v57 = vld [vmem:[#allocation6 + $0xcd0] sm:$0xff] }
 0x30e   :  { %v5061_v14 = vadd.f32 %v5060_v9, %v2499_v3  ;;  %v2002_v3 = vsub.f32 %v978_v60, %v1490_v61  ;;  %v2513_v9 = vmul.f32 %v2001_v62, %v2001_v62  ;;  %v991_v61 = vld [vmem:[#allocation3 + $0xcd8] sm:$0xff] }
 0x30f   :  { %v1503_v62 = vld [vmem:[#allocation6 + $0xcd8] sm:$0xff] }
 0x310   :  { %v5062_v19 = vadd.f32 %v5061_v14, %v2500_v8  ;;  %v2003_v8 = vsub.f32 %v979_v1, %v1491_v2  ;;  %v2514_v14 = vmul.f32 %v2002_v3, %v2002_v3  ;;  %v992_v2 = vld [vmem:[#allocation3 + $0xce0] sm:$0xff] }
 0x311   :  { %v1504_v3 = vld [vmem:[#allocation6 + $0xce0] sm:$0xff] }
 0x312   :  { %v5063_v24 = vadd.f32 %v5062_v19, %v2501_v13  ;;  %v2004_v13 = vsub.f32 %v980_v6, %v1492_v7  ;;  %v2515_v19 = vmul.f32 %v2003_v8, %v2003_v8  ;;  %v993_v7 = vld [vmem:[#allocation3 + $0xce8] sm:$0xff] }
 0x313   :  { %v1505_v8 = vld [vmem:[#allocation6 + $0xce8] sm:$0xff] }
 0x314   :  { %v5064_v29 = vadd.f32 %v5063_v24, %v2502_v18  ;;  %v2005_v18 = vsub.f32 %v981_v11, %v1493_v12  ;;  %v2516_v24 = vmul.f32 %v2004_v13, %v2004_v13  ;;  %v994_v12 = vld [vmem:[#allocation3 + $0xcf0] sm:$0xff] }
 0x315   :  { %v1506_v13 = vld [vmem:[#allocation6 + $0xcf0] sm:$0xff] }
 0x316   :  { %v5065_v34 = vadd.f32 %v5064_v29, %v2503_v23  ;;  %v2006_v23 = vsub.f32 %v982_v16, %v1494_v17  ;;  %v2517_v29 = vmul.f32 %v2005_v18, %v2005_v18  ;;  %v995_v17 = vld [vmem:[#allocation3 + $0xcf8] sm:$0xff] }
 0x317   :  { %v1507_v18 = vld [vmem:[#allocation6 + $0xcf8] sm:$0xff] }
 0x318   :  { %v5066_v39 = vadd.f32 %v5065_v34, %v2504_v28  ;;  %v2007_v28 = vsub.f32 %v983_v21, %v1495_v22  ;;  %v2518_v34 = vmul.f32 %v2006_v23, %v2006_v23  ;;  %v996_v22 = vld [vmem:[#allocation3 + $0xd00] sm:$0xff] }
 0x319   :  { %v1508_v23 = vld [vmem:[#allocation6 + $0xd00] sm:$0xff] }
 0x31a   :  { %v5067_v44 = vadd.f32 %v5066_v39, %v2505_v33  ;;  %v2008_v33 = vsub.f32 %v984_v26, %v1496_v27  ;;  %v2519_v39 = vmul.f32 %v2007_v28, %v2007_v28  ;;  %v997_v27 = vld [vmem:[#allocation3 + $0xd08] sm:$0xff] }
 0x31b   :  { %v1509_v28 = vld [vmem:[#allocation6 + $0xd08] sm:$0xff] }
 0x31c   :  { %v5068_v49 = vadd.f32 %v5067_v44, %v2506_v38  ;;  %v2009_v38 = vsub.f32 %v985_v31, %v1497_v32  ;;  %v2520_v44 = vmul.f32 %v2008_v33, %v2008_v33  ;;  %v998_v32 = vld [vmem:[#allocation3 + $0xd10] sm:$0xff] }
 0x31d   :  { %v1510_v33 = vld [vmem:[#allocation6 + $0xd10] sm:$0xff] }
 0x31e   :  { %v5069_v54 = vadd.f32 %v5068_v49, %v2507_v43  ;;  %v2010_v43 = vsub.f32 %v986_v36, %v1498_v37  ;;  %v2521_v49 = vmul.f32 %v2009_v38, %v2009_v38  ;;  %v999_v37 = vld [vmem:[#allocation3 + $0xd18] sm:$0xff] }
 0x31f   :  { %v1511_v38 = vld [vmem:[#allocation6 + $0xd18] sm:$0xff] }
 0x320   :  { %v5070_v59 = vadd.f32 %v5069_v54, %v2508_v48  ;;  %v2011_v48 = vsub.f32 %v987_v41, %v1499_v42  ;;  %v2522_v54 = vmul.f32 %v2010_v43, %v2010_v43  ;;  %v1000_v42 = vld [vmem:[#allocation3 + $0xd20] sm:$0xff] }
 0x321   :  { %v1512_v43 = vld [vmem:[#allocation6 + $0xd20] sm:$0xff] }
 0x322   :  { %v5071_v0 = vadd.f32 %v5070_v59, %v2509_v53  ;;  %v2012_v53 = vsub.f32 %v988_v46, %v1500_v47  ;;  %v2523_v59 = vmul.f32 %v2011_v48, %v2011_v48  ;;  %v1001_v47 = vld [vmem:[#allocation3 + $0xd28] sm:$0xff] }
 0x323   :  { %v1513_v48 = vld [vmem:[#allocation6 + $0xd28] sm:$0xff] }
 0x324   :  { %v5072_v5 = vadd.f32 %v5071_v0, %v2510_v58  ;;  %v2013_v58 = vsub.f32 %v989_v51, %v1501_v52  ;;  %v2524_v0 = vmul.f32 %v2012_v53, %v2012_v53  ;;  %v1002_v52 = vld [vmem:[#allocation3 + $0xd30] sm:$0xff] }
 0x325   :  { %v1514_v53 = vld [vmem:[#allocation6 + $0xd30] sm:$0xff] }
 0x326   :  { %v5073_v10 = vadd.f32 %v5072_v5, %v2511_v63  ;;  %v2014_v63 = vsub.f32 %v990_v56, %v1502_v57  ;;  %v2525_v5 = vmul.f32 %v2013_v58, %v2013_v58  ;;  %v1003_v57 = vld [vmem:[#allocation3 + $0xd38] sm:$0xff] }
 0x327   :  { %v1515_v58 = vld [vmem:[#allocation6 + $0xd38] sm:$0xff] }
 0x328   :  { %v5074_v15 = vadd.f32 %v5073_v10, %v2512_v4  ;;  %v2015_v4 = vsub.f32 %v991_v61, %v1503_v62  ;;  %v2526_v10 = vmul.f32 %v2014_v63, %v2014_v63  ;;  %v1004_v62 = vld [vmem:[#allocation3 + $0xd40] sm:$0xff] }
 0x329   :  { %v1516_v63 = vld [vmem:[#allocation6 + $0xd40] sm:$0xff] }
 0x32a   :  { %v5075_v20 = vadd.f32 %v5074_v15, %v2513_v9  ;;  %v2016_v9 = vsub.f32 %v992_v2, %v1504_v3  ;;  %v2527_v15 = vmul.f32 %v2015_v4, %v2015_v4  ;;  %v1005_v3 = vld [vmem:[#allocation3 + $0xd48] sm:$0xff] }
 0x32b   :  { %v1517_v4 = vld [vmem:[#allocation6 + $0xd48] sm:$0xff] }
 0x32c   :  { %v5076_v25 = vadd.f32 %v5075_v20, %v2514_v14  ;;  %v2017_v14 = vsub.f32 %v993_v7, %v1505_v8  ;;  %v2528_v20 = vmul.f32 %v2016_v9, %v2016_v9  ;;  %v1006_v8 = vld [vmem:[#allocation3 + $0xd50] sm:$0xff] }
 0x32d   :  { %v1518_v9 = vld [vmem:[#allocation6 + $0xd50] sm:$0xff] }
 0x32e   :  { %v5077_v30 = vadd.f32 %v5076_v25, %v2515_v19  ;;  %v2018_v19 = vsub.f32 %v994_v12, %v1506_v13  ;;  %v2529_v25 = vmul.f32 %v2017_v14, %v2017_v14  ;;  %v1007_v13 = vld [vmem:[#allocation3 + $0xd58] sm:$0xff] }
 0x32f   :  { %v1519_v14 = vld [vmem:[#allocation6 + $0xd58] sm:$0xff] }
 0x330   :  { %v5078_v35 = vadd.f32 %v5077_v30, %v2516_v24  ;;  %v2019_v24 = vsub.f32 %v995_v17, %v1507_v18  ;;  %v2530_v30 = vmul.f32 %v2018_v19, %v2018_v19  ;;  %v1008_v18 = vld [vmem:[#allocation3 + $0xd60] sm:$0xff] }
 0x331   :  { %v1520_v19 = vld [vmem:[#allocation6 + $0xd60] sm:$0xff] }
 0x332   :  { %v5079_v40 = vadd.f32 %v5078_v35, %v2517_v29  ;;  %v2020_v29 = vsub.f32 %v996_v22, %v1508_v23  ;;  %v2531_v35 = vmul.f32 %v2019_v24, %v2019_v24  ;;  %v1009_v23 = vld [vmem:[#allocation3 + $0xd68] sm:$0xff] }
 0x333   :  { %v1521_v24 = vld [vmem:[#allocation6 + $0xd68] sm:$0xff] }
 0x334   :  { %v5080_v45 = vadd.f32 %v5079_v40, %v2518_v34  ;;  %v2021_v34 = vsub.f32 %v997_v27, %v1509_v28  ;;  %v2532_v40 = vmul.f32 %v2020_v29, %v2020_v29  ;;  %v1010_v28 = vld [vmem:[#allocation3 + $0xd70] sm:$0xff] }
 0x335   :  { %v1522_v29 = vld [vmem:[#allocation6 + $0xd70] sm:$0xff] }
 0x336   :  { %v5081_v50 = vadd.f32 %v5080_v45, %v2519_v39  ;;  %v2022_v39 = vsub.f32 %v998_v32, %v1510_v33  ;;  %v2533_v45 = vmul.f32 %v2021_v34, %v2021_v34  ;;  %v1011_v33 = vld [vmem:[#allocation3 + $0xd78] sm:$0xff] }
 0x337   :  { %v1523_v34 = vld [vmem:[#allocation6 + $0xd78] sm:$0xff] }
 0x338   :  { %v5082_v55 = vadd.f32 %v5081_v50, %v2520_v44  ;;  %v2023_v44 = vsub.f32 %v999_v37, %v1511_v38  ;;  %v2534_v50 = vmul.f32 %v2022_v39, %v2022_v39  ;;  %v1012_v38 = vld [vmem:[#allocation3 + $0xd80] sm:$0xff] }
 0x339   :  { %v1524_v39 = vld [vmem:[#allocation6 + $0xd80] sm:$0xff] }
 0x33a   :  { %v5083_v60 = vadd.f32 %v5082_v55, %v2521_v49  ;;  %v2024_v49 = vsub.f32 %v1000_v42, %v1512_v43  ;;  %v2535_v55 = vmul.f32 %v2023_v44, %v2023_v44  ;;  %v1013_v43 = vld [vmem:[#allocation3 + $0xd88] sm:$0xff] }
 0x33b   :  { %v1525_v44 = vld [vmem:[#allocation6 + $0xd88] sm:$0xff] }
 0x33c   :  { %v5084_v1 = vadd.f32 %v5083_v60, %v2522_v54  ;;  %v2025_v54 = vsub.f32 %v1001_v47, %v1513_v48  ;;  %v2536_v60 = vmul.f32 %v2024_v49, %v2024_v49  ;;  %v1014_v48 = vld [vmem:[#allocation3 + $0xd90] sm:$0xff] }
 0x33d   :  { %v1526_v49 = vld [vmem:[#allocation6 + $0xd90] sm:$0xff] }
 0x33e   :  { %v5085_v6 = vadd.f32 %v5084_v1, %v2523_v59  ;;  %v2026_v59 = vsub.f32 %v1002_v52, %v1514_v53  ;;  %v2537_v1 = vmul.f32 %v2025_v54, %v2025_v54  ;;  %v1015_v53 = vld [vmem:[#allocation3 + $0xd98] sm:$0xff] }
 0x33f   :  { %v1527_v54 = vld [vmem:[#allocation6 + $0xd98] sm:$0xff] }
 0x340   :  { %v5086_v11 = vadd.f32 %v5085_v6, %v2524_v0  ;;  %v2027_v0 = vsub.f32 %v1003_v57, %v1515_v58  ;;  %v2538_v6 = vmul.f32 %v2026_v59, %v2026_v59  ;;  %v1016_v58 = vld [vmem:[#allocation3 + $0xda0] sm:$0xff] }
 0x341   :  { %v1528_v59 = vld [vmem:[#allocation6 + $0xda0] sm:$0xff] }
 0x342   :  { %v5087_v16 = vadd.f32 %v5086_v11, %v2525_v5  ;;  %v2028_v5 = vsub.f32 %v1004_v62, %v1516_v63  ;;  %v2539_v11 = vmul.f32 %v2027_v0, %v2027_v0  ;;  %v1017_v63 = vld [vmem:[#allocation3 + $0xda8] sm:$0xff] }
 0x343   :  { %v1529_v0 = vld [vmem:[#allocation6 + $0xda8] sm:$0xff] }
 0x344   :  { %v5088_v21 = vadd.f32 %v5087_v16, %v2526_v10  ;;  %v2029_v10 = vsub.f32 %v1005_v3, %v1517_v4  ;;  %v2540_v16 = vmul.f32 %v2028_v5, %v2028_v5  ;;  %v1018_v4 = vld [vmem:[#allocation3 + $0xdb0] sm:$0xff] }
 0x345   :  { %v1530_v5 = vld [vmem:[#allocation6 + $0xdb0] sm:$0xff] }
 0x346   :  { %v5089_v26 = vadd.f32 %v5088_v21, %v2527_v15  ;;  %v2030_v15 = vsub.f32 %v1006_v8, %v1518_v9  ;;  %v2541_v21 = vmul.f32 %v2029_v10, %v2029_v10  ;;  %v1019_v9 = vld [vmem:[#allocation3 + $0xdb8] sm:$0xff] }
 0x347   :  { %v1531_v10 = vld [vmem:[#allocation6 + $0xdb8] sm:$0xff] }
 0x348   :  { %v5090_v31 = vadd.f32 %v5089_v26, %v2528_v20  ;;  %v2031_v20 = vsub.f32 %v1007_v13, %v1519_v14  ;;  %v2542_v26 = vmul.f32 %v2030_v15, %v2030_v15  ;;  %v1020_v14 = vld [vmem:[#allocation3 + $0xdc0] sm:$0xff] }
 0x349   :  { %v1532_v15 = vld [vmem:[#allocation6 + $0xdc0] sm:$0xff] }
 0x34a   :  { %v5091_v36 = vadd.f32 %v5090_v31, %v2529_v25  ;;  %v2032_v25 = vsub.f32 %v1008_v18, %v1520_v19  ;;  %v2543_v31 = vmul.f32 %v2031_v20, %v2031_v20  ;;  %v1021_v19 = vld [vmem:[#allocation3 + $0xdc8] sm:$0xff] }
 0x34b   :  { %v1533_v20 = vld [vmem:[#allocation6 + $0xdc8] sm:$0xff] }
 0x34c   :  { %v5092_v41 = vadd.f32 %v5091_v36, %v2530_v30  ;;  %v2033_v30 = vsub.f32 %v1009_v23, %v1521_v24  ;;  %v2544_v36 = vmul.f32 %v2032_v25, %v2032_v25  ;;  %v1022_v24 = vld [vmem:[#allocation3 + $0xdd0] sm:$0xff] }
 0x34d   :  { %v1534_v25 = vld [vmem:[#allocation6 + $0xdd0] sm:$0xff] }
 0x34e   :  { %v5093_v46 = vadd.f32 %v5092_v41, %v2531_v35  ;;  %v2034_v35 = vsub.f32 %v1010_v28, %v1522_v29  ;;  %v2545_v41 = vmul.f32 %v2033_v30, %v2033_v30  ;;  %v1023_v29 = vld [vmem:[#allocation3 + $0xdd8] sm:$0xff] }
 0x34f   :  { %v1535_v30 = vld [vmem:[#allocation6 + $0xdd8] sm:$0xff] }
 0x350   :  { %v5094_v51 = vadd.f32 %v5093_v46, %v2532_v40  ;;  %v2035_v40 = vsub.f32 %v1011_v33, %v1523_v34  ;;  %v2546_v46 = vmul.f32 %v2034_v35, %v2034_v35  ;;  %v1024_v34 = vld [vmem:[#allocation3 + $0xde0] sm:$0xff] }
 0x351   :  { %v1536_v35 = vld [vmem:[#allocation6 + $0xde0] sm:$0xff] }
 0x352   :  { %v5095_v56 = vadd.f32 %v5094_v51, %v2533_v45  ;;  %v2036_v45 = vsub.f32 %v1012_v38, %v1524_v39  ;;  %v2547_v51 = vmul.f32 %v2035_v40, %v2035_v40  ;;  %v1025_v39 = vld [vmem:[#allocation3 + $0xde8] sm:$0xff] }
 0x353   :  { %v1537_v40 = vld [vmem:[#allocation6 + $0xde8] sm:$0xff] }
 0x354   :  { %v5096_v61 = vadd.f32 %v5095_v56, %v2534_v50  ;;  %v2037_v50 = vsub.f32 %v1013_v43, %v1525_v44  ;;  %v2548_v56 = vmul.f32 %v2036_v45, %v2036_v45  ;;  %v1026_v44 = vld [vmem:[#allocation3 + $0xdf0] sm:$0xff] }
 0x355   :  { %v1538_v45 = vld [vmem:[#allocation6 + $0xdf0] sm:$0xff] }
 0x356   :  { %v5097_v2 = vadd.f32 %v5096_v61, %v2535_v55  ;;  %v2038_v55 = vsub.f32 %v1014_v48, %v1526_v49  ;;  %v2549_v61 = vmul.f32 %v2037_v50, %v2037_v50  ;;  %v1027_v49 = vld [vmem:[#allocation3 + $0xdf8] sm:$0xff] }
 0x357   :  { %v1539_v50 = vld [vmem:[#allocation6 + $0xdf8] sm:$0xff] }
 0x358   :  { %v5098_v7 = vadd.f32 %v5097_v2, %v2536_v60  ;;  %v2039_v60 = vsub.f32 %v1015_v53, %v1527_v54  ;;  %v2550_v2 = vmul.f32 %v2038_v55, %v2038_v55  ;;  %v1028_v54 = vld [vmem:[#allocation3 + $0xe00] sm:$0xff] }
 0x359   :  { %v1540_v55 = vld [vmem:[#allocation6 + $0xe00] sm:$0xff] }
 0x35a   :  { %v5099_v12 = vadd.f32 %v5098_v7, %v2537_v1  ;;  %v2040_v1 = vsub.f32 %v1016_v58, %v1528_v59  ;;  %v2551_v7 = vmul.f32 %v2039_v60, %v2039_v60  ;;  %v1029_v59 = vld [vmem:[#allocation3 + $0xe08] sm:$0xff] }
 0x35b   :  { %v1541_v60 = vld [vmem:[#allocation6 + $0xe08] sm:$0xff] }
 0x35c   :  { %v5100_v17 = vadd.f32 %v5099_v12, %v2538_v6  ;;  %v2041_v6 = vsub.f32 %v1017_v63, %v1529_v0  ;;  %v2552_v12 = vmul.f32 %v2040_v1, %v2040_v1  ;;  %v1030_v0 = vld [vmem:[#allocation3 + $0xe10] sm:$0xff] }
 0x35d   :  { %v1542_v1 = vld [vmem:[#allocation6 + $0xe10] sm:$0xff] }
 0x35e   :  { %v5101_v22 = vadd.f32 %v5100_v17, %v2539_v11  ;;  %v2042_v11 = vsub.f32 %v1018_v4, %v1530_v5  ;;  %v2553_v17 = vmul.f32 %v2041_v6, %v2041_v6  ;;  %v1031_v5 = vld [vmem:[#allocation3 + $0xe18] sm:$0xff] }
 0x35f   :  { %v1543_v6 = vld [vmem:[#allocation6 + $0xe18] sm:$0xff] }
 0x360   :  { %v5102_v27 = vadd.f32 %v5101_v22, %v2540_v16  ;;  %v2043_v16 = vsub.f32 %v1019_v9, %v1531_v10  ;;  %v2554_v22 = vmul.f32 %v2042_v11, %v2042_v11  ;;  %v1032_v10 = vld [vmem:[#allocation3 + $0xe20] sm:$0xff] }
 0x361   :  { %v1544_v11 = vld [vmem:[#allocation6 + $0xe20] sm:$0xff] }
 0x362   :  { %v5103_v32 = vadd.f32 %v5102_v27, %v2541_v21  ;;  %v2044_v21 = vsub.f32 %v1020_v14, %v1532_v15  ;;  %v2555_v27 = vmul.f32 %v2043_v16, %v2043_v16  ;;  %v1033_v15 = vld [vmem:[#allocation3 + $0xe28] sm:$0xff] }
 0x363   :  { %v1545_v16 = vld [vmem:[#allocation6 + $0xe28] sm:$0xff] }
 0x364   :  { %v5104_v37 = vadd.f32 %v5103_v32, %v2542_v26  ;;  %v2045_v26 = vsub.f32 %v1021_v19, %v1533_v20  ;;  %v2556_v32 = vmul.f32 %v2044_v21, %v2044_v21  ;;  %v1034_v20 = vld [vmem:[#allocation3 + $0xe30] sm:$0xff] }
 0x365   :  { %v1546_v21 = vld [vmem:[#allocation6 + $0xe30] sm:$0xff] }
 0x366   :  { %v5105_v42 = vadd.f32 %v5104_v37, %v2543_v31  ;;  %v2046_v31 = vsub.f32 %v1022_v24, %v1534_v25  ;;  %v2557_v37 = vmul.f32 %v2045_v26, %v2045_v26  ;;  %v1035_v25 = vld [vmem:[#allocation3 + $0xe38] sm:$0xff] }
 0x367   :  { %v1547_v26 = vld [vmem:[#allocation6 + $0xe38] sm:$0xff] }
 0x368   :  { %v5106_v47 = vadd.f32 %v5105_v42, %v2544_v36  ;;  %v2047_v36 = vsub.f32 %v1023_v29, %v1535_v30  ;;  %v2558_v42 = vmul.f32 %v2046_v31, %v2046_v31  ;;  %v1036_v30 = vld [vmem:[#allocation3 + $0xe40] sm:$0xff] }
 0x369   :  { %v1548_v31 = vld [vmem:[#allocation6 + $0xe40] sm:$0xff] }
 0x36a   :  { %v5107_v52 = vadd.f32 %v5106_v47, %v2545_v41  ;;  %v2048_v41 = vsub.f32 %v1024_v34, %v1536_v35  ;;  %v2559_v47 = vmul.f32 %v2047_v36, %v2047_v36  ;;  %v1037_v35 = vld [vmem:[#allocation3 + $0xe48] sm:$0xff] }
 0x36b   :  { %v1549_v36 = vld [vmem:[#allocation6 + $0xe48] sm:$0xff] }
 0x36c   :  { %v5108_v57 = vadd.f32 %v5107_v52, %v2546_v46  ;;  %v2049_v46 = vsub.f32 %v1025_v39, %v1537_v40  ;;  %v2560_v52 = vmul.f32 %v2048_v41, %v2048_v41  ;;  %v1038_v40 = vld [vmem:[#allocation3 + $0xe50] sm:$0xff] }
 0x36d   :  { %v1550_v41 = vld [vmem:[#allocation6 + $0xe50] sm:$0xff] }
 0x36e   :  { %v5109_v62 = vadd.f32 %v5108_v57, %v2547_v51  ;;  %v2050_v51 = vsub.f32 %v1026_v44, %v1538_v45  ;;  %v2561_v57 = vmul.f32 %v2049_v46, %v2049_v46  ;;  %v1039_v45 = vld [vmem:[#allocation3 + $0xe58] sm:$0xff] }
 0x36f   :  { %v1551_v46 = vld [vmem:[#allocation6 + $0xe58] sm:$0xff] }
 0x370   :  { %v5110_v3 = vadd.f32 %v5109_v62, %v2548_v56  ;;  %v2051_v56 = vsub.f32 %v1027_v49, %v1539_v50  ;;  %v2562_v62 = vmul.f32 %v2050_v51, %v2050_v51  ;;  %v1040_v50 = vld [vmem:[#allocation3 + $0xe60] sm:$0xff] }
 0x371   :  { %v1552_v51 = vld [vmem:[#allocation6 + $0xe60] sm:$0xff] }
 0x372   :  { %v5111_v8 = vadd.f32 %v5110_v3, %v2549_v61  ;;  %v2052_v61 = vsub.f32 %v1028_v54, %v1540_v55  ;;  %v2563_v3 = vmul.f32 %v2051_v56, %v2051_v56  ;;  %v1041_v55 = vld [vmem:[#allocation3 + $0xe68] sm:$0xff] }
 0x373   :  { %v1553_v56 = vld [vmem:[#allocation6 + $0xe68] sm:$0xff] }
 0x374   :  { %v5112_v13 = vadd.f32 %v5111_v8, %v2550_v2  ;;  %v2053_v2 = vsub.f32 %v1029_v59, %v1541_v60  ;;  %v2564_v8 = vmul.f32 %v2052_v61, %v2052_v61  ;;  %v1042_v60 = vld [vmem:[#allocation3 + $0xe70] sm:$0xff] }
 0x375   :  { %v1554_v61 = vld [vmem:[#allocation6 + $0xe70] sm:$0xff] }
 0x376   :  { %v5113_v18 = vadd.f32 %v5112_v13, %v2551_v7  ;;  %v2054_v7 = vsub.f32 %v1030_v0, %v1542_v1  ;;  %v2565_v13 = vmul.f32 %v2053_v2, %v2053_v2  ;;  %v1043_v1 = vld [vmem:[#allocation3 + $0xe78] sm:$0xff] }
 0x377   :  { %v1555_v2 = vld [vmem:[#allocation6 + $0xe78] sm:$0xff] }
 0x378   :  { %v5114_v23 = vadd.f32 %v5113_v18, %v2552_v12  ;;  %v2055_v12 = vsub.f32 %v1031_v5, %v1543_v6  ;;  %v2566_v18 = vmul.f32 %v2054_v7, %v2054_v7  ;;  %v1044_v6 = vld [vmem:[#allocation3 + $0xe80] sm:$0xff] }
 0x379   :  { %v1556_v7 = vld [vmem:[#allocation6 + $0xe80] sm:$0xff] }
 0x37a   :  { %v5115_v28 = vadd.f32 %v5114_v23, %v2553_v17  ;;  %v2056_v17 = vsub.f32 %v1032_v10, %v1544_v11  ;;  %v2567_v23 = vmul.f32 %v2055_v12, %v2055_v12  ;;  %v1045_v11 = vld [vmem:[#allocation3 + $0xe88] sm:$0xff] }
 0x37b   :  { %v1557_v12 = vld [vmem:[#allocation6 + $0xe88] sm:$0xff] }
 0x37c   :  { %v5116_v33 = vadd.f32 %v5115_v28, %v2554_v22  ;;  %v2057_v22 = vsub.f32 %v1033_v15, %v1545_v16  ;;  %v2568_v28 = vmul.f32 %v2056_v17, %v2056_v17  ;;  %v1046_v16 = vld [vmem:[#allocation3 + $0xe90] sm:$0xff] }
 0x37d   :  { %v1558_v17 = vld [vmem:[#allocation6 + $0xe90] sm:$0xff] }
 0x37e   :  { %v5117_v38 = vadd.f32 %v5116_v33, %v2555_v27  ;;  %v2058_v27 = vsub.f32 %v1034_v20, %v1546_v21  ;;  %v2569_v33 = vmul.f32 %v2057_v22, %v2057_v22  ;;  %v1047_v21 = vld [vmem:[#allocation3 + $0xe98] sm:$0xff] }
 0x37f   :  { %v1559_v22 = vld [vmem:[#allocation6 + $0xe98] sm:$0xff] }
 0x380   :  { %v5118_v43 = vadd.f32 %v5117_v38, %v2556_v32  ;;  %v2059_v32 = vsub.f32 %v1035_v25, %v1547_v26  ;;  %v2570_v38 = vmul.f32 %v2058_v27, %v2058_v27  ;;  %v1048_v26 = vld [vmem:[#allocation3 + $0xea0] sm:$0xff] }
 0x381   :  { %v1560_v27 = vld [vmem:[#allocation6 + $0xea0] sm:$0xff] }
 0x382   :  { %v5119_v48 = vadd.f32 %v5118_v43, %v2557_v37  ;;  %v2060_v37 = vsub.f32 %v1036_v30, %v1548_v31  ;;  %v2571_v43 = vmul.f32 %v2059_v32, %v2059_v32  ;;  %v1049_v31 = vld [vmem:[#allocation3 + $0xea8] sm:$0xff] }
 0x383   :  { %v1561_v32 = vld [vmem:[#allocation6 + $0xea8] sm:$0xff] }
 0x384   :  { %v5120_v53 = vadd.f32 %v5119_v48, %v2558_v42  ;;  %v2061_v42 = vsub.f32 %v1037_v35, %v1549_v36  ;;  %v2572_v48 = vmul.f32 %v2060_v37, %v2060_v37  ;;  %v1050_v36 = vld [vmem:[#allocation3 + $0xeb0] sm:$0xff] }
 0x385   :  { %v1562_v37 = vld [vmem:[#allocation6 + $0xeb0] sm:$0xff] }
 0x386   :  { %v5121_v58 = vadd.f32 %v5120_v53, %v2559_v47  ;;  %v2062_v47 = vsub.f32 %v1038_v40, %v1550_v41  ;;  %v2573_v53 = vmul.f32 %v2061_v42, %v2061_v42  ;;  %v1051_v41 = vld [vmem:[#allocation3 + $0xeb8] sm:$0xff] }
 0x387   :  { %v1563_v42 = vld [vmem:[#allocation6 + $0xeb8] sm:$0xff] }
 0x388   :  { %v5122_v63 = vadd.f32 %v5121_v58, %v2560_v52  ;;  %v2063_v52 = vsub.f32 %v1039_v45, %v1551_v46  ;;  %v2574_v58 = vmul.f32 %v2062_v47, %v2062_v47  ;;  %v1052_v46 = vld [vmem:[#allocation3 + $0xec0] sm:$0xff] }
 0x389   :  { %v1564_v47 = vld [vmem:[#allocation6 + $0xec0] sm:$0xff] }
 0x38a   :  { %v5123_v4 = vadd.f32 %v5122_v63, %v2561_v57  ;;  %v2064_v57 = vsub.f32 %v1040_v50, %v1552_v51  ;;  %v2575_v63 = vmul.f32 %v2063_v52, %v2063_v52  ;;  %v1053_v51 = vld [vmem:[#allocation3 + $0xec8] sm:$0xff] }
 0x38b   :  { %v1565_v52 = vld [vmem:[#allocation6 + $0xec8] sm:$0xff] }
 0x38c   :  { %v5124_v9 = vadd.f32 %v5123_v4, %v2562_v62  ;;  %v2065_v62 = vsub.f32 %v1041_v55, %v1553_v56  ;;  %v2576_v4 = vmul.f32 %v2064_v57, %v2064_v57  ;;  %v1054_v56 = vld [vmem:[#allocation3 + $0xed0] sm:$0xff] }
 0x38d   :  { %v1566_v57 = vld [vmem:[#allocation6 + $0xed0] sm:$0xff] }
 0x38e   :  { %v5125_v14 = vadd.f32 %v5124_v9, %v2563_v3  ;;  %v2066_v3 = vsub.f32 %v1042_v60, %v1554_v61  ;;  %v2577_v9 = vmul.f32 %v2065_v62, %v2065_v62  ;;  %v1055_v61 = vld [vmem:[#allocation3 + $0xed8] sm:$0xff] }
 0x38f   :  { %v1567_v62 = vld [vmem:[#allocation6 + $0xed8] sm:$0xff] }
 0x390   :  { %v5126_v19 = vadd.f32 %v5125_v14, %v2564_v8  ;;  %v2067_v8 = vsub.f32 %v1043_v1, %v1555_v2  ;;  %v2578_v14 = vmul.f32 %v2066_v3, %v2066_v3  ;;  %v1056_v2 = vld [vmem:[#allocation3 + $0xee0] sm:$0xff] }
 0x391   :  { %v1568_v3 = vld [vmem:[#allocation6 + $0xee0] sm:$0xff] }
 0x392   :  { %v5127_v24 = vadd.f32 %v5126_v19, %v2565_v13  ;;  %v2068_v13 = vsub.f32 %v1044_v6, %v1556_v7  ;;  %v2579_v19 = vmul.f32 %v2067_v8, %v2067_v8  ;;  %v1057_v7 = vld [vmem:[#allocation3 + $0xee8] sm:$0xff] }
 0x393   :  { %v1569_v8 = vld [vmem:[#allocation6 + $0xee8] sm:$0xff] }
 0x394   :  { %v5128_v29 = vadd.f32 %v5127_v24, %v2566_v18  ;;  %v2069_v18 = vsub.f32 %v1045_v11, %v1557_v12  ;;  %v2580_v24 = vmul.f32 %v2068_v13, %v2068_v13  ;;  %v1058_v12 = vld [vmem:[#allocation3 + $0xef0] sm:$0xff] }
 0x395   :  { %v1570_v13 = vld [vmem:[#allocation6 + $0xef0] sm:$0xff] }
 0x396   :  { %v5129_v34 = vadd.f32 %v5128_v29, %v2567_v23  ;;  %v2070_v23 = vsub.f32 %v1046_v16, %v1558_v17  ;;  %v2581_v29 = vmul.f32 %v2069_v18, %v2069_v18  ;;  %v1059_v17 = vld [vmem:[#allocation3 + $0xef8] sm:$0xff] }
 0x397   :  { %v1571_v18 = vld [vmem:[#allocation6 + $0xef8] sm:$0xff] }
 0x398   :  { %v5130_v39 = vadd.f32 %v5129_v34, %v2568_v28  ;;  %v2071_v28 = vsub.f32 %v1047_v21, %v1559_v22  ;;  %v2582_v34 = vmul.f32 %v2070_v23, %v2070_v23  ;;  %v1060_v22 = vld [vmem:[#allocation3 + $0xf00] sm:$0xff] }
 0x399   :  { %v1572_v23 = vld [vmem:[#allocation6 + $0xf00] sm:$0xff] }
 0x39a   :  { %v5131_v44 = vadd.f32 %v5130_v39, %v2569_v33  ;;  %v2072_v33 = vsub.f32 %v1048_v26, %v1560_v27  ;;  %v2583_v39 = vmul.f32 %v2071_v28, %v2071_v28  ;;  %v1061_v27 = vld [vmem:[#allocation3 + $0xf08] sm:$0xff] }
 0x39b   :  { %v1573_v28 = vld [vmem:[#allocation6 + $0xf08] sm:$0xff] }
 0x39c   :  { %v5132_v49 = vadd.f32 %v5131_v44, %v2570_v38  ;;  %v2073_v38 = vsub.f32 %v1049_v31, %v1561_v32  ;;  %v2584_v44 = vmul.f32 %v2072_v33, %v2072_v33  ;;  %v1062_v32 = vld [vmem:[#allocation3 + $0xf10] sm:$0xff] }
 0x39d   :  { %v1574_v33 = vld [vmem:[#allocation6 + $0xf10] sm:$0xff] }
 0x39e   :  { %v5133_v54 = vadd.f32 %v5132_v49, %v2571_v43  ;;  %v2074_v43 = vsub.f32 %v1050_v36, %v1562_v37  ;;  %v2585_v49 = vmul.f32 %v2073_v38, %v2073_v38  ;;  %v1063_v37 = vld [vmem:[#allocation3 + $0xf18] sm:$0xff] }
 0x39f   :  { %v1575_v38 = vld [vmem:[#allocation6 + $0xf18] sm:$0xff] }
 0x3a0   :  { %v5134_v59 = vadd.f32 %v5133_v54, %v2572_v48  ;;  %v2075_v48 = vsub.f32 %v1051_v41, %v1563_v42  ;;  %v2586_v54 = vmul.f32 %v2074_v43, %v2074_v43  ;;  %v1064_v42 = vld [vmem:[#allocation3 + $0xf20] sm:$0xff] }
 0x3a1   :  { %v1576_v43 = vld [vmem:[#allocation6 + $0xf20] sm:$0xff] }
 0x3a2   :  { %v5135_v0 = vadd.f32 %v5134_v59, %v2573_v53  ;;  %v2076_v53 = vsub.f32 %v1052_v46, %v1564_v47  ;;  %v2587_v59 = vmul.f32 %v2075_v48, %v2075_v48  ;;  %v1065_v47 = vld [vmem:[#allocation3 + $0xf28] sm:$0xff] }
 0x3a3   :  { %v1577_v48 = vld [vmem:[#allocation6 + $0xf28] sm:$0xff] }
 0x3a4   :  { %v5136_v5 = vadd.f32 %v5135_v0, %v2574_v58  ;;  %v2077_v58 = vsub.f32 %v1053_v51, %v1565_v52  ;;  %v2588_v0 = vmul.f32 %v2076_v53, %v2076_v53  ;;  %v1066_v52 = vld [vmem:[#allocation3 + $0xf30] sm:$0xff] }
 0x3a5   :  { %v1578_v53 = vld [vmem:[#allocation6 + $0xf30] sm:$0xff] }
 0x3a6   :  { %v5137_v10 = vadd.f32 %v5136_v5, %v2575_v63  ;;  %v2078_v63 = vsub.f32 %v1054_v56, %v1566_v57  ;;  %v2589_v5 = vmul.f32 %v2077_v58, %v2077_v58  ;;  %v1067_v57 = vld [vmem:[#allocation3 + $0xf38] sm:$0xff] }
 0x3a7   :  { %v1579_v58 = vld [vmem:[#allocation6 + $0xf38] sm:$0xff] }
 0x3a8   :  { %v5138_v15 = vadd.f32 %v5137_v10, %v2576_v4  ;;  %v2079_v4 = vsub.f32 %v1055_v61, %v1567_v62  ;;  %v2590_v10 = vmul.f32 %v2078_v63, %v2078_v63  ;;  %v1068_v62 = vld [vmem:[#allocation3 + $0xf40] sm:$0xff] }
 0x3a9   :  { %v1580_v63 = vld [vmem:[#allocation6 + $0xf40] sm:$0xff] }
 0x3aa   :  { %v5139_v20 = vadd.f32 %v5138_v15, %v2577_v9  ;;  %v2080_v9 = vsub.f32 %v1056_v2, %v1568_v3  ;;  %v2591_v15 = vmul.f32 %v2079_v4, %v2079_v4  ;;  %v1069_v3 = vld [vmem:[#allocation3 + $0xf48] sm:$0xff] }
 0x3ab   :  { %v1581_v4 = vld [vmem:[#allocation6 + $0xf48] sm:$0xff] }
 0x3ac   :  { %v5140_v25 = vadd.f32 %v5139_v20, %v2578_v14  ;;  %v2081_v14 = vsub.f32 %v1057_v7, %v1569_v8  ;;  %v2592_v20 = vmul.f32 %v2080_v9, %v2080_v9  ;;  %v1070_v8 = vld [vmem:[#allocation3 + $0xf50] sm:$0xff] }
 0x3ad   :  { %v1582_v9 = vld [vmem:[#allocation6 + $0xf50] sm:$0xff] }
 0x3ae   :  { %v5141_v30 = vadd.f32 %v5140_v25, %v2579_v19  ;;  %v2082_v19 = vsub.f32 %v1058_v12, %v1570_v13  ;;  %v2593_v25 = vmul.f32 %v2081_v14, %v2081_v14  ;;  %v1071_v13 = vld [vmem:[#allocation3 + $0xf58] sm:$0xff] }
 0x3af   :  { %v1583_v14 = vld [vmem:[#allocation6 + $0xf58] sm:$0xff] }
 0x3b0   :  { %v5142_v35 = vadd.f32 %v5141_v30, %v2580_v24  ;;  %v2083_v24 = vsub.f32 %v1059_v17, %v1571_v18  ;;  %v2594_v30 = vmul.f32 %v2082_v19, %v2082_v19  ;;  %v1072_v18 = vld [vmem:[#allocation3 + $0xf60] sm:$0xff] }
 0x3b1   :  { %v1584_v19 = vld [vmem:[#allocation6 + $0xf60] sm:$0xff] }
 0x3b2   :  { %v5143_v40 = vadd.f32 %v5142_v35, %v2581_v29  ;;  %v2084_v29 = vsub.f32 %v1060_v22, %v1572_v23  ;;  %v2595_v35 = vmul.f32 %v2083_v24, %v2083_v24  ;;  %v1073_v23 = vld [vmem:[#allocation3 + $0xf68] sm:$0xff] }
 0x3b3   :  { %v1585_v24 = vld [vmem:[#allocation6 + $0xf68] sm:$0xff] }
 0x3b4   :  { %v5144_v45 = vadd.f32 %v5143_v40, %v2582_v34  ;;  %v2085_v34 = vsub.f32 %v1061_v27, %v1573_v28  ;;  %v2596_v40 = vmul.f32 %v2084_v29, %v2084_v29  ;;  %v1074_v28 = vld [vmem:[#allocation3 + $0xf70] sm:$0xff] }
 0x3b5   :  { %v1586_v29 = vld [vmem:[#allocation6 + $0xf70] sm:$0xff] }
 0x3b6   :  { %v5145_v50 = vadd.f32 %v5144_v45, %v2583_v39  ;;  %v2086_v39 = vsub.f32 %v1062_v32, %v1574_v33  ;;  %v2597_v45 = vmul.f32 %v2085_v34, %v2085_v34  ;;  %v1075_v33 = vld [vmem:[#allocation3 + $0xf78] sm:$0xff] }
 0x3b7   :  { %v1587_v34 = vld [vmem:[#allocation6 + $0xf78] sm:$0xff] }
 0x3b8   :  { %v5146_v55 = vadd.f32 %v5145_v50, %v2584_v44  ;;  %v2087_v44 = vsub.f32 %v1063_v37, %v1575_v38  ;;  %v2598_v50 = vmul.f32 %v2086_v39, %v2086_v39  ;;  %v1076_v38 = vld [vmem:[#allocation3 + $0xf80] sm:$0xff] }
 0x3b9   :  { %v1588_v39 = vld [vmem:[#allocation6 + $0xf80] sm:$0xff] }
 0x3ba   :  { %v5147_v60 = vadd.f32 %v5146_v55, %v2585_v49  ;;  %v2088_v49 = vsub.f32 %v1064_v42, %v1576_v43  ;;  %v2599_v55 = vmul.f32 %v2087_v44, %v2087_v44  ;;  %v1077_v43 = vld [vmem:[#allocation3 + $0xf88] sm:$0xff] }
 0x3bb   :  { %v1589_v44 = vld [vmem:[#allocation6 + $0xf88] sm:$0xff] }
 0x3bc   :  { %v5148_v1 = vadd.f32 %v5147_v60, %v2586_v54  ;;  %v2089_v54 = vsub.f32 %v1065_v47, %v1577_v48  ;;  %v2600_v60 = vmul.f32 %v2088_v49, %v2088_v49  ;;  %v1078_v48 = vld [vmem:[#allocation3 + $0xf90] sm:$0xff] }
 0x3bd   :  { %v1590_v49 = vld [vmem:[#allocation6 + $0xf90] sm:$0xff] }
 0x3be   :  { %v5149_v6 = vadd.f32 %v5148_v1, %v2587_v59  ;;  %v2090_v59 = vsub.f32 %v1066_v52, %v1578_v53  ;;  %v2601_v1 = vmul.f32 %v2089_v54, %v2089_v54  ;;  %v1079_v53 = vld [vmem:[#allocation3 + $0xf98] sm:$0xff] }
 0x3bf   :  { %v1591_v54 = vld [vmem:[#allocation6 + $0xf98] sm:$0xff] }
 0x3c0   :  { %v5150_v11 = vadd.f32 %v5149_v6, %v2588_v0  ;;  %v2091_v0 = vsub.f32 %v1067_v57, %v1579_v58  ;;  %v2602_v6 = vmul.f32 %v2090_v59, %v2090_v59  ;;  %v1080_v58 = vld [vmem:[#allocation3 + $0xfa0] sm:$0xff] }
 0x3c1   :  { %v1592_v59 = vld [vmem:[#allocation6 + $0xfa0] sm:$0xff] }
 0x3c2   :  { %v5151_v16 = vadd.f32 %v5150_v11, %v2589_v5  ;;  %v2092_v5 = vsub.f32 %v1068_v62, %v1580_v63  ;;  %v2603_v11 = vmul.f32 %v2091_v0, %v2091_v0  ;;  %v1081_v63 = vld [vmem:[#allocation3 + $0xfa8] sm:$0xff] }
 0x3c3   :  { %v1593_v0 = vld [vmem:[#allocation6 + $0xfa8] sm:$0xff] }
 0x3c4   :  { %v5152_v21 = vadd.f32 %v5151_v16, %v2590_v10  ;;  %v2093_v10 = vsub.f32 %v1069_v3, %v1581_v4  ;;  %v2604_v16 = vmul.f32 %v2092_v5, %v2092_v5  ;;  %v1082_v4 = vld [vmem:[#allocation3 + $0xfb0] sm:$0xff] }
 0x3c5   :  { %v1594_v5 = vld [vmem:[#allocation6 + $0xfb0] sm:$0xff] }
 0x3c6   :  { %v5153_v26 = vadd.f32 %v5152_v21, %v2591_v15  ;;  %v2094_v15 = vsub.f32 %v1070_v8, %v1582_v9  ;;  %v2605_v21 = vmul.f32 %v2093_v10, %v2093_v10  ;;  %v1083_v9 = vld [vmem:[#allocation3 + $0xfb8] sm:$0xff] }
 0x3c7   :  { %v1595_v10 = vld [vmem:[#allocation6 + $0xfb8] sm:$0xff] }
 0x3c8   :  { %v5154_v31 = vadd.f32 %v5153_v26, %v2592_v20  ;;  %v2095_v20 = vsub.f32 %v1071_v13, %v1583_v14  ;;  %v2606_v26 = vmul.f32 %v2094_v15, %v2094_v15  ;;  %v1084_v14 = vld [vmem:[#allocation3 + $0xfc0] sm:$0xff] }
 0x3c9   :  { %v1596_v15 = vld [vmem:[#allocation6 + $0xfc0] sm:$0xff] }
 0x3ca   :  { %v5155_v36 = vadd.f32 %v5154_v31, %v2593_v25  ;;  %v2096_v25 = vsub.f32 %v1072_v18, %v1584_v19  ;;  %v2607_v31 = vmul.f32 %v2095_v20, %v2095_v20  ;;  %v1085_v19 = vld [vmem:[#allocation3 + $0xfc8] sm:$0xff] }
 0x3cb   :  { %v1597_v20 = vld [vmem:[#allocation6 + $0xfc8] sm:$0xff] }
 0x3cc   :  { %v5156_v41 = vadd.f32 %v5155_v36, %v2594_v30  ;;  %v2097_v30 = vsub.f32 %v1073_v23, %v1585_v24  ;;  %v2608_v36 = vmul.f32 %v2096_v25, %v2096_v25  ;;  %v1086_v24 = vld [vmem:[#allocation3 + $0xfd0] sm:$0xff] }
 0x3cd   :  { %v1598_v25 = vld [vmem:[#allocation6 + $0xfd0] sm:$0xff] }
 0x3ce   :  { %v5157_v46 = vadd.f32 %v5156_v41, %v2595_v35  ;;  %v2098_v35 = vsub.f32 %v1074_v28, %v1586_v29  ;;  %v2609_v41 = vmul.f32 %v2097_v30, %v2097_v30  ;;  %v1087_v29 = vld [vmem:[#allocation3 + $0xfd8] sm:$0xff] }
 0x3cf   :  { %v1599_v30 = vld [vmem:[#allocation6 + $0xfd8] sm:$0xff] }
 0x3d0   :  { %v5158_v51 = vadd.f32 %v5157_v46, %v2596_v40  ;;  %v2099_v40 = vsub.f32 %v1075_v33, %v1587_v34  ;;  %v2610_v46 = vmul.f32 %v2098_v35, %v2098_v35  ;;  %v1088_v34 = vld [vmem:[#allocation3 + $0xfe0] sm:$0xff] }
 0x3d1   :  { %v1600_v35 = vld [vmem:[#allocation6 + $0xfe0] sm:$0xff] }
 0x3d2   :  { %v5159_v56 = vadd.f32 %v5158_v51, %v2597_v45  ;;  %v2100_v45 = vsub.f32 %v1076_v38, %v1588_v39  ;;  %v2611_v51 = vmul.f32 %v2099_v40, %v2099_v40  ;;  %v1089_v39 = vld [vmem:[#allocation3 + $0xfe8] sm:$0xff] }
 0x3d3   :  { %v1601_v40 = vld [vmem:[#allocation6 + $0xfe8] sm:$0xff] }
 0x3d4   :  { %v5160_v61 = vadd.f32 %v5159_v56, %v2598_v50  ;;  %v2101_v50 = vsub.f32 %v1077_v43, %v1589_v44  ;;  %v2612_v56 = vmul.f32 %v2100_v45, %v2100_v45  ;;  %v1090_v44 = vld [vmem:[#allocation3 + $0xff0] sm:$0xff] }
 0x3d5   :  { %v1602_v45 = vld [vmem:[#allocation6 + $0xff0] sm:$0xff] }
 0x3d6   :  { %v5161_v2 = vadd.f32 %v5160_v61, %v2599_v55  ;;  %v2102_v55 = vsub.f32 %v1078_v48, %v1590_v49  ;;  %v2613_v61 = vmul.f32 %v2101_v50, %v2101_v50  ;;  %v1091_v49 = vld [vmem:[#allocation3 + $0xff8] sm:$0xff] }
 0x3d7   :  { %v1603_v50 = vld [vmem:[#allocation6 + $0xff8] sm:$0xff] }
 0x3d8   :  { %v5162_v7 = vadd.f32 %v5161_v2, %v2600_v60  ;;  %v2103_v60 = vsub.f32 %v1079_v53, %v1591_v54  ;;  %v2614_v2 = vmul.f32 %v2102_v55, %v2102_v55  ;;  %v2115_v54 = vsub.f32 %v1091_v49, %v1603_v50 }
 0x3da   :  { %v5163_v12 = vadd.f32 %v5162_v7, %v2601_v1  ;;  %v2104_v1 = vsub.f32 %v1080_v58, %v1592_v59  ;;  %v2615_v7 = vmul.f32 %v2103_v60, %v2103_v60  ;;  %v2627_v59 = vmul.f32 %v2115_v54, %v2115_v54 }
 0x3dc   :  { %v5164_v17 = vadd.f32 %v5163_v12, %v2602_v6  ;;  %v2105_v6 = vsub.f32 %v1081_v63, %v1593_v0  ;;  %v2616_v12 = vmul.f32 %v2104_v1, %v2104_v1 }
 0x3de   :  { %v5165_v22 = vadd.f32 %v5164_v17, %v2603_v11  ;;  %v2106_v11 = vsub.f32 %v1082_v4, %v1594_v5  ;;  %v2617_v17 = vmul.f32 %v2105_v6, %v2105_v6 }
 0x3e0   :  { %v5166_v27 = vadd.f32 %v5165_v22, %v2604_v16  ;;  %v2107_v16 = vsub.f32 %v1083_v9, %v1595_v10  ;;  %v2618_v22 = vmul.f32 %v2106_v11, %v2106_v11 }
 0x3e2   :  { %v5167_v32 = vadd.f32 %v5166_v27, %v2605_v21  ;;  %v2108_v21 = vsub.f32 %v1084_v14, %v1596_v15  ;;  %v2619_v27 = vmul.f32 %v2107_v16, %v2107_v16 }
 0x3e4   :  { %v5168_v37 = vadd.f32 %v5167_v32, %v2606_v26  ;;  %v2109_v26 = vsub.f32 %v1085_v19, %v1597_v20  ;;  %v2620_v32 = vmul.f32 %v2108_v21, %v2108_v21 }
 0x3e6   :  { %v5169_v42 = vadd.f32 %v5168_v37, %v2607_v31  ;;  %v2110_v31 = vsub.f32 %v1086_v24, %v1598_v25  ;;  %v2621_v37 = vmul.f32 %v2109_v26, %v2109_v26 }
 0x3e8   :  { %v5170_v47 = vadd.f32 %v5169_v42, %v2608_v36  ;;  %v2111_v36 = vsub.f32 %v1087_v29, %v1599_v30  ;;  %v2622_v42 = vmul.f32 %v2110_v31, %v2110_v31 }
 0x3ea   :  { %v5171_v52 = vadd.f32 %v5170_v47, %v2609_v41  ;;  %v2112_v41 = vsub.f32 %v1088_v34, %v1600_v35  ;;  %v2623_v47 = vmul.f32 %v2111_v36, %v2111_v36 }
 0x3ec   :  { %v5172_v57 = vadd.f32 %v5171_v52, %v2610_v46  ;;  %v2113_v46 = vsub.f32 %v1089_v39, %v1601_v40  ;;  %v2624_v52 = vmul.f32 %v2112_v41, %v2112_v41 }
 0x3ee   :  { %v5173_v62 = vadd.f32 %v5172_v57, %v2611_v51  ;;  %v2114_v51 = vsub.f32 %v1090_v44, %v1602_v45  ;;  %v2625_v55 = vmul.f32 %v2113_v46, %v2113_v46 }
 0x3f0   :  { %v5174_v3 = vadd.f32 %v5173_v62, %v2612_v56  ;;  %v2626_v57 = vmul.f32 %v2114_v51, %v2114_v51 }
 0x3f2   :  { %v5175_v8 = vadd.f32 %v5174_v3, %v2613_v61 }
 0x3f4   :  { %v5176_v13 = vadd.f32 %v5175_v8, %v2614_v2 }
 0x3f6   :  { %v5177_v18 = vadd.f32 %v5176_v13, %v2615_v7 }
 0x3f8   :  { %v5178_v23 = vadd.f32 %v5177_v18, %v2616_v12 }
 0x3fa   :  { %v5179_v28 = vadd.f32 %v5178_v23, %v2617_v17 }
 0x3fc   :  { %v5180_v33 = vadd.f32 %v5179_v28, %v2618_v22 }
 0x3fe   :  { %v5181_v38 = vadd.f32 %v5180_v33, %v2619_v27 }
 0x400   :  { %v5182_v43 = vadd.f32 %v5181_v38, %v2620_v32 }
 0x402   :  { %v5183_v48 = vadd.f32 %v5182_v43, %v2621_v37 }
 0x404   :  { %v5184_v53 = vadd.f32 %v5183_v48, %v2622_v42 }
 0x406   :  { %v5185_v56 = vadd.f32 %v5184_v53, %v2623_v47 }
 0x408   :  { %v5186_v58 = vadd.f32 %v5185_v56, %v2624_v52 }
 0x40a   :  { %v5187_v60 = vadd.f32 %v5186_v58, %v2625_v55 }
 0x40c   :  { %v5188_v61 = vadd.f32 %v5187_v60, %v2626_v57 }
 0x40e   :  { %v5189_v62 = vadd.f32 %v5188_v61, %v2627_v59 }
 0x410   :  { %5190 = vadd.xlane.f32.xlu0 %v5189_v62 }
 0x483   :  { %v5191_v63 = vpop.xlane.xlu0 %5190 }
 0x484   :  { %v5192_v0 = vrot.slane %v5191_v63, 4 }
 0x486   :  { %v5193_v1 = vadd.f32 %v5192_v0, %v5191_v63 }
 0x488   :  { %v5194_v2 = vrot.slane %v5193_v1, 2 }
 0x48a   :  { %v5195_v3 = vadd.f32 %v5194_v2, %v5193_v1 }
 0x48c   :  { %v5196_v4 = vrot.slane %v5195_v3, 1 }
 0x48e   :  { %v5197_v5 = vadd.f32 %v5196_v4, %v5195_v3 }
 0x490   :  { %5223 = vpush %v5197_v5 }
 0x4c1   :  { %s5224_s22 = spop %5223 }
 0x4c2   :  { %s5199_s23 = smul.f32 1.9073486e-06, %s5224_s22 }
 0x4c4   :  { %5201 = sst [smem:[#allocation8]] %s5199_s23 }
 0x4c5   :  { %5210 = dma.smem_to_hbm %s5300_s24, 16, %s5208_s21, [#allocation5]  }
 0x4c6   :  { %5294 = dma.done.wait [#allocation5], 16  }
 0x4c7   :  { %5295 = vsyncadd [#allocation5], 4294967280 }
 0x4c8   :  { %5215 = sfence }
 0x4c9   :  { %5216 = vsyncpa [#allocation4], 1 }
 0x4ca   :  { %5217 = vsyncpa [#allocation7], 1 }
 0x4cb   :  { %5218 = vsyncpa [#allocation5], 1 }

</bundles_post_ra>
